<compile_context>
chip_gen: v5e
topology: v5e:2x2
jax: 0.10.0
libtpu: 0.0.40
codegen_flags: <defaults>
</compile_context>

<pallas_src>
import jax
import jax.numpy as jnp
from jax.experimental import pallas as pl
from jax.experimental.pallas import tpu as pltpu  # noqa: F401  (not needed after de-tuning)

EMB_DIM = 300
NUM_LAYERS = 5
NUM_ATOM_TYPE = 120
NUM_CHIRALITY = 3
NUM_BOND_TYPE = 6       # bond type 4 == self-loop, as in the PyTorch GCNConv
NUM_BOND_DIR = 3
BN_EPS = 1e-5

LANE = 128
SUBLANE = 8


def _round_up(x, m):
    return ((x + m - 1) // m) * m


# --------------------------------------------------------------------------
# Fused Pallas kernel: all 5 GCN layers + global mean pool, single invocation
# --------------------------------------------------------------------------
def _fused_gcn_kernel(h0_ref, w_ref, e_ref, a_ref, p_ref, out_ref):
    h = h0_ref[...]                          # (NP, DP) bf16 node state
    a = a_ref[...]                           # (NP, NP) bf16 normalized adjacency
    n_layers = w_ref.shape[0]                # static (=5)

    y = None
    for l in range(n_layers):                # fully unrolled layer loop
        # linear with folded BN scale:  H @ W'     (bf16 MXU, f32 accumulation)
        xw = jnp.dot(h, w_ref[l], preferred_element_type=jnp.float32)
        # message passing + fused epilogue:  A @ xw + E_fused[l]
        y = jnp.dot(a, xw.astype(jnp.bfloat16),
                    preferred_element_type=jnp.float32) + e_ref[l]
        if l < n_layers - 1:
            h = jnp.maximum(y, 0.0).astype(jnp.bfloat16)   # ReLU, single bf16 round

    # global mean pool fused at the end:  G = P @ H_final
    out_ref[...] = jnp.dot(p_ref[...], y.astype(jnp.bfloat16),
                           preferred_element_type=jnp.float32)


def fused_gcn_forward(h0, w, e, a_norm, pool):
    np_, dp = h0.shape
    bp = pool.shape[0]
    n_layers = w.shape[0]
    return pl.pallas_call(
        _fused_gcn_kernel,
        out_shape=jax.ShapeDtypeStruct((bp, dp), jnp.float32),
        grid=(1,),                                              # single invocation
        in_specs=[
            pl.BlockSpec((np_, dp), lambda i: (0, 0)),          # H0           (bf16)
            pl.BlockSpec((n_layers, dp, dp), lambda i: (0, 0, 0)),   # W' stack (bf16)
            pl.BlockSpec((n_layers, np_, dp), lambda i: (0, 0, 0)),  # E_fused  (f32)
            pl.BlockSpec((np_, np_), lambda i: (0, 0)),         # A_norm       (bf16)
            pl.BlockSpec((bp, np_), lambda i: (0, 0)),          # pool matrix  (bf16)
        ],
        out_specs=pl.BlockSpec((bp, dp), lambda i: (0, 0)),
    )(h0, w, e, a_norm, pool)


# --------------------------------------------------------------------------
# Parameters (deterministic synthetic init — shapes from GNN.__init__)
# --------------------------------------------------------------------------
def init_params(key):
    keys = jax.random.split(key, 2 + NUM_LAYERS)
    s = 0.1
    params = {
        "x_emb1": jax.random.normal(keys[0], (NUM_ATOM_TYPE, EMB_DIM)) * s,
        "x_emb2": jax.random.normal(keys[1], (NUM_CHIRALITY, EMB_DIM)) * s,
        "layers": [],
    }
    for l in range(NUM_LAYERS):
        k = jax.random.split(keys[2 + l], 8)
        params["layers"].append({
            # linear weight stored already transposed to [in, out]
            "w": jax.random.normal(k[0], (EMB_DIM, EMB_DIM)) / jnp.sqrt(EMB_DIM),
            "b": jax.random.normal(k[1], (EMB_DIM,)) * s,
            "edge_emb1": jax.random.normal(k[2], (NUM_BOND_TYPE, EMB_DIM)) * s,
            "edge_emb2": jax.random.normal(k[3], (NUM_BOND_DIR, EMB_DIM)) * s,
            "gamma": 1.0 + jax.random.normal(k[4], (EMB_DIM,)) * 0.01,
            "beta": jax.random.normal(k[5], (EMB_DIM,)) * 0.01,
            "mean": jax.random.normal(k[6], (EMB_DIM,)) * 0.01,
            "var": 1.0 + jax.random.uniform(k[7], (EMB_DIM,)) * 0.1,
        })
    return jax.tree_util.tree_map(lambda x: x.astype(jnp.float32), params)


# --------------------------------------------------------------------------
# Forward pass (Net.forward -> GNN(graph) with use_graph_agg=True)
# --------------------------------------------------------------------------
def net_forward(params, node_attr, edge_index, edge_attr, batch, num_graphs):
    n = node_attr.shape[0]

    # atom embedding: emb1(atom_type) + emb2(chirality)   (glue: gather)
    h = (params["x_emb1"][node_attr[:, 0]]
         + params["x_emb2"][node_attr[:, 1]]).astype(jnp.float32)

    # add self loops, self-loop edge_attr = [4, 0]
    idx = jnp.arange(n, dtype=edge_index.dtype)
    ei = jnp.concatenate([edge_index, jnp.stack([idx, idx])], axis=1)
    self_attr = jnp.stack(
        [jnp.full((n,), 4, dtype=edge_attr.dtype),
         jnp.zeros((n,), dtype=edge_attr.dtype)], axis=1)
    ea = jnp.concatenate([edge_attr, self_attr], axis=0)

    # GCN symmetric normalization
    row, col = ei[0], ei[1]                       # source -> target
    deg = jnp.zeros((n,), jnp.float32).at[row].add(1.0)
    dinv = jax.lax.rsqrt(deg)                     # deg >= 1 (self loops)
    norm = dinv[row] * dinv[col]                  # per-edge coefficient
    a_norm = jnp.zeros((n, n), jnp.float32).at[col, row].add(norm)
    a_rowsum = jnp.sum(a_norm, axis=1)            # for folding the bias term

    # per-layer: fold bias + BatchNorm(eval) into W and the additive term
    #   y = A @ (H @ (W*scale)) + [E*scale + shift + rowsum(A)*(b*scale)]
    w_l, e_l = [], []
    for l in range(NUM_LAYERS):
        p = params["layers"][l]
        scale = p["gamma"] * jax.lax.rsqrt(p["var"] + BN_EPS)
        shift = p["beta"] - p["mean"] * scale
        e_edge = p["edge_emb1"][ea[:, 0]] + p["edge_emb2"][ea[:, 1]]      # gather
        e_node = jax.ops.segment_sum(norm[:, None] * e_edge, col,
                                     num_segments=n)                      # scatter-add
        w_l.append(p["w"] * scale[None, :])
        e_l.append(e_node * scale[None, :] + shift[None, :]
                   + a_rowsum[:, None] * (p["b"] * scale)[None, :])
    W = jnp.stack(w_l)                              # [L, D, D]  fused W'
    E = jnp.stack(e_l)                              # [L, N, D]  fused epilogue

    # graph aggregation: global mean pool matrix
    pool = (batch[None, :] == jnp.arange(num_graphs)[:, None]).astype(jnp.float32)
    pool = pool / jnp.maximum(jnp.sum(pool, axis=1, keepdims=True), 1.0)

    # ---- pad to TPU-friendly shapes (emb -> x128 lanes, nodes -> x16, graphs -> x8) ----
    NP = max(16, _round_up(n, 16))
    DP = _round_up(EMB_DIM, LANE)
    BP = max(SUBLANE, _round_up(num_graphs, SUBLANE))

    h0_p = jnp.zeros((NP, DP), jnp.float32).at[:n, :EMB_DIM].set(h)
    W_p = jnp.zeros((NUM_LAYERS, DP, DP), jnp.float32).at[:, :EMB_DIM, :EMB_DIM].set(W)
    E_p = jnp.zeros((NUM_LAYERS, NP, DP), jnp.float32).at[:, :n, :EMB_DIM].set(E)
    A_p = jnp.zeros((NP, NP), jnp.float32).at[:n, :n].set(a_norm)
    P_p = jnp.zeros((BP, NP), jnp.float32).at[:num_graphs, :n].set(pool)

    out = fused_gcn_forward(h0_p.astype(jnp.bfloat16),
                            W_p.astype(jnp.bfloat16),     # MXU operands in bf16
                            E_p,                          # additive term stays f32
                            A_p.astype(jnp.bfloat16),
                            P_p.astype(jnp.bfloat16))
    # TODO(synk): original use_graph_agg may unsqueeze to [B, 1, emb_dim]; we return [B, emb_dim].
    return out[:num_graphs, :EMB_DIM]


# --------------------------------------------------------------------------
if __name__ == "__main__":
    key = jax.random.PRNGKey(0)
    k_param, k_atom, k_chi, k_bt, k_bd = jax.random.split(key, 5)

    params = init_params(k_param)

    # small synthetic batched graph: 2 graphs x 16 nodes (ring topology)
    num_graphs = 2
    nodes_per_graph = 16
    n = num_graphs * nodes_per_graph

    node_attr = jnp.stack(
        [jax.random.randint(k_atom, (n,), 0, NUM_ATOM_TYPE),
         jax.random.randint(k_chi, (n,), 0, NUM_CHIRALITY)], axis=1
    ).astype(jnp.int32)

    src_list, dst_list = [], []
    for g in range(num_graphs):
        base = g * nodes_per_graph
        for i in range(nodes_per_graph):
            j = (i + 1) % nodes_per_graph
            src_list += [base + i, base + j]      # both directions
            dst_list += [base + j, base + i]
    edge_index = jnp.array([src_list, dst_list], dtype=jnp.int32)   # [2, 64]
    num_edges = edge_index.shape[1]
    edge_attr = jnp.stack(
        [jax.random.randint(k_bt, (num_edges,), 0, 4),               # real bond types 0..3
         jax.random.randint(k_bd, (num_edges,), 0, NUM_BOND_DIR)],
        axis=1).astype(jnp.int32)                                    # [64, 2]
    batch = jnp.repeat(jnp.arange(num_graphs, dtype=jnp.int32),
                       nodes_per_graph)                              # [32]

    out = net_forward(params, node_attr, edge_index, edge_attr, batch,
                      num_graphs)
    out = jax.block_until_ready(out)
    assert out.shape == (num_graphs, EMB_DIM) and out.dtype == jnp.float32
    assert bool(jnp.all(jnp.isfinite(out)))
    print("KERNEL_OK")
</pallas_src>

<mosaic_0001>
module attributes {stable_mosaic.version = 11 : i64} {
  func.func @_fused_gcn_kernel(%arg0: i32, %arg1: memref<32x384xbf16, #tpu.memory_space<vmem>>, %arg2: memref<5x384x384xbf16, #tpu.memory_space<vmem>>, %arg3: memref<5x32x384xf32, #tpu.memory_space<vmem>>, %arg4: memref<32x32xbf16, #tpu.memory_space<vmem>>, %arg5: memref<8x32xbf16, #tpu.memory_space<vmem>>, %arg6: memref<8x384xf32, #tpu.memory_space<vmem>>) attributes {dimension_semantics = [#tpu.dimension_semantics<arbitrary>], iteration_bounds = array<i64: 1>, scalar_prefetch = 0 : i64, scratch_operands = 0 : i64, tpu.core_type = #tpu.core_type<tc>, window_params = [{pipeline_mode = #tpu.pipeline_mode<synchronous>, transform_indices = @transform_0, window_bounds = array<i64: 32, 384>}, {pipeline_mode = #tpu.pipeline_mode<synchronous>, transform_indices = @transform_1, window_bounds = array<i64: 5, 384, 384>}, {pipeline_mode = #tpu.pipeline_mode<synchronous>, transform_indices = @transform_2, window_bounds = array<i64: 5, 32, 384>}, {pipeline_mode = #tpu.pipeline_mode<synchronous>, transform_indices = @transform_3, window_bounds = array<i64: 32, 32>}, {pipeline_mode = #tpu.pipeline_mode<synchronous>, transform_indices = @transform_4, window_bounds = array<i64: 8, 32>}, {pipeline_mode = #tpu.pipeline_mode<synchronous>, transform_indices = @transform_5, window_bounds = array<i64: 8, 384>}]} {
    %c0 = arith.constant 0 : index
    %c0_0 = arith.constant 0 : index
    %0 = vector.load %arg1[%c0, %c0_0] : memref<32x384xbf16, #tpu.memory_space<vmem>>, vector<32x384xbf16>
    %c0_1 = arith.constant 0 : index
    %c0_2 = arith.constant 0 : index
    %1 = vector.load %arg4[%c0_1, %c0_2] : memref<32x32xbf16, #tpu.memory_space<vmem>>, vector<32x32xbf16>
    %c0_3 = arith.constant 0 : index
    %c0_4 = arith.constant 0 : index
    %c0_5 = arith.constant 0 : index
    %2 = vector.load %arg2[%c0_3, %c0_4, %c0_5] : memref<5x384x384xbf16, #tpu.memory_space<vmem>>, vector<1x384x384xbf16>
    %3 = vector.shape_cast %2 : vector<1x384x384xbf16> to vector<384x384xbf16>
    %cst = arith.constant dense<0.000000e+00> : vector<32x384xf32>
    %4 = tpu.matmul %0, %3, %cst {dimension_numbers = #tpu.dot_dimension_numbers<[1], [0], [0], [1], [0, 0, 1, 1], [], []>} : vector<32x384xbf16>, vector<384x384xbf16>, vector<32x384xf32> -> vector<32x384xf32>
    %5 = arith.truncf %4 : vector<32x384xf32> to vector<32x384xbf16>
    %cst_6 = arith.constant dense<0.000000e+00> : vector<32x384xf32>
    %6 = tpu.matmul %1, %5, %cst_6 {dimension_numbers = #tpu.dot_dimension_numbers<[1], [0], [0], [1], [0, 0, 1, 1], [], []>} : vector<32x32xbf16>, vector<32x384xbf16>, vector<32x384xf32> -> vector<32x384xf32>
    %c0_7 = arith.constant 0 : index
    %c0_8 = arith.constant 0 : index
    %c0_9 = arith.constant 0 : index
    %7 = vector.load %arg3[%c0_7, %c0_8, %c0_9] : memref<5x32x384xf32, #tpu.memory_space<vmem>>, vector<1x32x384xf32>
    %8 = vector.shape_cast %7 : vector<1x32x384xf32> to vector<32x384xf32>
    %9 = arith.addf %6, %8 : vector<32x384xf32>
    %cst_10 = arith.constant 0.000000e+00 : f32
    %10 = vector.broadcast %cst_10 : f32 to vector<32x384xf32>
    %11 = arith.maximumf %9, %10 : vector<32x384xf32>
    %12 = arith.truncf %11 : vector<32x384xf32> to vector<32x384xbf16>
    %c1 = arith.constant 1 : index
    %c0_11 = arith.constant 0 : index
    %c0_12 = arith.constant 0 : index
    %13 = vector.load %arg2[%c1, %c0_11, %c0_12] : memref<5x384x384xbf16, #tpu.memory_space<vmem>>, vector<1x384x384xbf16>
    %14 = vector.shape_cast %13 : vector<1x384x384xbf16> to vector<384x384xbf16>
    %cst_13 = arith.constant dense<0.000000e+00> : vector<32x384xf32>
    %15 = tpu.matmul %12, %14, %cst_13 {dimension_numbers = #tpu.dot_dimension_numbers<[1], [0], [0], [1], [0, 0, 1, 1], [], []>} : vector<32x384xbf16>, vector<384x384xbf16>, vector<32x384xf32> -> vector<32x384xf32>
    %16 = arith.truncf %15 : vector<32x384xf32> to vector<32x384xbf16>
    %cst_14 = arith.constant dense<0.000000e+00> : vector<32x384xf32>
    %17 = tpu.matmul %1, %16, %cst_14 {dimension_numbers = #tpu.dot_dimension_numbers<[1], [0], [0], [1], [0, 0, 1, 1], [], []>} : vector<32x32xbf16>, vector<32x384xbf16>, vector<32x384xf32> -> vector<32x384xf32>
    %c1_15 = arith.constant 1 : index
    %c0_16 = arith.constant 0 : index
    %c0_17 = arith.constant 0 : index
    %18 = vector.load %arg3[%c1_15, %c0_16, %c0_17] : memref<5x32x384xf32, #tpu.memory_space<vmem>>, vector<1x32x384xf32>
    %19 = vector.shape_cast %18 : vector<1x32x384xf32> to vector<32x384xf32>
    %20 = arith.addf %17, %19 : vector<32x384xf32>
    %cst_18 = arith.constant 0.000000e+00 : f32
    %21 = vector.broadcast %cst_18 : f32 to vector<32x384xf32>
    %22 = arith.maximumf %20, %21 : vector<32x384xf32>
    %23 = arith.truncf %22 : vector<32x384xf32> to vector<32x384xbf16>
    %c2 = arith.constant 2 : index
    %c0_19 = arith.constant 0 : index
    %c0_20 = arith.constant 0 : index
    %24 = vector.load %arg2[%c2, %c0_19, %c0_20] : memref<5x384x384xbf16, #tpu.memory_space<vmem>>, vector<1x384x384xbf16>
    %25 = vector.shape_cast %24 : vector<1x384x384xbf16> to vector<384x384xbf16>
    %cst_21 = arith.constant dense<0.000000e+00> : vector<32x384xf32>
    %26 = tpu.matmul %23, %25, %cst_21 {dimension_numbers = #tpu.dot_dimension_numbers<[1], [0], [0], [1], [0, 0, 1, 1], [], []>} : vector<32x384xbf16>, vector<384x384xbf16>, vector<32x384xf32> -> vector<32x384xf32>
    %27 = arith.truncf %26 : vector<32x384xf32> to vector<32x384xbf16>
    %cst_22 = arith.constant dense<0.000000e+00> : vector<32x384xf32>
    %28 = tpu.matmul %1, %27, %cst_22 {dimension_numbers = #tpu.dot_dimension_numbers<[1], [0], [0], [1], [0, 0, 1, 1], [], []>} : vector<32x32xbf16>, vector<32x384xbf16>, vector<32x384xf32> -> vector<32x384xf32>
    %c2_23 = arith.constant 2 : index
    %c0_24 = arith.constant 0 : index
    %c0_25 = arith.constant 0 : index
    %29 = vector.load %arg3[%c2_23, %c0_24, %c0_25] : memref<5x32x384xf32, #tpu.memory_space<vmem>>, vector<1x32x384xf32>
    %30 = vector.shape_cast %29 : vector<1x32x384xf32> to vector<32x384xf32>
    %31 = arith.addf %28, %30 : vector<32x384xf32>
    %cst_26 = arith.constant 0.000000e+00 : f32
    %32 = vector.broadcast %cst_26 : f32 to vector<32x384xf32>
    %33 = arith.maximumf %31, %32 : vector<32x384xf32>
    %34 = arith.truncf %33 : vector<32x384xf32> to vector<32x384xbf16>
    %c3 = arith.constant 3 : index
    %c0_27 = arith.constant 0 : index
    %c0_28 = arith.constant 0 : index
    %35 = vector.load %arg2[%c3, %c0_27, %c0_28] : memref<5x384x384xbf16, #tpu.memory_space<vmem>>, vector<1x384x384xbf16>
    %36 = vector.shape_cast %35 : vector<1x384x384xbf16> to vector<384x384xbf16>
    %cst_29 = arith.constant dense<0.000000e+00> : vector<32x384xf32>
    %37 = tpu.matmul %34, %36, %cst_29 {dimension_numbers = #tpu.dot_dimension_numbers<[1], [0], [0], [1], [0, 0, 1, 1], [], []>} : vector<32x384xbf16>, vector<384x384xbf16>, vector<32x384xf32> -> vector<32x384xf32>
    %38 = arith.truncf %37 : vector<32x384xf32> to vector<32x384xbf16>
    %cst_30 = arith.constant dense<0.000000e+00> : vector<32x384xf32>
    %39 = tpu.matmul %1, %38, %cst_30 {dimension_numbers = #tpu.dot_dimension_numbers<[1], [0], [0], [1], [0, 0, 1, 1], [], []>} : vector<32x32xbf16>, vector<32x384xbf16>, vector<32x384xf32> -> vector<32x384xf32>
    %c3_31 = arith.constant 3 : index
    %c0_32 = arith.constant 0 : index
    %c0_33 = arith.constant 0 : index
    %40 = vector.load %arg3[%c3_31, %c0_32, %c0_33] : memref<5x32x384xf32, #tpu.memory_space<vmem>>, vector<1x32x384xf32>
    %41 = vector.shape_cast %40 : vector<1x32x384xf32> to vector<32x384xf32>
    %42 = arith.addf %39, %41 : vector<32x384xf32>
    %cst_34 = arith.constant 0.000000e+00 : f32
    %43 = vector.broadcast %cst_34 : f32 to vector<32x384xf32>
    %44 = arith.maximumf %42, %43 : vector<32x384xf32>
    %45 = arith.truncf %44 : vector<32x384xf32> to vector<32x384xbf16>
    %c4 = arith.constant 4 : index
    %c0_35 = arith.constant 0 : index
    %c0_36 = arith.constant 0 : index
    %46 = vector.load %arg2[%c4, %c0_35, %c0_36] : memref<5x384x384xbf16, #tpu.memory_space<vmem>>, vector<1x384x384xbf16>
    %47 = vector.shape_cast %46 : vector<1x384x384xbf16> to vector<384x384xbf16>
    %cst_37 = arith.constant dense<0.000000e+00> : vector<32x384xf32>
    %48 = tpu.matmul %45, %47, %cst_37 {dimension_numbers = #tpu.dot_dimension_numbers<[1], [0], [0], [1], [0, 0, 1, 1], [], []>} : vector<32x384xbf16>, vector<384x384xbf16>, vector<32x384xf32> -> vector<32x384xf32>
    %49 = arith.truncf %48 : vector<32x384xf32> to vector<32x384xbf16>
    %cst_38 = arith.constant dense<0.000000e+00> : vector<32x384xf32>
    %50 = tpu.matmul %1, %49, %cst_38 {dimension_numbers = #tpu.dot_dimension_numbers<[1], [0], [0], [1], [0, 0, 1, 1], [], []>} : vector<32x32xbf16>, vector<32x384xbf16>, vector<32x384xf32> -> vector<32x384xf32>
    %c4_39 = arith.constant 4 : index
    %c0_40 = arith.constant 0 : index
    %c0_41 = arith.constant 0 : index
    %51 = vector.load %arg3[%c4_39, %c0_40, %c0_41] : memref<5x32x384xf32, #tpu.memory_space<vmem>>, vector<1x32x384xf32>
    %52 = vector.shape_cast %51 : vector<1x32x384xf32> to vector<32x384xf32>
    %53 = arith.addf %50, %52 : vector<32x384xf32>
    %c0_42 = arith.constant 0 : index
    %c0_43 = arith.constant 0 : index
    %54 = vector.load %arg5[%c0_42, %c0_43] : memref<8x32xbf16, #tpu.memory_space<vmem>>, vector<8x32xbf16>
    %55 = arith.truncf %53 : vector<32x384xf32> to vector<32x384xbf16>
    %cst_44 = arith.constant dense<0.000000e+00> : vector<8x384xf32>
    %56 = tpu.matmul %54, %55, %cst_44 {dimension_numbers = #tpu.dot_dimension_numbers<[1], [0], [0], [1], [0, 0, 1, 1], [], []>} : vector<8x32xbf16>, vector<32x384xbf16>, vector<8x384xf32> -> vector<8x384xf32>
    %c0_45 = arith.constant 0 : index
    %c0_46 = arith.constant 0 : index
    %57 = vector.load %arg6[%c0_45, %c0_46] : memref<8x384xf32, #tpu.memory_space<vmem>>, vector<8x384xf32>
    tpu.vector_store %arg6[%c0_45, %c0_46], %56 {strides = array<i32>} : memref<8x384xf32, #tpu.memory_space<vmem>>, vector<8x384xf32>,
    return
  }
  func.func @transform_0(%arg0: i32) -> (i32, i32) {
    %c0_i32 = arith.constant 0 : i32
    %c0_i32_0 = arith.constant 0 : i32
    %c0_i32_1 = arith.constant 0 : i32
    return %c0_i32, %c0_i32_0 : i32, i32
  }
  func.func @transform_1(%arg0: i32) -> (i32, i32, i32) {
    %c0_i32 = arith.constant 0 : i32
    %c0_i32_0 = arith.constant 0 : i32
    %c0_i32_1 = arith.constant 0 : i32
    %c0_i32_2 = arith.constant 0 : i32
    return %c0_i32, %c0_i32_0, %c0_i32_1 : i32, i32, i32
  }
  func.func @transform_2(%arg0: i32) -> (i32, i32, i32) {
    %c0_i32 = arith.constant 0 : i32
    %c0_i32_0 = arith.constant 0 : i32
    %c0_i32_1 = arith.constant 0 : i32
    %c0_i32_2 = arith.constant 0 : i32
    return %c0_i32, %c0_i32_0, %c0_i32_1 : i32, i32, i32
  }
  func.func @transform_3(%arg0: i32) -> (i32, i32) {
    %c0_i32 = arith.constant 0 : i32
    %c0_i32_0 = arith.constant 0 : i32
    %c0_i32_1 = arith.constant 0 : i32
    return %c0_i32, %c0_i32_0 : i32, i32
  }
  func.func @transform_4(%arg0: i32) -> (i32, i32) {
    %c0_i32 = arith.constant 0 : i32
    %c0_i32_0 = arith.constant 0 : i32
    %c0_i32_1 = arith.constant 0 : i32
    return %c0_i32, %c0_i32_0 : i32, i32
  }
  func.func @transform_5(%arg0: i32) -> (i32, i32) {
    %c0_i32 = arith.constant 0 : i32
    %c0_i32_0 = arith.constant 0 : i32
    %c0_i32_1 = arith.constant 0 : i32
    return %c0_i32, %c0_i32_0 : i32, i32
  }
}

</mosaic_0001>

<bundles_post_ra>
// kernel: tpu_custom_call.1
= control target key start
LH: loop header
LB: loop body
LE: loop exit
PB: predicated region body
PF: predicated region fallthrough
CT: control target
= control target key end

     0   :  { %10 = vsyncpa [#allocation3], 0  ;;  %s6211_s0 = inlined_call_operand.hbm [shape: bf16[32,384], index: 0, kind: input, shape index: {}]   ;;  %s6212_s1 = inlined_call_operand.hbm [shape: bf16[5,384,384], index: 1, kind: input, shape index: {}]   ;;  %s6213_s2 = inlined_call_operand.hbm [shape: f32[5,32,384], index: 2, kind: input, shape index: {}]   ;;  %s6214_s3 = inlined_call_operand.hbm [shape: bf16[32,32], index: 3, kind: input, shape index: {}]   ;;  %s6215_s4 = inlined_call_operand.hbm [shape: bf16[8,32], index: 4, kind: input, shape index: {}]   ;;  %s6216_s5 = inlined_call_operand.hbm [shape: f32[8,384], index: 5, kind: output, shape index: {}]  }
   0x1   :  { %11 = vsyncpa [#allocation6], 0 }
   0x2   :  { %12 = vsyncpa [#allocation9], 0 }
   0x3   :  { %13 = vsyncpa [#allocation4], 0  ;;  %s31_s20 = sshll.u32 %s6212_s1, 4  ;;  %s5981_s21 = smov [#allocation5]   ;;  %s32_s20 = int_to_ptr.hbm [resolvable:$true] %s31_s20 }
   0x4   :  { %s33_s22 = sshll.u32 %s5981_s21, 4  ;;  %s57_s25 = sshll.u32 %s6214_s3, 4  ;;  %s34_s22 = int_to_ptr.vmem [resolvable:$true] %s33_s22  ;;  %s58_s25 = int_to_ptr.hbm [resolvable:$true] %s57_s25 }
   0x5   :  { %s5982_s26 = smov 192   ;;  %s5983_s27 = smov 12  }
   0x6   :  { %39 = dma.hbm_to_vmem [thread:$0]  %s32_s20, 46080, %s34_s22, [#allocation6], %s5982_s26, %s5982_s26, %s5983_s27  }
   0x7   :  { %s5984_s28 = smov [#allocation8]   ;;  %s5985_s30 = smov 64  }
   0x8   :  { %s59_s29 = sshll.u32 %s5984_s28, 4  ;;  %s5986_s6 = smov 4   ;;  %s60_s29 = int_to_ptr.vmem [resolvable:$true] %s59_s29 }
   0x9   :  { %65 = dma.hbm_to_vmem [thread:$0]  %s58_s25, 256, %s60_s29, [#allocation9], %s5985_s30, %s5985_s30, %s5986_s6  }
   0xa   :  { %s18_s8 = sshll.u32 %s6211_s0, 4  ;;  %s5987_s9 = smov [#allocation2]   ;;  %s19_s8 = int_to_ptr.hbm [resolvable:$true] %s18_s8 }
   0xb   :  { %s20_s10 = sshll.u32 %s5987_s9, 4  ;;  %s44_s12 = sshll.u32 %s6213_s2, 4  ;;  %s21_s10 = int_to_ptr.vmem [resolvable:$true] %s20_s10  ;;  %s45_s12 = int_to_ptr.hbm [resolvable:$true] %s44_s12 }
   0xc   :  { %26 = dma.hbm_to_vmem [thread:$0]  %s19_s8, 768, %s21_s10, [#allocation3], %s5982_s26, %s5982_s26, %s5983_s27  }
   0xd   :  { %s5988_s13 = smov [#allocation7]   ;;  %s5989_s15 = smov 384  }
   0xe   :  { %s46_s14 = sshll.u32 %s5988_s13, 4  ;;  %s5990_s16 = smov 24   ;;  %s47_s14 = int_to_ptr.vmem [resolvable:$true] %s46_s14 }
   0xf   :  { %52 = dma.hbm_to_vmem [thread:$0]  %s45_s12, 7680, %s47_s14, [#allocation6], %s5989_s15, %s5989_s15, %s5990_s16  }
  0x10   :  { %s71_s0 = sshll.u32 %s6215_s4, 4  ;;  %s5991_s19 = smov [#allocation10]   ;;  %s72_s0 = int_to_ptr.hbm [resolvable:$true] %s71_s0 }
  0x11   :  { %s73_s20 = sshll.u32 %s5991_s19, 4  ;;  %s74_s20 = int_to_ptr.vmem [resolvable:$true] %s73_s20 }
  0x12   :  { %76 = dma.hbm_to_vmem [thread:$0]  %s72_s0, 64, %s74_s20, [#allocation9]  }
  0x13   :  { %5973 = dma.done.wait [#allocation3], 768  }
  0x14   :  { %5974 = vsyncadd [#allocation3], 4294966528 }
  0x15   :  { %5975 = dma.done.wait [#allocation6], 53760  }
  0x16   :  { %5976 = vsyncadd [#allocation6], 4294913536 }
  0x17   :  { %5977 = dma.done.wait [#allocation9], 320  }
  0x18   :  { %5978 = vsyncadd [#allocation9], 4294966976  ;;  %v4050_v0 = vld [vmem:[#allocation5 + $0xa8] sm:$0xf]  ;;  %v5475_v1 = vld [vmem:[#allocation5 + $0xb0] sm:$0xf0] }
  0x19   :  { %v4146_v2 = vld [vmem:[#allocation5 + $0x168] sm:$0xf]  ;;  %v4051_v3 = vor.u32 %v5475_v1, %v4050_v0  ;;  %v5499_v4 = vld [vmem:[#allocation5 + $0x170] sm:$0xf0]  ;;  %v4038_v9 = vld [vmem:[#allocation5 + $0x90] sm:$0xf] }
  0x1a   :  { %v4242_v5 = vld [vmem:[#allocation5 + $0x228] sm:$0xf]  ;;  %v5523_v6 = vld [vmem:[#allocation5 + $0x230] sm:$0xf0]  ;;  %v4147_v7 = vor.u32 %v5499_v4, %v4146_v2  ;;  %v5472_v10 = vld [vmem:[#allocation5 + $0x98] sm:$0xf0] }
  0x1b   :  { %v4243_v8 = vor.u32 %v5523_v6, %v4242_v5  ;;  %v4134_v11 = vld [vmem:[#allocation5 + $0x150] sm:$0xf]  ;;  %622 = vmatpush.bf16.msra.mxu0 %v4051_v3  ;;  %v4039_v12 = vor.u32 %v5472_v10, %v4038_v9  ;;  %v5496_v13 = vld [vmem:[#allocation5 + $0x158] sm:$0xf0]  ;;  %v4026_v18 = vld [vmem:[#allocation5 + $0x78] sm:$0xf] }
  0x1c   :  { %v4230_v14 = vld [vmem:[#allocation5 + $0x210] sm:$0xf]  ;;  %v5520_v15 = vld [vmem:[#allocation5 + $0x218] sm:$0xf0]  ;;  %641 = vmatpush.bf16.msra.mxu1 %v4147_v7  ;;  %v4135_v16 = vor.u32 %v5496_v13, %v4134_v11  ;;  %v5469_v19 = vld [vmem:[#allocation5 + $0x80] sm:$0xf0] }
  0x1d   :  { %660 = vmatpush.bf16.msra.mxu2 %v4243_v8  ;;  %v4231_v17 = vor.u32 %v5520_v15, %v4230_v14  ;;  %v4122_v20 = vld [vmem:[#allocation5 + $0x138] sm:$0xf]  ;;  %v5493_v21 = vld [vmem:[#allocation5 + $0x140] sm:$0xf0]  ;;  %v4027_v24 = vor.u32 %v5469_v19, %v4026_v18  ;;  %v4014_v27 = vld [vmem:[#allocation5 + $0x60] sm:$0xf] }
  0x1e   :  { %v4218_v22 = vld [vmem:[#allocation5 + $0x1f8] sm:$0xf]  ;;  %v5517_v23 = vld [vmem:[#allocation5 + $0x200] sm:$0xf0]  ;;  %v4123_v25 = vor.u32 %v5493_v21, %v4122_v20  ;;  %v5466_v28 = vld [vmem:[#allocation5 + $0x68] sm:$0xf0] }
  0x1f   :  { %623 = vmatpush.bf16.msra.mxu0 %v4039_v12  ;;  %v4219_v26 = vor.u32 %v5517_v23, %v4218_v22  ;;  %v4110_v29 = vld [vmem:[#allocation5 + $0x120] sm:$0xf]  ;;  %v5490_v30 = vld [vmem:[#allocation5 + $0x128] sm:$0xf0]  ;;  %v4052_v34 = vld [vmem:[#allocation5 + $0xb4] sm:$0xf0]  ;;  %v4015_v35 = vor.u32 %v5466_v28, %v4014_v27 }
  0x20   :  { %642 = vmatpush.bf16.msra.mxu1 %v4135_v16  ;;  %v4206_v31 = vld [vmem:[#allocation5 + $0x1e0] sm:$0xf]  ;;  %v5514_v32 = vld [vmem:[#allocation5 + $0x1e8] sm:$0xf0]  ;;  %v4002_v36 = vld [vmem:[#allocation5 + $0x48] sm:$0xf]  ;;  %v4111_v39 = vor.u32 %v5490_v30, %v4110_v29 }
  0x21   :  { %661 = vmatpush.bf16.msra.mxu2 %v4231_v17  ;;  %v5474_v33 = vld [vmem:[#allocation5 + $0xac] sm:$0xf]  ;;  %v5463_v37 = vld [vmem:[#allocation5 + $0x50] sm:$0xf0]  ;;  %v4207_v40 = vor.u32 %v5514_v32, %v4206_v31  ;;  %v4098_v41 = vld [vmem:[#allocation5 + $0x108] sm:$0xf] }
  0x22   :  { %v4055_v38 = vor.u32 %v5474_v33, %v4052_v34  ;;  %v5487_v42 = vld [vmem:[#allocation5 + $0x110] sm:$0xf0]  ;;  %v4194_v44 = vld [vmem:[#allocation5 + $0x1c8] sm:$0xf]  ;;  %v4040_v46 = vld [vmem:[#allocation5 + $0x9c] sm:$0xf0]  ;;  %v4003_v48 = vor.u32 %v5463_v37, %v4002_v36 }
  0x23   :  { %624 = vmatpush.bf16.msra.mxu0 %v4027_v24  ;;  %v5471_v43 = vld [vmem:[#allocation5 + $0x94] sm:$0xf]  ;;  %v5468_v49 = vld [vmem:[#allocation5 + $0x7c] sm:$0xf]  ;;  %v4028_v50 = vld [vmem:[#allocation5 + $0x84] sm:$0xf0]  ;;  %v4099_v51 = vor.u32 %v5487_v42, %v4098_v41 }
  0x24   :  { %643 = vmatpush.bf16.msra.mxu1 %v4123_v25  ;;  %v5511_v45 = vld [vmem:[#allocation5 + $0x1d0] sm:$0xf0]  ;;  %679 = vmatpush.bf16.msra.mxu3 %v4055_v38  ;;  %v4043_v47 = vor.u32 %v5471_v43, %v4040_v46  ;;  %v3990_v53 = vld [vmem:[#allocation5 + $0x30] sm:$0xf]  ;;  %v5460_v54 = vld [vmem:[#allocation5 + $0x38] sm:$0xf0]  ;;  %v4031_v59 = vor.u32 %v5468_v49, %v4028_v50 }
  0x25   :  { %662 = vmatpush.bf16.msra.mxu2 %v4219_v26  ;;  %v4195_v52 = vor.u32 %v5511_v45, %v4194_v44  ;;  %v4086_v55 = vld [vmem:[#allocation5 + $0xf0] sm:$0xf]  ;;  %v5484_v56 = vld [vmem:[#allocation5 + $0xf8] sm:$0xf0]  ;;  %v5465_v60 = vld [vmem:[#allocation5 + $0x64] sm:$0xf]  ;;  %v3991_v62 = vor.u32 %v5460_v54, %v3990_v53 }
  0x26   :  { %v4182_v57 = vld [vmem:[#allocation5 + $0x1b0] sm:$0xf]  ;;  %v5508_v58 = vld [vmem:[#allocation5 + $0x1b8] sm:$0xf0]  ;;  %v4087_v63 = vor.u32 %v5484_v56, %v4086_v55  ;;  %v3978_v1 = vld [vmem:[#allocation5 + $0x18] sm:$0xf] }
  0x27   :  { %625 = vmatpush.bf16.msra.mxu0 %v4015_v35  ;;  %v4016_v61 = vld [vmem:[#allocation5 + $0x6c] sm:$0xf0]  ;;  %v4183_v0 = vor.u32 %v5508_v58, %v4182_v57  ;;  %v5457_v2 = vld [vmem:[#allocation5 + $0x20] sm:$0xf0]  ;;  %v4074_v3 = vld [vmem:[#allocation5 + $0xd8] sm:$0xf] }
  0x28   :  { %644 = vmatpush.bf16.msra.mxu1 %v4111_v39  ;;  %680 = vmatpush.bf16.msra.mxu3 %v4043_v47  ;;  %v5481_v4 = vld [vmem:[#allocation5 + $0xe0] sm:$0xf0]  ;;  %v4170_v5 = vld [vmem:[#allocation5 + $0x198] sm:$0xf]  ;;  %v4019_v7 = vor.u32 %v5465_v60, %v4016_v61  ;;  %v5462_v8 = vld [vmem:[#allocation5 + $0x4c] sm:$0xf]  ;;  %v3979_v10 = vor.u32 %v5457_v2, %v3978_v1 }
  0x29   :  { %663 = vmatpush.bf16.msra.mxu2 %v4207_v40  ;;  %v5505_v6 = vld [vmem:[#allocation5 + $0x1a0] sm:$0xf0]  ;;  %v4004_v9 = vld [vmem:[#allocation5 + $0x54] sm:$0xf0]  ;;  %v3966_v11 = vld [vmem:[#allocation5] sm:$0xf]  ;;  %v4075_v14 = vor.u32 %v5481_v4, %v4074_v3 }
  0x2a   :  { %v5454_v12 = vld [vmem:[#allocation5 + $0x8] sm:$0xf0]  ;;  %v4062_v13 = vld [vmem:[#allocation5 + $0xc0] sm:$0xf]  ;;  %v4171_v15 = vor.u32 %v5505_v6, %v4170_v5  ;;  %v3942_v19 = vld [vmem:[#allocation2] sm:$0xf]  ;;  %v4007_v21 = vor.u32 %v5462_v8, %v4004_v9 }
  0x2b   :  { %626 = vmatpush.bf16.msra.mxu0 %v4003_v48  ;;  %v5478_v16 = vld [vmem:[#allocation5 + $0xc8] sm:$0xf0]  ;;  %v4158_v17 = vld [vmem:[#allocation5 + $0x180] sm:$0xf]  ;;  %v5446_v20 = vld [vmem:[#allocation2 + $0x8] sm:$0xf0]  ;;  %v3967_v26 = vor.u32 %v5454_v12, %v3966_v11 }
  0x2c   :  { %645 = vmatpush.bf16.msra.mxu1 %v4099_v51  ;;  %681 = vmatpush.bf16.msra.mxu3 %v4031_v59  ;;  %v5502_v18 = vld [vmem:[#allocation5 + $0x188] sm:$0xf0]  ;;  %v4148_v23 = vld [vmem:[#allocation5 + $0x174] sm:$0xf0]  ;;  %v5445_v27 = vld [vmem:[#allocation2 + $0x4] sm:$0xf]  ;;  %v4063_v30 = vor.u32 %v5478_v16, %v4062_v13  ;;  %v6038_v39 = vor.u32 %v5446_v20, %v3942_v19 }
  0x2d   :  { %664 = vmatpush.bf16.msra.mxu2 %v4195_v52  ;;  %v5498_v22 = vld [vmem:[#allocation5 + $0x16c] sm:$0xf]  ;;  %v4244_v25 = vld [vmem:[#allocation5 + $0x234] sm:$0xf0]  ;;  %v5459_v28 = vld [vmem:[#allocation5 + $0x34] sm:$0xf]  ;;  %v4159_v31 = vor.u32 %v5502_v18, %v4158_v17 }
  0x2e   :  { %v5522_v24 = vld [vmem:[#allocation5 + $0x22c] sm:$0xf]  ;;  %v3992_v29 = vld [vmem:[#allocation5 + $0x3c] sm:$0xf0]  ;;  %v3950_v33 = vld [vmem:[#allocation2 + $0x8] sm:$0xf]  ;;  %v4151_v35 = vor.u32 %v5498_v22, %v4148_v23 }
  0x2f   :  { %627 = vmatpush.bf16.msra.mxu0 %v3991_v62  ;;  %v3944_v32 = vld [vmem:[#allocation2 + $0xc] sm:$0xf0]  ;;  %v5447_v34 = vld [vmem:[#allocation2 + $0x10] sm:$0xf0]  ;;  %v4247_v36 = vor.u32 %v5522_v24, %v4244_v25  ;;  %v5495_v37 = vld [vmem:[#allocation5 + $0x154] sm:$0xf]  ;;  %v3995_v40 = vor.u32 %v5459_v28, %v3992_v29 }
  0x30   :  { %646 = vmatpush.bf16.msra.mxu1 %v4087_v63  ;;  %682 = vmatpush.bf16.msra.mxu3 %v4019_v7  ;;  %v4136_v38 = vld [vmem:[#allocation5 + $0x15c] sm:$0xf0]  ;;  %v5519_v41 = vld [vmem:[#allocation5 + $0x214] sm:$0xf]  ;;  %v5456_v43 = vld [vmem:[#allocation5 + $0x1c] sm:$0xf]  ;;  %v6040_v44 = vor.u32 %v5445_v27, %v3944_v32  ;;  %v6042_v45 = vor.u32 %v5447_v34, %v3950_v33 }
  0x31   :  { %665 = vmatpush.bf16.msra.mxu2 %v4183_v0  ;;  %v4232_v42 = vld [vmem:[#allocation5 + $0x21c] sm:$0xf0]  ;;  %v3980_v46 = vld [vmem:[#allocation5 + $0x24] sm:$0xf0]  ;;  %v4058_v47 = vld [vmem:[#allocation5 + $0xb0] sm:$0xf]  ;;  %v4139_v50 = vor.u32 %v5495_v37, %v4136_v38 }
  0x32   :  { %v5476_v48 = vld [vmem:[#allocation5 + $0xb8] sm:$0xf0]  ;;  %v4235_v51 = vor.u32 %v5519_v41, %v4232_v42  ;;  %v4124_v53 = vld [vmem:[#allocation5 + $0x144] sm:$0xf0]  ;;  %v3983_v55 = vor.u32 %v5456_v43, %v3980_v46  ;;  %v4046_v57 = vld [vmem:[#allocation5 + $0x98] sm:$0xf] }
  0x33   :  { %628 = vmatpush.bf16.msra.mxu0 %v3979_v10  ;;  %v4059_v49 = vor.u32 %v5476_v48, %v4058_v47  ;;  %v5492_v52 = vld [vmem:[#allocation5 + $0x13c] sm:$0xf]  ;;  %v4220_v56 = vld [vmem:[#allocation5 + $0x204] sm:$0xf0]  ;;  %v5473_v58 = vld [vmem:[#allocation5 + $0xa0] sm:$0xf0] }
  0x34   :  { %647 = vmatpush.bf16.msra.mxu1 %v4075_v14  ;;  %683 = vmatpush.bf16.msra.mxu3 %v4007_v21  ;;  %v5516_v54 = vld [vmem:[#allocation5 + $0x1fc] sm:$0xf]  ;;  %v5453_v59 = vld [vmem:[#allocation5 + $0x4] sm:$0xf]  ;;  %v3968_v60 = vld [vmem:[#allocation5 + $0xc] sm:$0xf0]  ;;  %v4047_v63 = vor.u32 %v5473_v58, %v4046_v57  ;;  %v4127_v0 = vor.u32 %v5492_v52, %v4124_v53 }
  0x35   :  { %666 = vmatpush.bf16.msra.mxu2 %v4171_v15  ;;  %v4154_v61 = vld [vmem:[#allocation5 + $0x170] sm:$0xf]  ;;  %v5500_v62 = vld [vmem:[#allocation5 + $0x178] sm:$0xf0]  ;;  %v4223_v1 = vor.u32 %v5516_v54, %v4220_v56  ;;  %v5489_v2 = vld [vmem:[#allocation5 + $0x124] sm:$0xf]  ;;  %v3971_v5 = vor.u32 %v5453_v59, %v3968_v60 }
  0x36   :  { %v4034_v3 = vld [vmem:[#allocation5 + $0x80] sm:$0xf]  ;;  %v5470_v4 = vld [vmem:[#allocation5 + $0x88] sm:$0xf0]  ;;  %v4112_v6 = vld [vmem:[#allocation5 + $0x12c] sm:$0xf0]  ;;  %v4155_v9 = vor.u32 %v5500_v62, %v4154_v61 }
  0x37   :  { %629 = vmatpush.bf16.msra.mxu0 %v3967_v26  ;;  %v5513_v7 = vld [vmem:[#allocation5 + $0x1e4] sm:$0xf]  ;;  %v4208_v8 = vld [vmem:[#allocation5 + $0x1ec] sm:$0xf0]  ;;  %v4142_v10 = vld [vmem:[#allocation5 + $0x158] sm:$0xf]  ;;  %v4035_v12 = vor.u32 %v5470_v4, %v4034_v3  ;;  %v4115_v13 = vor.u32 %v5489_v2, %v4112_v6 }
  0x38   :  { %648 = vmatpush.bf16.msra.mxu1 %v4063_v30  ;;  %684 = vmatpush.bf16.msra.mxu3 %v3995_v40  ;;  %v5497_v11 = vld [vmem:[#allocation5 + $0x160] sm:$0xf0]  ;;  %v4211_v14 = vor.u32 %v5513_v7, %v4208_v8  ;;  %v3954_v15 = vld [vmem:[#allocation2 + $0x18] sm:$0xf]  ;;  %v5449_v16 = vld [vmem:[#allocation2 + $0x20] sm:$0xf0] }
  0x39   :  { %667 = vmatpush.bf16.msra.mxu2 %v4159_v31  ;;  %v5486_v17 = vld [vmem:[#allocation5 + $0x10c] sm:$0xf]  ;;  %v4022_v18 = vld [vmem:[#allocation5 + $0x68] sm:$0xf]  ;;  %v5467_v19 = vld [vmem:[#allocation5 + $0x70] sm:$0xf0]  ;;  %v4143_v26 = vor.u32 %v5497_v11, %v4142_v10 }
  0x3a   :  { %630 = vmatmul.bf16.vlgmr.msra.gmra.mxu0 %v6038_v39  ;;  %v4100_v20 = vld [vmem:[#allocation5 + $0x114] sm:$0xf0]  ;;  %v5510_v21 = vld [vmem:[#allocation5 + $0x1cc] sm:$0xf]  ;;  %v3962_v25 = vld [vmem:[#allocation2 + $0x20] sm:$0xf]  ;;  %v4023_v30 = vor.u32 %v5467_v19, %v4022_v18 }
  0x3b   :  { %698 = vmatpush.bf16.msrb.mxu0 %v4151_v35  ;;  %649 = vmatmul.bf16.vlgmr.msra.gmra.mxu1 %v6040_v44  ;;  %v4196_v22 = vld [vmem:[#allocation5 + $0x1d4] sm:$0xf0]  ;;  %v5448_v23 = vld [vmem:[#allocation2 + $0x1c] sm:$0xf]  ;;  %v5450_v27 = vld [vmem:[#allocation2 + $0x28] sm:$0xf0]  ;;  %v4103_v31 = vor.u32 %v5486_v17, %v4100_v20 }
  0x3c   :  { %717 = vmatpush.bf16.msrb.mxu1 %v4247_v36  ;;  %668 = vmatmul.bf16.vlgmr.msra.gmra.mxu2 %v6042_v45  ;;  %v3956_v24 = vld [vmem:[#allocation2 + $0x24] sm:$0xf0]  ;;  %v5483_v28 = vld [vmem:[#allocation5 + $0xf4] sm:$0xf]  ;;  %v4130_v29 = vld [vmem:[#allocation5 + $0x140] sm:$0xf]  ;;  %v4199_v32 = vor.u32 %v5510_v21, %v4196_v22  ;;  %v6047_v36 = vor.u32 %v5449_v16, %v3954_v15  ;;  %v6052_v42 = vor.u32 %v5450_v27, %v3962_v25 }
  0x3d   :  { %736 = vmatpush.bf16.msrb.mxu2 %v4059_v49  ;;  %685 = vmatpush.bf16.msra.mxu3 %v3983_v55  ;;  %v5494_v33 = vld [vmem:[#allocation5 + $0x148] sm:$0xf0]  ;;  %v4010_v34 = vld [vmem:[#allocation5 + $0x50] sm:$0xf]  ;;  %v5464_v35 = vld [vmem:[#allocation5 + $0x58] sm:$0xf0]  ;;  %v6050_v41 = vor.u32 %v5448_v23, %v3956_v24 }
  0x3e   :  { %v4088_v37 = vld [vmem:[#allocation5 + $0xfc] sm:$0xf0]  ;;  %v5507_v38 = vld [vmem:[#allocation5 + $0x1b4] sm:$0xf]  ;;  %v5480_v43 = vld [vmem:[#allocation5 + $0xdc] sm:$0xf]  ;;  %v4131_v46 = vor.u32 %v5494_v33, %v4130_v29  ;;  %v4011_v48 = vor.u32 %v5464_v35, %v4010_v34 }
  0x3f   :  { %699 = vmatpush.bf16.msrb.mxu0 %v4139_v50  ;;  %v4184_v40 = vld [vmem:[#allocation5 + $0x1bc] sm:$0xf0]  ;;  %v4118_v47 = vld [vmem:[#allocation5 + $0x128] sm:$0xf]  ;;  %v4091_v49 = vor.u32 %v5483_v28, %v4088_v37  ;;  %v3998_v52 = vld [vmem:[#allocation5 + $0x38] sm:$0xf] }
  0x40   :  { %718 = vmatpush.bf16.msrb.mxu1 %v4235_v51  ;;  %v4187_v50 = vor.u32 %v5507_v38, %v4184_v40  ;;  %v5491_v51 = vld [vmem:[#allocation5 + $0x130] sm:$0xf0]  ;;  %v5461_v53 = vld [vmem:[#allocation5 + $0x40] sm:$0xf0]  ;;  %v4076_v54 = vld [vmem:[#allocation5 + $0xe4] sm:$0xf0] }
  0x41   :  { %737 = vmatpush.bf16.msrb.mxu2 %v4047_v63  ;;  %686 = vmatpush.bf16.msra.mxu3 %v3971_v5  ;;  %v5504_v55 = vld [vmem:[#allocation5 + $0x19c] sm:$0xf]  ;;  %v4172_v56 = vld [vmem:[#allocation5 + $0x1a4] sm:$0xf0]  ;;  %v5477_v57 = vld [vmem:[#allocation5 + $0xc4] sm:$0xf]  ;;  %v4119_v58 = vor.u32 %v5491_v51, %v4118_v47  ;;  %v3999_v60 = vor.u32 %v5461_v53, %v3998_v52  ;;  %v4079_v61 = vor.u32 %v5480_v43, %v4076_v54 }
  0x42   :  { %v4106_v59 = vld [vmem:[#allocation5 + $0x110] sm:$0xf]  ;;  %v4175_v62 = vor.u32 %v5504_v55, %v4172_v56  ;;  %v5488_v63 = vld [vmem:[#allocation5 + $0x118] sm:$0xf0]  ;;  %v5501_v3 = vld [vmem:[#allocation5 + $0x184] sm:$0xf] }
  0x43   :  { %700 = vmatpush.bf16.msrb.mxu0 %v4127_v0  ;;  %v3986_v0 = vld [vmem:[#allocation5 + $0x20] sm:$0xf]  ;;  %v4064_v2 = vld [vmem:[#allocation5 + $0xcc] sm:$0xf0]  ;;  %v5524_v6 = vld [vmem:[#allocation5 + $0x238] sm:$0xf0]  ;;  %v4107_v7 = vor.u32 %v5488_v63, %v4106_v59 }
  0x44   :  { %719 = vmatpush.bf16.msrb.mxu1 %v4223_v1  ;;  %687 = vmatmul.bf16.vlgmr.msra.gmra.mxu3 %v6038_v39  ;;  %v5458_v1 = vld [vmem:[#allocation5 + $0x28] sm:$0xf0]  ;;  %v4160_v4 = vld [vmem:[#allocation5 + $0x18c] sm:$0xf0]  ;;  %v4094_v8 = vld [vmem:[#allocation5 + $0xf8] sm:$0xf]  ;;  %v4067_v10 = vor.u32 %v5477_v57, %v4064_v2 }
  0x45   :  { %755 = vmatpush.bf16.msrb.mxu3 %v4155_v9  ;;  %738 = vmatpush.bf16.msrb.mxu2 %v4035_v12  ;;  %v4250_v5 = vld [vmem:[#allocation5 + $0x230] sm:$0xf]  ;;  %v3987_v9 = vor.u32 %v5458_v1, %v3986_v0  ;;  %v4163_v11 = vor.u32 %v5501_v3, %v4160_v4  ;;  %v5485_v12 = vld [vmem:[#allocation5 + $0x100] sm:$0xf0]  ;;  %v4238_v17 = vld [vmem:[#allocation5 + $0x218] sm:$0xf] }
  0x46   :  { %v4251_v15 = vor.u32 %v5524_v6, %v4250_v5  ;;  %v4095_v16 = vor.u32 %v5485_v12, %v4094_v8  ;;  %v5521_v18 = vld [vmem:[#allocation5 + $0x220] sm:$0xf0]  ;;  %v4082_v20 = vld [vmem:[#allocation5 + $0xe0] sm:$0xf]  ;;  %v5482_v21 = vld [vmem:[#allocation5 + $0xe8] sm:$0xf0] }
  0x47   :  { %701 = vmatpush.bf16.msrb.mxu0 %v4115_v13  ;;  %v3974_v13 = vld [vmem:[#allocation5 + $0x8] sm:$0xf]  ;;  %v4239_v22 = vor.u32 %v5521_v18, %v4238_v17  ;;  %v4083_v23 = vor.u32 %v5482_v21, %v4082_v20  ;;  %v4226_v24 = vld [vmem:[#allocation5 + $0x200] sm:$0xf]  ;;  %v5518_v25 = vld [vmem:[#allocation5 + $0x208] sm:$0xf0] }
  0x48   :  { %720 = vmatpush.bf16.msrb.mxu1 %v4211_v14  ;;  %v5455_v14 = vld [vmem:[#allocation5 + $0x10] sm:$0xf0]  ;;  %v4227_v28 = vor.u32 %v5518_v25, %v4226_v24  ;;  %v4202_v33 = vld [vmem:[#allocation5 + $0x1d0] sm:$0xf]  ;;  %v5512_v34 = vld [vmem:[#allocation5 + $0x1d8] sm:$0xf0] }
  0x49   :  { %756 = vmatpush.bf16.msrb.mxu3 %v4143_v26  ;;  %739 = vmatpush.bf16.msrb.mxu2 %v4023_v30  ;;  %v3975_v19 = vor.u32 %v5455_v14, %v3974_v13  ;;  %v4070_v26 = vld [vmem:[#allocation5 + $0xc8] sm:$0xf]  ;;  %v5479_v27 = vld [vmem:[#allocation5 + $0xd0] sm:$0xf0]  ;;  %v4203_v35 = vor.u32 %v5512_v34, %v4202_v33  ;;  %v4190_v37 = vld [vmem:[#allocation5 + $0x1b8] sm:$0xf] }
  0x4a   :  { %635 = vmatmul.bf16.gmra.mxu0 %v6047_v36  ;;  %v4071_v29 = vor.u32 %v5479_v27, %v4070_v26  ;;  %v4214_v30 = vld [vmem:[#allocation5 + $0x1e8] sm:$0xf]  ;;  %v5509_v38 = vld [vmem:[#allocation5 + $0x1c0] sm:$0xf0]  ;;  %v4178_v43 = vld [vmem:[#allocation5 + $0x1a0] sm:$0xf] }
  0x4b   :  { %702 = vmatpush.bf16.msrb.mxu0 %v4103_v31  ;;  %654 = vmatmul.bf16.gmra.mxu1 %v6050_v41  ;;  %v5515_v31 = vld [vmem:[#allocation5 + $0x1f0] sm:$0xf0]  ;;  %v4191_v40 = vor.u32 %v5509_v38, %v4190_v37  ;;  %v4166_v47 = vld [vmem:[#allocation5 + $0x188] sm:$0xf]  ;;  %v6068_v8 = vld [vmem:[#allocation8] sm:$0xff]  ;;  %vm821_vm0 = vcmask 261120  }
  0x4c   :  { %721 = vmatpush.bf16.msrb.mxu1 %v4199_v32  ;;  %673 = vmatmul.bf16.gmra.mxu2 %v6052_v42  ;;  %v4215_v32 = vor.u32 %v5515_v31, %v4214_v30  ;;  %v6072_v17 = vld [vmem:[#allocation8 + $0x8] sm:$0xff]  ;;  %s5992_s2 = smov [#allocation11]   ;;  %s3928_s23 = sshll.u32 %s6216_s5, 4  ;;  %s3929_s23 = int_to_ptr.hbm [resolvable:$true] %s3928_s23 }
  0x4d   :  { %757 = vmatpush.bf16.msrb.mxu3 %v4131_v46  ;;  %740 = vmatpush.bf16.msrb.mxu2 %v4011_v48  ;;  %v5506_v46 = vld [vmem:[#allocation5 + $0x1a8] sm:$0xf0]  ;;  %v5503_v48 = vld [vmem:[#allocation5 + $0x190] sm:$0xf0]  ;;  %s3926_s4 = sshll.u32 %s5992_s2, 4  ;;  %s3927_s4 = int_to_ptr.vmem [resolvable:$true] %s3926_s4 }
  0x4f   :  { %703 = vmatpush.bf16.msrb.mxu0 %v4091_v49  ;;  %v4167_v49 = vor.u32 %v5503_v48, %v4166_v47  ;;  %v5544_v48 = vld [vmem:[#allocation5 + $0x2d8] sm:$0xf0] }
  0x50   :  { %722 = vmatpush.bf16.msrb.mxu1 %v4187_v50 }
  0x51   :  { %758 = vmatpush.bf16.msrb.mxu3 %v4119_v58  ;;  %741 = vmatpush.bf16.msrb.mxu2 %v3999_v60 }
  0x53   :  { %704 = vmatpush.bf16.msrb.mxu0 %v4079_v61 }
  0x54   :  { %723 = vmatpush.bf16.msrb.mxu1 %v4175_v62  ;;  %692 = vmatmul.bf16.gmra.mxu3 %v6047_v36 }
  0x55   :  { %759 = vmatpush.bf16.msrb.mxu3 %v4107_v7  ;;  %742 = vmatpush.bf16.msrb.mxu2 %v3987_v9 }
  0x57   :  { %705 = vmatpush.bf16.msrb.mxu0 %v4067_v10 }
  0x58   :  { %724 = vmatpush.bf16.msrb.mxu1 %v4163_v11 }
  0x59   :  { %760 = vmatpush.bf16.msrb.mxu3 %v4095_v16  ;;  %743 = vmatpush.bf16.msrb.mxu2 %v3975_v19 }
  0x5a   :  { %706 = vmatmul.bf16.vlgmr.msrb.gmra.mxu0 %v6040_v44 }
  0x5b   :  { %774 = vmatpush.bf16.msra.mxu0 %v4251_v15  ;;  %725 = vmatmul.bf16.vlgmr.msrb.gmra.mxu1 %v6042_v45 }
  0x5c   :  { %744 = vmatmul.bf16.vlgmr.msrb.gmra.mxu2 %v6038_v39  ;;  %v4179_v39 = vor.u32 %v5506_v46, %v4178_v43  ;;  %v5547_v43 = vld [vmem:[#allocation5 + $0x2f0] sm:$0xf0]  ;;  %v4340_v46 = vld [vmem:[#allocation5 + $0x2d0] sm:$0xf] }
  0x5d   :  { %761 = vmatpush.bf16.msrb.mxu3 %v4083_v23 }
  0x5f   :  { %775 = vmatpush.bf16.msra.mxu0 %v4239_v22 }
  0x61   :  { %762 = vmatpush.bf16.msrb.mxu3 %v4071_v29 }
  0x63   :  { %776 = vmatpush.bf16.msra.mxu0 %v4227_v28 }
  0x64   :  { %763 = vmatmul.bf16.vlgmr.msrb.gmra.mxu3 %v6040_v44 }
  0x67   :  { %777 = vmatpush.bf16.msra.mxu0 %v4215_v32 }
  0x6a   :  { %711 = vmatmul.bf16.gmra.mxu0 %v6050_v41 }
  0x6b   :  { %778 = vmatpush.bf16.msra.mxu0 %v4203_v35  ;;  %730 = vmatmul.bf16.gmra.mxu1 %v6052_v42 }
  0x6c   :  { %749 = vmatmul.bf16.gmra.mxu2 %v6047_v36 }
  0x6f   :  { %779 = vmatpush.bf16.msra.mxu0 %v4191_v40  ;;  %v4352_v40 = vld [vmem:[#allocation5 + $0x2e8] sm:$0xf] }
  0x70   :  { %v4353_v47 = vor.u32 %v5547_v43, %v4352_v40  ;;  %v4424_v40 = vld [vmem:[#allocation5 + $0x378] sm:$0xf]  ;;  %v5565_v43 = vld [vmem:[#allocation5 + $0x380] sm:$0xf0] }
  0x73   :  { %780 = vmatpush.bf16.msra.mxu0 %v4179_v39 }
  0x74   :  { %768 = vmatmul.bf16.gmra.mxu3 %v6050_v41 }
  0x77   :  { %781 = vmatpush.bf16.msra.mxu0 %v4167_v49 }
  0x7a   :  { %782 = vmatmul.bf16.vlgmr.msra.gmra.mxu0 %v6042_v45 }
  0x7b   :  { %1384 = vmatpush.bf16.msrb.mxu0 %v4353_v47  ;;  %v4426_v47 = vld [vmem:[#allocation5 + $0x384] sm:$0xf0] }
  0x8a   :  { %787 = vmatmul.bf16.gmra.mxu0 %v6052_v42 }
  0xb7   :  { %v631_v44 = vpop.f32.mrf.mxu0 }
  0xb8   :  { %v650_v50 = vpop.f32.mrf.mxu1 }
  0xb9   :  { %v651_v2 = vadd.f32 %v650_v50, %v631_v44  ;;  %v4341_v44 = vor.u32 %v5544_v48, %v4340_v46  ;;  %v5564_v46 = vld [vmem:[#allocation5 + $0x37c] sm:$0xf] }
  0xba   :  { %v4429_v48 = vor.u32 %v5564_v46, %v4426_v47  ;;  %v5566_v46 = vld [vmem:[#allocation5 + $0x388] sm:$0xf0] }
  0xbb   :  { %1385 = vmatpush.bf16.msrb.mxu0 %v4341_v44  ;;  %v4294_v44 = vld [vmem:[#allocation5 + $0x27c] sm:$0xf0]  ;;  %v5594_v47 = vld [vmem:[#allocation5 + $0x46c] sm:$0xf] }
  0xbf   :  { %v669_v51 = vpop.f32.mrf.mxu2  ;;  %v633_v52 = vpop.f32.mrf.mxu0 }
  0xc0   :  { %v652_v53 = vpop.f32.mrf.mxu1  ;;  %v670_v6 = vadd.f32 %v669_v51, %v651_v2  ;;  %v4328_v51 = vld [vmem:[#allocation5 + $0x2b8] sm:$0xf]  ;;  %v5546_v2 = vld [vmem:[#allocation5 + $0x2ec] sm:$0xf] }
  0xc1   :  { %v653_v63 = vadd.f32 %v652_v53, %v633_v52  ;;  %v5541_v52 = vld [vmem:[#allocation5 + $0x2c0] sm:$0xf0] }
  0xc7   :  { %v671_v54 = vpop.f32.mrf.mxu2  ;;  %v636_v55 = vpop.f32.mrf.mxu0 }
  0xc8   :  { %v655_v56 = vpop.f32.mrf.mxu1  ;;  %v688_v57 = vpop.f32.mrf.mxu3  ;;  %v672_v3 = vadd.f32 %v671_v54, %v653_v63  ;;  %v4304_v63 = vld [vmem:[#allocation5 + $0x288] sm:$0xf] }
  0xc9   :  { %v656_v61 = vadd.f32 %v655_v56, %v636_v55 }
  0xca   :  { %v793_v7 = vpack.c.bf16 %v672_v3, %v670_v6  ;;  %v4280_v6 = vld [vmem:[#allocation5 + $0x258] sm:$0xf] }
  0xcf   :  { %v674_v58 = vpop.f32.mrf.mxu2  ;;  %v638_v36 = vpop.f32.mrf.mxu0 }
  0xd0   :  { %v657_v59 = vpop.f32.mrf.mxu1  ;;  %v690_v60 = vpop.f32.mrf.mxu3  ;;  %v675_v45 = vadd.f32 %v674_v58, %v656_v61 }
  0xd1   :  { %v658_v62 = vadd.f32 %v657_v59, %v638_v36  ;;  %v4329_v36 = vor.u32 %v5541_v52, %v4328_v51  ;;  %v4316_v59 = vld [vmem:[#allocation5 + $0x2a0] sm:$0xf]  ;;  %v5562_v52 = vld [vmem:[#allocation5 + $0x368] sm:$0xf0] }
  0xd2   :  { %v4412_v51 = vld [vmem:[#allocation5 + $0x360] sm:$0xf] }
  0xd3   :  { %1386 = vmatpush.bf16.msrb.mxu0 %v4329_v36 }
  0xd7   :  { %v676_v41 = vpop.f32.mrf.mxu2  ;;  %v707_v42 = vpop.f32.mrf.mxu0 }
  0xd8   :  { %v677_v0 = vadd.f32 %v676_v41, %v658_v62  ;;  %v726_v1 = vpop.f32.mrf.mxu1  ;;  %v693_v5 = vpop.f32.mrf.mxu3  ;;  %v708_v22 = vadd.f32 %v707_v42, %v688_v57  ;;  %v4292_v42 = vld [vmem:[#allocation5 + $0x270] sm:$0xf] }
  0xda   :  { %v796_v4 = vpack.c.bf16 %v677_v0, %v675_v45  ;;  %v727_v27 = vadd.f32 %v726_v1, %v708_v22  ;;  %v5535_v45 = vld [vmem:[#allocation5 + $0x290] sm:$0xf0]  ;;  %v5532_v1 = vld [vmem:[#allocation5 + $0x278] sm:$0xf0] }
  0xdb   :  { %v4305_v0 = vor.u32 %v5535_v45, %v4304_v63  ;;  %v4293_v3 = vor.u32 %v5532_v1, %v4292_v42  ;;  %v4402_v63 = vld [vmem:[#allocation5 + $0x354] sm:$0xf0]  ;;  %v4270_v42 = vld [vmem:[#allocation5 + $0x24c] sm:$0xf0]  ;;  %v799_v1 = vld [vmem:[#allocation7] sm:$0xff] }
  0xdc   :  { %834 = vmatpush.bf16.msra.mxu1 %v796_v4  ;;  %v4354_v4 = vld [vmem:[#allocation5 + $0x2f4] sm:$0xf0] }
  0xdf   :  { %v709_v9 = vpop.f32.mrf.mxu0  ;;  %v745_v14 = vpop.f32.mrf.mxu2 }
  0xe0   :  { %835 = vmatpush.bf16.msra.mxu1 %v793_v7  ;;  %v728_v10 = vpop.f32.mrf.mxu1  ;;  %v695_v11 = vpop.f32.mrf.mxu3  ;;  %v710_v19 = vadd.f32 %v709_v9, %v690_v60  ;;  %v5538_v60 = vld [vmem:[#allocation5 + $0x2a8] sm:$0xf0]  ;;  %v5529_v7 = vld [vmem:[#allocation5 + $0x260] sm:$0xf0] }
  0xe1   :  { %v4317_v41 = vor.u32 %v5538_v60, %v4316_v59  ;;  %v4281_v9 = vor.u32 %v5529_v7, %v4280_v6  ;;  %v4400_v59 = vld [vmem:[#allocation5 + $0x348] sm:$0xf]  ;;  %v5559_v60 = vld [vmem:[#allocation5 + $0x350] sm:$0xf0]  ;;  %v4390_v7 = vld [vmem:[#allocation5 + $0x33c] sm:$0xf0] }
  0xe2   :  { %v729_v25 = vadd.f32 %v728_v10, %v710_v19  ;;  %v5543_v10 = vld [vmem:[#allocation5 + $0x2d4] sm:$0xf] }
  0xe3   :  { %4260 = vmatmul.msk.bf16.vlgmr.msra.gmra.mxu1 %vm821_vm0, %v6068_v8  ;;  %1387 = vmatpush.bf16.msrb.mxu0 %v4317_v41  ;;  %v5558_v41 = vld [vmem:[#allocation5 + $0x34c] sm:$0xf]  ;;  %v5555_v6 = vld [vmem:[#allocation5 + $0x334] sm:$0xf] }
  0xe4   :  { %v794_v31 = vpack.c.bf16 %v729_v25, %v727_v27  ;;  %v4318_v27 = vld [vmem:[#allocation5 + $0x2ac] sm:$0xf0]  ;;  %v4405_v45 = vor.u32 %v5558_v41, %v4402_v63  ;;  %v4540_v41 = vld [vmem:[#allocation5 + $0x458] sm:$0xf]  ;;  %v5593_v63 = vld [vmem:[#allocation5 + $0x460] sm:$0xf0] }
  0xe7   :  { %v712_v12 = vpop.f32.mrf.mxu0  ;;  %v747_v28 = vpop.f32.mrf.mxu2  ;;  %1388 = vmatpush.bf16.msrb.mxu0 %v4305_v0  ;;  %v5525_v0 = vld [vmem:[#allocation5 + $0x244] sm:$0xf] }
  0xe8   :  { %v731_v13 = vpop.f32.mrf.mxu1  ;;  %v764_v15 = vpop.f32.mrf.mxu3  ;;  %v713_v16 = vadd.f32 %v712_v12, %v693_v5  ;;  %v4357_v5 = vor.u32 %v5546_v2, %v4354_v4  ;;  %v4273_v2 = vor.u32 %v5525_v0, %v4270_v42  ;;  %v5556_v4 = vld [vmem:[#allocation5 + $0x338] sm:$0xf0]  ;;  %v4541_v0 = vor.u32 %v5593_v63, %v4540_v41  ;;  %v5589_v42 = vld [vmem:[#allocation5 + $0x440] sm:$0xf0] }
  0xe9   :  { %v765_v53 = vadd.f32 %v764_v15, %v745_v14  ;;  %v5526_v14 = vld [vmem:[#allocation5 + $0x248] sm:$0xf0]  ;;  %v803_v63 = vld [vmem:[#allocation7 + $0x20] sm:$0xff] }
  0xea   :  { %v732_v23 = vadd.f32 %v731_v13, %v713_v16  ;;  %v4268_v13 = vld [vmem:[#allocation5 + $0x240] sm:$0xf]  ;;  %v5540_v16 = vld [vmem:[#allocation5 + $0x2bc] sm:$0xf] }
  0xeb   :  { %1389 = vmatpush.bf16.msrb.mxu0 %v4293_v3  ;;  %v4269_v15 = vor.u32 %v5526_v14, %v4268_v13  ;;  %v4388_v3 = vld [vmem:[#allocation5 + $0x330] sm:$0xf]  ;;  %v802_v13 = vld [vmem:[#allocation7 + $0x18] sm:$0xff] }
  0xef   :  { %v714_v18 = vpop.f32.mrf.mxu0  ;;  %v750_v33 = vpop.f32.mrf.mxu2  ;;  %1390 = vmatpush.bf16.msrb.mxu0 %v4281_v9  ;;  %v4456_v9 = vld [vmem:[#allocation5 + $0x3b0] sm:$0xf] }
  0xf0   :  { %v715_v20 = vadd.f32 %v714_v18, %v695_v11  ;;  %v733_v21 = vpop.f32.mrf.mxu1  ;;  %v766_v29 = vpop.f32.mrf.mxu3  ;;  %v4342_v11 = vld [vmem:[#allocation5 + $0x2dc] sm:$0xf0]  ;;  %v4330_v18 = vld [vmem:[#allocation5 + $0x2c4] sm:$0xf0] }
  0xf1   :  { %v767_v54 = vadd.f32 %v766_v29, %v747_v28  ;;  %v4345_v12 = vor.u32 %v5543_v10, %v4342_v11  ;;  %v4333_v19 = vor.u32 %v5540_v16, %v4330_v18  ;;  %v4436_v29 = vld [vmem:[#allocation5 + $0x390] sm:$0xf]  ;;  %v4393_v11 = vor.u32 %v5555_v6, %v4390_v7  ;;  %v5553_v16 = vld [vmem:[#allocation5 + $0x320] sm:$0xf0]  ;;  %v5552_v18 = vld [vmem:[#allocation5 + $0x31c] sm:$0xf] }
  0xf2   :  { %v734_v24 = vadd.f32 %v733_v21, %v715_v20  ;;  %v4448_v20 = vld [vmem:[#allocation5 + $0x3a8] sm:$0xf]  ;;  %v5571_v21 = vld [vmem:[#allocation5 + $0x3b0] sm:$0xf0]  ;;  %v5588_v6 = vld [vmem:[#allocation5 + $0x43c] sm:$0xf] }
  0xf3   :  { %4261 = vmatmul.msk.bf16.gmra.mxu1 %vm821_vm0, %v6072_v17  ;;  %1391 = vmatpush.bf16.msrb.mxu0 %v4269_v15  ;;  %v4449_v22 = vor.u32 %v5571_v21, %v4448_v20  ;;  %v4376_v15 = vld [vmem:[#allocation5 + $0x318] sm:$0xf]  ;;  %v4378_v21 = vld [vmem:[#allocation5 + $0x324] sm:$0xf0] }
  0xf4   :  { %v797_v26 = vpack.c.bf16 %v734_v24, %v732_v23  ;;  %v5570_v23 = vld [vmem:[#allocation5 + $0x3ac] sm:$0xf]  ;;  %v4450_v24 = vld [vmem:[#allocation5 + $0x3b4] sm:$0xf0]  ;;  %v4377_v20 = vor.u32 %v5553_v16, %v4376_v15  ;;  %v4522_v7 = vld [vmem:[#allocation5 + $0x444] sm:$0xf0] }
  0xf5   :  { %v4453_v25 = vor.u32 %v5570_v23, %v4450_v24  ;;  %1403 = vmatpush.bf16.msrb.mxu1 %v4449_v22  ;;  %v4381_v24 = vor.u32 %v5552_v18, %v4378_v21  ;;  %v4508_v16 = vld [vmem:[#allocation5 + $0x420] sm:$0xf]  ;;  %v5586_v18 = vld [vmem:[#allocation5 + $0x428] sm:$0xf0]  ;;  %v5557_v21 = vld [vmem:[#allocation5 + $0x340] sm:$0xf0] }
  0xf6   :  { %853 = vmatpush.bf16.msra.mxu2 %v797_v26  ;;  %v5537_v26 = vld [vmem:[#allocation5 + $0x2a4] sm:$0xf] }
  0xf7   :  { %v783_v30 = vpop.f32.mrf.mxu0  ;;  %v752_v37 = vpop.f32.mrf.mxu2  ;;  %v4321_v28 = vor.u32 %v5537_v26, %v4318_v27  ;;  %1460 = vmatpush.bf16.msra.mxu0 %v4453_v25  ;;  %v4444_v25 = vld [vmem:[#allocation5 + $0x398] sm:$0xf]  ;;  %v5569_v26 = vld [vmem:[#allocation5 + $0x3a0] sm:$0xf0] }
  0xf8   :  { %v769_v34 = vpop.f32.mrf.mxu3  ;;  %v784_v61 = vadd.f32 %v783_v30, %v765_v53  ;;  %v5568_v30 = vld [vmem:[#allocation5 + $0x398] sm:$0xf0]  ;;  %v5561_v53 = vld [vmem:[#allocation5 + $0x364] sm:$0xf]  ;;  %v4445_v27 = vor.u32 %v5569_v26, %v4444_v25  ;;  %v4510_v25 = vld [vmem:[#allocation5 + $0x42c] sm:$0xf0] }
  0xf9   :  { %v770_v39 = vadd.f32 %v769_v34, %v750_v33  ;;  %v4438_v33 = vld [vmem:[#allocation5 + $0x39c] sm:$0xf0]  ;;  %v5534_v34 = vld [vmem:[#allocation5 + $0x28c] sm:$0xf] }
  0xfa   :  { %854 = vmatpush.bf16.msra.mxu2 %v794_v31  ;;  %v5567_v31 = vld [vmem:[#allocation5 + $0x394] sm:$0xf] }
  0xfd   :  { %4262 = vmatmul.msk.bf16.vlgmr.msra.gmra.mxu2 %vm821_vm0, %v6068_v8 }
  0xff   :  { %v785_v32 = vpop.f32.mrf.mxu0 }
 0x100   :  { %v771_v38 = vpop.f32.mrf.mxu3  ;;  %v786_v57 = vadd.f32 %v785_v32, %v767_v54  ;;  %v4437_v32 = vor.u32 %v5568_v30, %v4436_v29  ;;  %v4413_v54 = vor.u32 %v5562_v52, %v4412_v51  ;;  %v4364_v29 = vld [vmem:[#allocation5 + $0x300] sm:$0xf]  ;;  %v5550_v30 = vld [vmem:[#allocation5 + $0x308] sm:$0xf0]  ;;  %v5596_v52 = vld [vmem:[#allocation5 + $0x478] sm:$0xf0] }
 0x101   :  { %v772_v49 = vadd.f32 %v771_v38, %v752_v37  ;;  %v4441_v37 = vor.u32 %v5567_v31, %v4438_v33  ;;  %v4365_v31 = vor.u32 %v5550_v30, %v4364_v29  ;;  %v4366_v33 = vld [vmem:[#allocation5 + $0x30c] sm:$0xf0] }
 0x102   :  { %v795_v62 = vpack.c.bf16 %v786_v57, %v784_v61  ;;  %1404 = vmatpush.bf16.msrb.mxu1 %v4437_v32  ;;  %v4282_v57 = vld [vmem:[#allocation5 + $0x264] sm:$0xf0]  ;;  %v5549_v32 = vld [vmem:[#allocation5 + $0x304] sm:$0xf] }
 0x103   :  { %1461 = vmatpush.bf16.msra.mxu0 %v4441_v37  ;;  %v4544_v37 = vld [vmem:[#allocation5 + $0x468] sm:$0xf] }
 0x107   :  { %v788_v35 = vpop.f32.mrf.mxu0  ;;  %1462 = vmatpush.bf16.msra.mxu0 %v4429_v48  ;;  %v4546_v48 = vld [vmem:[#allocation5 + $0x474] sm:$0xf0] }
 0x108   :  { %v789_v55 = vadd.f32 %v788_v35, %v770_v39  ;;  %v4306_v35 = vld [vmem:[#allocation5 + $0x294] sm:$0xf0]  ;;  %v4425_v39 = vor.u32 %v5565_v43, %v4424_v40  ;;  %v4432_v40 = vld [vmem:[#allocation5 + $0x380] sm:$0xf]  ;;  %v4549_v51 = vor.u32 %v5594_v47, %v4546_v48  ;;  %v5584_v47 = vld [vmem:[#allocation5 + $0x418] sm:$0xf0] }
 0x109   :  { %v4309_v38 = vor.u32 %v5534_v34, %v4306_v35  ;;  %v4369_v35 = vor.u32 %v5549_v32, %v4366_v33  ;;  %v5583_v32 = vld [vmem:[#allocation5 + $0x410] sm:$0xf0]  ;;  %v4384_v33 = vld [vmem:[#allocation5 + $0x320] sm:$0xf] }
 0x10a   :  { %1405 = vmatpush.bf16.msrb.mxu1 %v4425_v39  ;;  %v4433_v39 = vor.u32 %v5566_v46, %v4432_v40  ;;  %v5582_v40 = vld [vmem:[#allocation5 + $0x40c] sm:$0xf]  ;;  %v4504_v46 = vld [vmem:[#allocation5 + $0x410] sm:$0xf] }
 0x10d   :  { %4263 = vmatmul.msk.bf16.gmra.mxu2 %vm821_vm0, %v6072_v17 }
 0x10e   :  { %1406 = vmatpush.bf16.msrb.mxu1 %v4413_v54  ;;  %v4532_v54 = vld [vmem:[#allocation5 + $0x450] sm:$0xf] }
 0x10f   :  { %v790_v50 = vpop.f32.mrf.mxu0 }
 0x110   :  { %v791_v56 = vadd.f32 %v790_v50, %v772_v49  ;;  %v5531_v49 = vld [vmem:[#allocation5 + $0x274] sm:$0xf] }
 0x111   :  { %v4297_v50 = vor.u32 %v5531_v49, %v4294_v44  ;;  %v4552_v49 = vld [vmem:[#allocation5 + $0x470] sm:$0xf] }
 0x112   :  { %v798_v58 = vpack.c.bf16 %v791_v56, %v789_v55  ;;  %v4414_v55 = vld [vmem:[#allocation5 + $0x36c] sm:$0xf0]  ;;  %v5528_v56 = vld [vmem:[#allocation5 + $0x25c] sm:$0xf] }
 0x113   :  { %v4285_v36 = vor.u32 %v5528_v56, %v4282_v57  ;;  %v805_v44 = vld [vmem:[#allocation7 + $0x30] sm:$0xff]  ;;  %v4420_v56 = vld [vmem:[#allocation5 + $0x368] sm:$0xf] }
 0x114   :  { %872 = vmatpush.bf16.msra.mxu3 %v798_v58  ;;  %v4417_v58 = vor.u32 %v5561_v53, %v4414_v55  ;;  %v4553_v53 = vor.u32 %v5596_v52, %v4552_v49  ;;  %v5592_v55 = vld [vmem:[#allocation5 + $0x458] sm:$0xf0]  ;;  %v4505_v49 = vor.u32 %v5584_v47, %v4504_v46 }
 0x115   :  { %v4533_v57 = vor.u32 %v5592_v55, %v4532_v54  ;;  %v5579_v54 = vld [vmem:[#allocation5 + $0x3f4] sm:$0xf]  ;;  %v4486_v55 = vld [vmem:[#allocation5 + $0x3fc] sm:$0xf0] }
 0x116   :  { %1463 = vmatpush.bf16.msra.mxu0 %v4417_v58  ;;  %v5563_v58 = vld [vmem:[#allocation5 + $0x370] sm:$0xf0] }
 0x118   :  { %873 = vmatpush.bf16.msra.mxu3 %v795_v62  ;;  %v4401_v62 = vor.u32 %v5559_v60, %v4400_v59  ;;  %v5591_v59 = vld [vmem:[#allocation5 + $0x454] sm:$0xf]  ;;  %v4534_v60 = vld [vmem:[#allocation5 + $0x45c] sm:$0xf0] }
 0x11a   :  { %1407 = vmatpush.bf16.msrb.mxu1 %v4401_v62  ;;  %1464 = vmatpush.bf16.msra.mxu0 %v4405_v45  ;;  %v4537_v62 = vor.u32 %v5591_v59, %v4534_v60  ;;  %v4520_v45 = vld [vmem:[#allocation5 + $0x438] sm:$0xf]  ;;  %v5581_v59 = vld [vmem:[#allocation5 + $0x400] sm:$0xf0] }
 0x11b   :  { %4264 = vmatmul.msk.bf16.vlgmr.msra.gmra.mxu3 %vm821_vm0, %v6068_v8 }
 0x11c   :  { %1441 = vmatpush.bf16.msrb.mxu3 %v4357_v5  ;;  %v4389_v5 = vor.u32 %v5556_v4, %v4388_v3  ;;  %v808_v3 = vld [vmem:[#allocation7 + $0x48] sm:$0xff]  ;;  %v4521_v4 = vor.u32 %v5589_v42, %v4520_v45 }
 0x11d   :  { %v4474_v42 = vld [vmem:[#allocation5 + $0x3e4] sm:$0xf0] }
 0x11e   :  { %1408 = vmatpush.bf16.msrb.mxu1 %v4389_v5  ;;  %1465 = vmatpush.bf16.msra.mxu0 %v4393_v11 }
 0x120   :  { %1442 = vmatpush.bf16.msrb.mxu3 %v4345_v12  ;;  %v5572_v12 = vld [vmem:[#allocation5 + $0x3b8] sm:$0xf0] }
 0x121   :  { %v4457_v14 = vor.u32 %v5572_v12, %v4456_v9  ;;  %v4528_v9 = vld [vmem:[#allocation5 + $0x440] sm:$0xf]  ;;  %v4525_v12 = vor.u32 %v5588_v6, %v4522_v7  ;;  %v5574_v7 = vld [vmem:[#allocation5 + $0x3c8] sm:$0xf0] }
 0x122   :  { %1409 = vmatpush.bf16.msrb.mxu1 %v4377_v20  ;;  %1466 = vmatpush.bf16.msra.mxu0 %v4381_v24  ;;  %v4509_v20 = vor.u32 %v5586_v18, %v4508_v16  ;;  %v5585_v24 = vld [vmem:[#allocation5 + $0x424] sm:$0xf]  ;;  %v4460_v6 = vld [vmem:[#allocation5 + $0x3c0] sm:$0xf]  ;;  %v5575_v18 = vld [vmem:[#allocation5 + $0x3d0] sm:$0xf0] }
 0x123   :  { %v4513_v26 = vor.u32 %v5585_v24, %v4510_v25  ;;  %v4348_v25 = vld [vmem:[#allocation5 + $0x2d8] sm:$0xf] }
 0x124   :  { %1443 = vmatpush.bf16.msrb.mxu3 %v4333_v19 }
 0x126   :  { %1410 = vmatpush.bf16.msrb.mxu1 %v4365_v31  ;;  %1467 = vmatpush.bf16.msra.mxu0 %v4369_v35  ;;  %v4496_v31 = vld [vmem:[#allocation5 + $0x408] sm:$0xf] }
 0x127   :  { %v4497_v35 = vor.u32 %v5583_v32, %v4496_v31  ;;  %v5542_v31 = vld [vmem:[#allocation5 + $0x2c8] sm:$0xf0] }
 0x128   :  { %1444 = vmatpush.bf16.msrb.mxu3 %v4321_v28 }
 0x12a   :  { %1479 = vmatpush.bf16.msra.mxu1 %v4549_v51  ;;  %v4372_v51 = vld [vmem:[#allocation5 + $0x308] sm:$0xf] }
 0x12b   :  { %4265 = vmatmul.msk.bf16.gmra.mxu3 %vm821_vm0, %v6072_v17 }
 0x12c   :  { %1445 = vmatpush.bf16.msrb.mxu3 %v4309_v38  ;;  %v5595_v38 = vld [vmem:[#allocation5 + $0x470] sm:$0xf0] }
 0x12d   :  { %v4545_v43 = vor.u32 %v5595_v38, %v4544_v37  ;;  %v5554_v37 = vld [vmem:[#allocation5 + $0x328] sm:$0xf0] }
 0x12e   :  { %1480 = vmatpush.bf16.msra.mxu1 %v4537_v62  ;;  %v4385_v38 = vor.u32 %v5554_v37, %v4384_v33  ;;  %v5577_v62 = vld [vmem:[#allocation5 + $0x3e0] sm:$0xf0] }
 0x12f   :  { %1422 = vmatpush.bf16.msrb.mxu2 %v4545_v43  ;;  %v4498_v43 = vld [vmem:[#allocation5 + $0x414] sm:$0xf0] }
 0x130   :  { %1446 = vmatpush.bf16.msrb.mxu3 %v4297_v50 }
 0x132   :  { %1481 = vmatpush.bf16.msra.mxu1 %v4525_v12  ;;  %v5573_v12 = vld [vmem:[#allocation5 + $0x3c4] sm:$0xf] }
 0x133   :  { %1423 = vmatpush.bf16.msrb.mxu2 %v4533_v57 }
 0x134   :  { %1447 = vmatpush.bf16.msrb.mxu3 %v4285_v36  ;;  %v4421_v36 = vor.u32 %v5563_v58, %v4420_v56  ;;  %v800_v56 = vld [vmem:[#allocation7 + $0x8] sm:$0xff]  ;;  %v4489_v58 = vor.u32 %v5579_v54, %v4486_v55  ;;  %v801_v55 = vld [vmem:[#allocation7 + $0x10] sm:$0xff] }
 0x136   :  { %1482 = vmatpush.bf16.msra.mxu1 %v4513_v26  ;;  %v5545_v26 = vld [vmem:[#allocation5 + $0x2e0] sm:$0xf0] }
 0x137   :  { %1424 = vmatpush.bf16.msrb.mxu2 %v4521_v4 }
 0x138   :  { %1448 = vmatpush.bf16.msrb.mxu3 %v4273_v2  ;;  %v5560_v2 = vld [vmem:[#allocation5 + $0x358] sm:$0xf0] }
 0x13b   :  { %1425 = vmatpush.bf16.msrb.mxu2 %v4509_v20  ;;  %v4360_v20 = vld [vmem:[#allocation5 + $0x2f0] sm:$0xf] }
 0x13c   :  { %1517 = vmatpush.bf16.msra.mxu3 %v4457_v14 }
 0x13f   :  { %1426 = vmatpush.bf16.msrb.mxu2 %v4497_v35  ;;  %v809_v35 = vld [vmem:[#allocation7 + $0x50] sm:$0xff] }
 0x140   :  { %1518 = vmatpush.bf16.msra.mxu3 %v4445_v27  ;;  %v4516_v27 = vld [vmem:[#allocation5 + $0x428] sm:$0xf] }
 0x144   :  { %1519 = vmatpush.bf16.msra.mxu3 %v4433_v39  ;;  %v4501_v39 = vor.u32 %v5582_v40, %v4498_v43  ;;  %v5539_v40 = vld [vmem:[#allocation5 + $0x2b0] sm:$0xf0] }
 0x146   :  { %1483 = vmatpush.bf16.msra.mxu1 %v4501_v39 }
 0x148   :  { %1520 = vmatpush.bf16.msra.mxu3 %v4421_v36  ;;  %v4492_v36 = vld [vmem:[#allocation5 + $0x3f8] sm:$0xf] }
 0x149   :  { %v4493_v60 = vor.u32 %v5581_v59, %v4492_v36 }
 0x14a   :  { %1484 = vmatpush.bf16.msra.mxu1 %v4489_v58  ;;  %v804_v58 = vld [vmem:[#allocation7 + $0x28] sm:$0xff] }
 0x160   :  { %v837_v61 = vpop.f32.mrf.mxu1 }
 0x161   :  { %v838_v10 = vadd.f32 %v837_v61, %v799_v1  ;;  %v4408_v1 = vld [vmem:[#allocation5 + $0x350] sm:$0xf] }
 0x162   :  { %v4409_v5 = vor.u32 %v5560_v2, %v4408_v1  ;;  %v4480_v1 = vld [vmem:[#allocation5 + $0x3e0] sm:$0xf] }
 0x163   :  { %v885_v22 = vmax.f32 %v838_v10, 0.0 }
 0x164   :  { %1521 = vmatpush.bf16.msra.mxu3 %v4409_v5 }
 0x168   :  { %v839_v19 = vpop.f32.mrf.mxu1 }
 0x169   :  { %v840_v23 = vadd.f32 %v839_v19, %v802_v13  ;;  %v5590_v13 = vld [vmem:[#allocation5 + $0x448] sm:$0xf0]  ;;  %v4396_v19 = vld [vmem:[#allocation5 + $0x338] sm:$0xf] }
 0x16a   :  { %v4529_v15 = vor.u32 %v5590_v13, %v4528_v9  ;;  %v4462_v13 = vld [vmem:[#allocation5 + $0x3cc] sm:$0xf0] }
 0x16b   :  { %v888_v28 = vmax.f32 %v840_v23, 0.0  ;;  %v4397_v23 = vor.u32 %v5557_v21, %v4396_v19  ;;  %v4465_v16 = vor.u32 %v5573_v12, %v4462_v13  ;;  %v5548_v21 = vld [vmem:[#allocation5 + $0x2f8] sm:$0xf0] }
 0x16d   :  { %v6084_v34 = vpack.c.bf16 %v888_v28, %v885_v22  ;;  %v5587_v28 = vld [vmem:[#allocation5 + $0x430] sm:$0xf0]  ;;  %1522 = vmatpush.bf16.msra.mxu3 %v4397_v23  ;;  %v4361_v23 = vor.u32 %v5548_v21, %v4360_v20 }
 0x16e   :  { %v4517_v30 = vor.u32 %v5587_v28, %v4516_v27  ;;  %v4349_v27 = vor.u32 %v5545_v26, %v4348_v25  ;;  %v806_v28 = vld [vmem:[#allocation7 + $0x38] sm:$0xff] }
 0x16f   :  { %1392 = vmatmul.bf16.vlgmr.msrb.gmra.mxu0 %v6084_v34  ;;  %1449 = vmatmul.bf16.vlgmr.msrb.gmra.mxu3 %v6084_v34 }
 0x170   :  { %v842_v50 = vpop.f32.mrf.mxu1  ;;  %1536 = vmatpush.bf16.msrb.mxu0 %v4553_v53  ;;  %v5551_v53 = vld [vmem:[#allocation5 + $0x310] sm:$0xf0] }
 0x171   :  { %v843_v61 = vadd.f32 %v842_v50, %v805_v44  ;;  %1523 = vmatpush.bf16.msra.mxu3 %v4385_v38  ;;  %v4484_v44 = vld [vmem:[#allocation5 + $0x3f0] sm:$0xf]  ;;  %v5580_v50 = vld [vmem:[#allocation5 + $0x3f8] sm:$0xf0]  ;;  %v4373_v57 = vor.u32 %v5551_v53, %v4372_v51  ;;  %v4324_v38 = vld [vmem:[#allocation5 + $0x2a8] sm:$0xf] }
 0x172   :  { %v4485_v52 = vor.u32 %v5580_v50, %v4484_v44  ;;  %v4325_v39 = vor.u32 %v5539_v40, %v4324_v38  ;;  %v5533_v53 = vld [vmem:[#allocation5 + $0x280] sm:$0xf0] }
 0x173   :  { %v891_v10 = vmax.f32 %v843_v61, 0.0  ;;  %v4472_v61 = vld [vmem:[#allocation5 + $0x3d8] sm:$0xf] }
 0x174   :  { %1537 = vmatpush.bf16.msrb.mxu0 %v4541_v0  ;;  %1427 = vmatpush.bf16.msrb.mxu2 %v4485_v52  ;;  %v4473_v45 = vor.u32 %v5577_v62, %v4472_v61  ;;  %v5576_v0 = vld [vmem:[#allocation5 + $0x3dc] sm:$0xf]  ;;  %v4300_v52 = vld [vmem:[#allocation5 + $0x278] sm:$0xf]  ;;  %v4276_v62 = vld [vmem:[#allocation5 + $0x248] sm:$0xf] }
 0x175   :  { %1524 = vmatpush.bf16.msra.mxu3 %v4373_v57  ;;  %v4477_v2 = vor.u32 %v5576_v0, %v4474_v42  ;;  %v4301_v54 = vor.u32 %v5533_v53, %v4300_v52  ;;  %v5530_v57 = vld [vmem:[#allocation5 + $0x268] sm:$0xf0] }
 0x177   :  { %1485 = vmatpush.bf16.msra.mxu1 %v4477_v2  ;;  %v807_v2 = vld [vmem:[#allocation7 + $0x40] sm:$0xff] }
 0x178   :  { %v844_v11 = vpop.f32.mrf.mxu1  ;;  %1538 = vmatpush.bf16.msrb.mxu0 %v4529_v15  ;;  %1428 = vmatpush.bf16.msrb.mxu2 %v4473_v45 }
 0x179   :  { %v845_v14 = vadd.f32 %v844_v11, %v808_v3  ;;  %v5578_v3 = vld [vmem:[#allocation5 + $0x3e8] sm:$0xf0]  ;;  %v4461_v11 = vor.u32 %v5574_v7, %v4460_v6 }
 0x17a   :  { %v4481_v5 = vor.u32 %v5578_v3, %v4480_v1  ;;  %v810_v3 = vld [vmem:[#allocation7 + $0x58] sm:$0xff] }
 0x17b   :  { %v894_v22 = vmax.f32 %v845_v14, 0.0  ;;  %v4468_v14 = vld [vmem:[#allocation5 + $0x3c8] sm:$0xf]  ;;  %1486 = vmatpush.bf16.msra.mxu1 %v4465_v16 }
 0x17c   :  { %1539 = vmatpush.bf16.msrb.mxu0 %v4517_v30  ;;  %1429 = vmatpush.bf16.msrb.mxu2 %v4461_v11  ;;  %v4469_v19 = vor.u32 %v5575_v18, %v4468_v14  ;;  %v4336_v30 = vld [vmem:[#allocation5 + $0x2c0] sm:$0xf] }
 0x17d   :  { %v6088_v29 = vpack.c.bf16 %v894_v22, %v891_v10  ;;  %v4337_v33 = vor.u32 %v5542_v31, %v4336_v30 }
 0x17f   :  { %1397 = vmatmul.bf16.gmra.mxu0 %v6088_v29  ;;  %1454 = vmatmul.bf16.gmra.mxu3 %v6088_v29 }
 0x180   :  { %v856_v48 = vpop.f32.mrf.mxu2  ;;  %1540 = vmatpush.bf16.msrb.mxu0 %v4505_v49  ;;  %1498 = vmatpush.bf16.msra.mxu2 %v4361_v23  ;;  %v5536_v49 = vld [vmem:[#allocation5 + $0x298] sm:$0xf0] }
 0x181   :  { %v857_v41 = vadd.f32 %v856_v48, %v800_v56  ;;  %v4312_v48 = vld [vmem:[#allocation5 + $0x290] sm:$0xf]  ;;  %v4288_v56 = vld [vmem:[#allocation5 + $0x260] sm:$0xf] }
 0x182   :  { %v4313_v50 = vor.u32 %v5536_v49, %v4312_v48  ;;  %v4289_v59 = vor.u32 %v5530_v57, %v4288_v56 }
 0x183   :  { %v886_v9 = vmax.f32 %v857_v41, 0.0  ;;  %v5527_v41 = vld [vmem:[#allocation5 + $0x250] sm:$0xf0] }
 0x184   :  { %1541 = vmatpush.bf16.msrb.mxu0 %v4493_v60  ;;  %1499 = vmatpush.bf16.msra.mxu2 %v4349_v27  ;;  %v4277_v0 = vor.u32 %v5527_v41, %v4276_v62 }
 0x188   :  { %v858_v4 = vpop.f32.mrf.mxu2  ;;  %1542 = vmatpush.bf16.msrb.mxu0 %v4481_v5  ;;  %1500 = vmatpush.bf16.msra.mxu2 %v4337_v33 }
 0x189   :  { %v859_v10 = vadd.f32 %v858_v4, %v803_v63 }
 0x18b   :  { %v889_v15 = vmax.f32 %v859_v10, 0.0 }
 0x18c   :  { %1543 = vmatpush.bf16.msrb.mxu0 %v4469_v19  ;;  %1501 = vmatpush.bf16.msra.mxu2 %v4325_v39 }
 0x18d   :  { %v898_v22 = vpack.c.bf16 %v889_v15, %v886_v9 }
 0x18f   :  { %1411 = vmatmul.bf16.vlgmr.msrb.gmra.mxu1 %v898_v22  ;;  %1468 = vmatmul.bf16.vlgmr.msra.gmra.mxu0 %v898_v22 }
 0x190   :  { %v861_v24 = vpop.f32.mrf.mxu2  ;;  %1525 = vmatmul.bf16.vlgmr.msra.gmra.mxu3 %v898_v22  ;;  %1502 = vmatpush.bf16.msra.mxu2 %v4313_v50 }
 0x191   :  { %v862_v32 = vadd.f32 %v861_v24, %v806_v28 }
 0x193   :  { %v892_v43 = vmax.f32 %v862_v32, 0.0 }
 0x194   :  { %1503 = vmatpush.bf16.msra.mxu2 %v4301_v54 }
 0x198   :  { %v863_v37 = vpop.f32.mrf.mxu2  ;;  %1504 = vmatpush.bf16.msra.mxu2 %v4289_v59 }
 0x199   :  { %v864_v46 = vadd.f32 %v863_v37, %v809_v35 }
 0x19b   :  { %v895_v47 = vmax.f32 %v864_v46, 0.0 }
 0x19c   :  { %1505 = vmatpush.bf16.msra.mxu2 %v4277_v0 }
 0x19d   :  { %v901_v44 = vpack.c.bf16 %v895_v47, %v892_v43 }
 0x19e   :  { %v875_v51 = vpop.f32.mrf.mxu3 }
 0x19f   :  { %1416 = vmatmul.bf16.gmra.mxu1 %v901_v44  ;;  %1473 = vmatmul.bf16.gmra.mxu0 %v901_v44  ;;  %v876_v36 = vadd.f32 %v875_v51, %v801_v55 }
 0x1a0   :  { %1530 = vmatmul.bf16.gmra.mxu3 %v901_v44 }
 0x1a1   :  { %v887_v63 = vmax.f32 %v876_v36, 0.0 }
 0x1a6   :  { %v877_v60 = vpop.f32.mrf.mxu3 }
 0x1a7   :  { %v878_v61 = vadd.f32 %v877_v60, %v804_v58 }
 0x1a9   :  { %v890_v45 = vmax.f32 %v878_v61, 0.0 }
 0x1ab   :  { %v899_v42 = vpack.c.bf16 %v890_v45, %v887_v63 }
 0x1ad   :  { %1430 = vmatmul.bf16.vlgmr.msrb.gmra.mxu2 %v899_v42 }
 0x1ae   :  { %v880_v1 = vpop.f32.mrf.mxu3 }
 0x1af   :  { %1487 = vmatmul.bf16.vlgmr.msra.gmra.mxu1 %v899_v42  ;;  %1544 = vmatmul.bf16.vlgmr.msrb.gmra.mxu0 %v899_v42  ;;  %v881_v4 = vadd.f32 %v880_v1, %v807_v2  ;;  %v4646_v1 = vld [vmem:[#allocation5 + $0x528] sm:$0xf]  ;;  %v5619_v2 = vld [vmem:[#allocation5 + $0x530] sm:$0xf0] }
 0x1b1   :  { %v893_v7 = vmax.f32 %v881_v4, 0.0  ;;  %v4647_v4 = vor.u32 %v5619_v2, %v4646_v1  ;;  %v4588_v1 = vld [vmem:[#allocation5 + $0x4bc] sm:$0xf0] }
 0x1b3   :  { %2130 = vmatpush.bf16.msra.mxu0 %v4647_v4  ;;  %v5628_v4 = vld [vmem:[#allocation5 + $0x578] sm:$0xf0] }
 0x1b6   :  { %v882_v5 = vpop.f32.mrf.mxu3 }
 0x1b7   :  { %v883_v6 = vadd.f32 %v882_v5, %v810_v3  ;;  %v4742_v5 = vld [vmem:[#allocation5 + $0x5e8] sm:$0xf] }
 0x1b9   :  { %v896_v9 = vmax.f32 %v883_v6, 0.0  ;;  %v5643_v6 = vld [vmem:[#allocation5 + $0x5f0] sm:$0xf0] }
 0x1bb   :  { %v902_v10 = vpack.c.bf16 %v896_v9, %v893_v7 }
 0x1bd   :  { %1435 = vmatmul.bf16.gmra.mxu2 %v902_v10 }
 0x1bf   :  { %1492 = vmatmul.bf16.gmra.mxu1 %v902_v10  ;;  %1549 = vmatmul.bf16.gmra.mxu0 %v902_v10  ;;  %v4634_v10 = vld [vmem:[#allocation5 + $0x510] sm:$0xf] }
 0x1cd   :  { %1506 = vmatmul.bf16.vlgmr.msra.gmra.mxu2 %v6084_v34 }
 0x1dd   :  { %1511 = vmatmul.bf16.gmra.mxu2 %v6088_v29 }
 0x1ec   :  { %v1393_v11 = vpop.f32.mrf.mxu0 }
 0x1f2   :  { %v1450_v19 = vpop.f32.mrf.mxu3 }
 0x1f4   :  { %v1395_v12 = vpop.f32.mrf.mxu0 }
 0x1fa   :  { %v1452_v22 = vpop.f32.mrf.mxu3 }
 0x1fc   :  { %v1398_v14 = vpop.f32.mrf.mxu0 }
 0x202   :  { %v1455_v27 = vpop.f32.mrf.mxu3 }
 0x204   :  { %v1400_v16 = vpop.f32.mrf.mxu0 }
 0x20a   :  { %v1457_v29 = vpop.f32.mrf.mxu3 }
 0x20c   :  { %v1412_v13 = vpop.f32.mrf.mxu1  ;;  %v1469_v20 = vpop.f32.mrf.mxu0 }
 0x20d   :  { %v1470_v46 = vadd.f32 %v1469_v20, %v1450_v19  ;;  %v1413_v55 = vadd.f32 %v1412_v13, %v1393_v11  ;;  %v5616_v11 = vld [vmem:[#allocation5 + $0x518] sm:$0xf0]  ;;  %v4622_v19 = vld [vmem:[#allocation5 + $0x4f8] sm:$0xf]  ;;  %v5613_v20 = vld [vmem:[#allocation5 + $0x500] sm:$0xf0] }
 0x213   :  { %v1526_v54 = vpop.f32.mrf.mxu3 }
 0x214   :  { %v1414_v15 = vpop.f32.mrf.mxu1  ;;  %v1471_v23 = vpop.f32.mrf.mxu0 }
 0x215   :  { %v1472_v38 = vadd.f32 %v1471_v23, %v1452_v22  ;;  %v1415_v50 = vadd.f32 %v1414_v15, %v1395_v12  ;;  %v4730_v15 = vld [vmem:[#allocation5 + $0x5d0] sm:$0xf] }
 0x21b   :  { %v1528_v62 = vpop.f32.mrf.mxu3 }
 0x21c   :  { %v1417_v18 = vpop.f32.mrf.mxu1  ;;  %v1474_v28 = vpop.f32.mrf.mxu0 }
 0x21d   :  { %v1475_v33 = vadd.f32 %v1474_v28, %v1455_v27  ;;  %v1418_v39 = vadd.f32 %v1417_v18, %v1398_v14  ;;  %v4635_v14 = vor.u32 %v5616_v11, %v4634_v10  ;;  %v5618_v28 = vld [vmem:[#allocation5 + $0x52c] sm:$0xf]  ;;  %v4576_v10 = vld [vmem:[#allocation5 + $0x4a4] sm:$0xf0] }
 0x21f   :  { %2131 = vmatpush.bf16.msra.mxu0 %v4635_v14 }
 0x223   :  { %v1531_v45 = vpop.f32.mrf.mxu3 }
 0x224   :  { %v1419_v21 = vpop.f32.mrf.mxu1  ;;  %v1476_v31 = vpop.f32.mrf.mxu0 }
 0x225   :  { %v1477_v35 = vadd.f32 %v1476_v31, %v1457_v29  ;;  %v1420_v47 = vadd.f32 %v1419_v21, %v1400_v16  ;;  %v5640_v16 = vld [vmem:[#allocation5 + $0x5d8] sm:$0xf0]  ;;  %v4610_v31 = vld [vmem:[#allocation5 + $0x4e0] sm:$0xf] }
 0x22b   :  { %v1533_v7 = vpop.f32.mrf.mxu3 }
 0x22c   :  { %v1488_v24 = vpop.f32.mrf.mxu1  ;;  %v1545_v36 = vpop.f32.mrf.mxu0 }
 0x22d   :  { %v1489_v51 = vadd.f32 %v1488_v24, %v1470_v46  ;;  %v4718_v24 = vld [vmem:[#allocation5 + $0x5b8] sm:$0xf]  ;;  %v4636_v46 = vld [vmem:[#allocation5 + $0x51c] sm:$0xf0] }
 0x230   :  { %v1431_v25 = vpop.f32.mrf.mxu2 }
 0x231   :  { %v1432_v59 = vadd.f32 %v1431_v25, %v1413_v55  ;;  %v5637_v25 = vld [vmem:[#allocation5 + $0x5c0] sm:$0xf0]  ;;  %v6106_v55 = vld [vmem:[#allocation8 + $0x8] sm:$0xff] }
 0x232   :  { %v4719_v29 = vor.u32 %v5637_v25, %v4718_v24  ;;  %v5642_v24 = vld [vmem:[#allocation5 + $0x5ec] sm:$0xf]  ;;  %v4744_v25 = vld [vmem:[#allocation5 + $0x5f4] sm:$0xf0] }
 0x234   :  { %v1490_v26 = vpop.f32.mrf.mxu1  ;;  %v1547_v41 = vpop.f32.mrf.mxu0 }
 0x235   :  { %v1491_v48 = vadd.f32 %v1490_v26, %v1472_v38 }
 0x237   :  { %v1556_v56 = vpack.c.bf16 %v1491_v48, %v1489_v51 }
 0x238   :  { %v1433_v34 = vpop.f32.mrf.mxu2 }
 0x239   :  { %v1434_v57 = vadd.f32 %v1433_v34, %v1415_v50  ;;  %v4648_v34 = vld [vmem:[#allocation5 + $0x534] sm:$0xf0]  ;;  %v6102_v50 = vld [vmem:[#allocation8] sm:$0xff] }
 0x23a   :  { %v4651_v38 = vor.u32 %v5618_v28, %v4648_v34  ;;  %v5644_v28 = vld [vmem:[#allocation5 + $0x5f8] sm:$0xf0] }
 0x23b   :  { %v1555_v60 = vpack.c.bf16 %v1434_v57, %v1432_v59  ;;  %v5607_v57 = vld [vmem:[#allocation5 + $0x4d0] sm:$0xf0]  ;;  %v4600_v59 = vld [vmem:[#allocation5 + $0x4d4] sm:$0xf0] }
 0x23c   :  { %v1493_v30 = vpop.f32.mrf.mxu1  ;;  %v1550_v0 = vpop.f32.mrf.mxu0 }
 0x23d   :  { %v1494_v40 = vadd.f32 %v1493_v30, %v1475_v33  ;;  %v4623_v30 = vor.u32 %v5613_v20, %v4622_v19  ;;  %v4564_v19 = vld [vmem:[#allocation5 + $0x48c] sm:$0xf0] }
 0x23f   :  { %2132 = vmatpush.bf16.msra.mxu0 %v4623_v30  ;;  %v5639_v30 = vld [vmem:[#allocation5 + $0x5d4] sm:$0xf] }
 0x240   :  { %v1436_v32 = vpop.f32.mrf.mxu2 }
 0x241   :  { %v1437_v52 = vadd.f32 %v1436_v32, %v1418_v39  ;;  %v5610_v32 = vld [vmem:[#allocation5 + $0x4e8] sm:$0xf0] }
 0x242   :  { %v4611_v39 = vor.u32 %v5610_v32, %v4610_v31  ;;  %v4738_v31 = vld [vmem:[#allocation5 + $0x5d8] sm:$0xf] }
 0x244   :  { %v1495_v37 = vpop.f32.mrf.mxu1  ;;  %v1552_v18 = vpop.f32.mrf.mxu0  ;;  %2133 = vmatpush.bf16.msra.mxu0 %v4611_v39  ;;  %v5666_v39 = vld [vmem:[#allocation5 + $0x6ac] sm:$0xf] }
 0x245   :  { %v1496_v43 = vadd.f32 %v1495_v37, %v1477_v35  ;;  %v4706_v35 = vld [vmem:[#allocation5 + $0x5a0] sm:$0xf]  ;;  %v5634_v37 = vld [vmem:[#allocation5 + $0x5a8] sm:$0xf0] }
 0x247   :  { %v1559_v49 = vpack.c.bf16 %v1496_v43, %v1494_v40  ;;  %v5615_v43 = vld [vmem:[#allocation5 + $0x514] sm:$0xf] }
 0x248   :  { %v1438_v44 = vpop.f32.mrf.mxu2  ;;  %v4639_v48 = vor.u32 %v5615_v43, %v4636_v46  ;;  %v4720_v46 = vld [vmem:[#allocation5 + $0x5c4] sm:$0xf0] }
 0x249   :  { %v1439_v53 = vadd.f32 %v1438_v44, %v1420_v47  ;;  %1599 = vmatpush.bf16.msrb.mxu2 %v1559_v49  ;;  %v4707_v47 = vor.u32 %v5634_v37, %v4706_v35  ;;  %v5612_v49 = vld [vmem:[#allocation5 + $0x4fc] sm:$0xf]  ;;  %v4624_v44 = vld [vmem:[#allocation5 + $0x504] sm:$0xf0] }
 0x24a   :  { %v4627_v51 = vor.u32 %v5612_v49, %v4624_v44  ;;  %v4838_v37 = vld [vmem:[#allocation5 + $0x6a8] sm:$0xf]  ;;  %v4726_v44 = vld [vmem:[#allocation5 + $0x5c0] sm:$0xf] }
 0x24b   :  { %v1558_v58 = vpack.c.bf16 %v1439_v53, %v1437_v52  ;;  %v5609_v52 = vld [vmem:[#allocation5 + $0x4e4] sm:$0xf]  ;;  %v4612_v53 = vld [vmem:[#allocation5 + $0x4ec] sm:$0xf0] }
 0x24d   :  { %1580 = vmatpush.bf16.msrb.mxu1 %v1558_v58  ;;  %1600 = vmatpush.bf16.msrb.mxu2 %v1556_v56  ;;  %v4598_v56 = vld [vmem:[#allocation5 + $0x4c8] sm:$0xf]  ;;  %v5606_v58 = vld [vmem:[#allocation5 + $0x4cc] sm:$0xf] }
 0x250   :  { %v1507_v61 = vpop.f32.mrf.mxu2  ;;  %4556 = vmatmul.msk.bf16.vlgmr.msrb.gmra.mxu2 %vm821_vm0, %v6068_v8 }
 0x251   :  { %1581 = vmatpush.bf16.msrb.mxu1 %v1555_v60  ;;  %v1527_v21 = vadd.f32 %v1526_v54, %v1507_v61  ;;  %v4615_v54 = vor.u32 %v5609_v52, %v4612_v53  ;;  %v4603_v60 = vor.u32 %v5606_v58, %v4600_v59  ;;  %v4694_v61 = vld [vmem:[#allocation5 + $0x588] sm:$0xf]  ;;  %v4826_v53 = vld [vmem:[#allocation5 + $0x690] sm:$0xf] }
 0x252   :  { %v4708_v58 = vld [vmem:[#allocation5 + $0x5ac] sm:$0xf0] }
 0x253   :  { %v1546_v33 = vadd.f32 %v1545_v36, %v1527_v21  ;;  %v4599_v36 = vor.u32 %v5607_v57, %v4598_v56  ;;  %v4658_v21 = vld [vmem:[#allocation5 + $0x540] sm:$0xf]  ;;  %v5633_v56 = vld [vmem:[#allocation5 + $0x5a4] sm:$0xf] }
 0x254   :  { %4554 = vmatmul.msk.bf16.vlgmr.msrb.gmra.mxu1 %vm821_vm0, %v6068_v8  ;;  %v4743_v8 = vor.u32 %v5643_v6, %v4742_v5  ;;  %v4574_v6 = vld [vmem:[#allocation5 + $0x498] sm:$0xf]  ;;  %v4711_v59 = vor.u32 %v5633_v56, %v4708_v58 }
 0x255   :  { %2134 = vmatpush.bf16.msra.mxu0 %v4599_v36  ;;  %v5663_v36 = vld [vmem:[#allocation5 + $0x694] sm:$0xf] }
 0x256   :  { %2149 = vmatpush.bf16.msra.mxu1 %v4743_v8 }
 0x258   :  { %v1509_v63 = vpop.f32.mrf.mxu2 }
 0x259   :  { %v1529_v12 = vadd.f32 %v1528_v62, %v1509_v63  ;;  %v5631_v62 = vld [vmem:[#allocation5 + $0x590] sm:$0xf0]  ;;  %v4586_v63 = vld [vmem:[#allocation5 + $0x4b0] sm:$0xf] }
 0x25b   :  { %v1548_v26 = vadd.f32 %v1547_v41, %v1529_v12  ;;  %v4695_v41 = vor.u32 %v5631_v62, %v4694_v61  ;;  %v4670_v12 = vld [vmem:[#allocation5 + $0x558] sm:$0xf]  ;;  %v4714_v61 = vld [vmem:[#allocation5 + $0x5a8] sm:$0xf]  ;;  %v5635_v62 = vld [vmem:[#allocation5 + $0x5b0] sm:$0xf0] }
 0x25d   :  { %v1557_v40 = vpack.c.bf16 %v1548_v26, %v1546_v33  ;;  %v4750_v26 = vld [vmem:[#allocation5 + $0x5f0] sm:$0xf]  ;;  %v5641_v33 = vld [vmem:[#allocation5 + $0x5e0] sm:$0xf0] }
 0x25e   :  { %v4751_v34 = vor.u32 %v5644_v28, %v4750_v26  ;;  %v4739_v35 = vor.u32 %v5641_v33, %v4738_v31  ;;  %v4790_v28 = vld [vmem:[#allocation5 + $0x648] sm:$0xf]  ;;  %v5654_v33 = vld [vmem:[#allocation5 + $0x64c] sm:$0xf] }
 0x260   :  { %v1512_v42 = vpop.f32.mrf.mxu2  ;;  %4557 = vmatmul.msk.bf16.gmra.mxu2 %vm821_vm0, %v6072_v17 }
 0x261   :  { %v1532_v3 = vadd.f32 %v1531_v45, %v1512_v42  ;;  %v5604_v45 = vld [vmem:[#allocation5 + $0x4b8] sm:$0xf0] }
 0x262   :  { %v4587_v42 = vor.u32 %v5604_v45, %v4586_v63  ;;  %v4715_v63 = vor.u32 %v5635_v62, %v4714_v61  ;;  %v4814_v45 = vld [vmem:[#allocation5 + $0x678] sm:$0xf]  ;;  %v4780_v61 = vld [vmem:[#allocation5 + $0x63c] sm:$0xf0]  ;;  %v4666_v62 = vld [vmem:[#allocation5 + $0x548] sm:$0xf] }
 0x263   :  { %v1551_v22 = vadd.f32 %v1550_v0, %v1532_v3  ;;  %v5603_v0 = vld [vmem:[#allocation5 + $0x4b4] sm:$0xf]  ;;  %v4682_v3 = vld [vmem:[#allocation5 + $0x570] sm:$0xf] }
 0x264   :  { %4555 = vmatmul.msk.bf16.gmra.mxu1 %vm821_vm0, %v6072_v17  ;;  %v4731_v17 = vor.u32 %v5640_v16, %v4730_v15  ;;  %v4591_v2 = vor.u32 %v5603_v0, %v4588_v1  ;;  %2135 = vmatpush.bf16.msra.mxu0 %v4587_v42  ;;  %v4683_v5 = vor.u32 %v5628_v4, %v4682_v3  ;;  %v4562_v15 = vld [vmem:[#allocation5 + $0x480] sm:$0xf]  ;;  %v5598_v16 = vld [vmem:[#allocation5 + $0x488] sm:$0xf0]  ;;  %v5661_v0 = vld [vmem:[#allocation5 + $0x680] sm:$0xf0] }
 0x265   :  { %v5630_v42 = vld [vmem:[#allocation5 + $0x58c] sm:$0xf]  ;;  %v4815_v1 = vor.u32 %v5661_v0, %v4814_v45  ;;  %v5660_v3 = vld [vmem:[#allocation5 + $0x67c] sm:$0xf]  ;;  %v4816_v4 = vld [vmem:[#allocation5 + $0x684] sm:$0xf0] }
 0x266   :  { %2150 = vmatpush.bf16.msra.mxu1 %v4731_v17  ;;  %v4563_v17 = vor.u32 %v5598_v16, %v4562_v15 }
 0x268   :  { %v1514_v9 = vpop.f32.mrf.mxu2 }
 0x269   :  { %v1534_v13 = vadd.f32 %v1533_v7, %v1514_v9  ;;  %v5601_v7 = vld [vmem:[#allocation5 + $0x4a0] sm:$0xf0]  ;;  %v5600_v9 = vld [vmem:[#allocation5 + $0x49c] sm:$0xf] }
 0x26a   :  { %2151 = vmatpush.bf16.msra.mxu1 %v4719_v29  ;;  %v4575_v8 = vor.u32 %v5601_v7, %v4574_v6  ;;  %v4579_v11 = vor.u32 %v5600_v9, %v4576_v10  ;;  %v4732_v29 = vld [vmem:[#allocation5 + $0x5dc] sm:$0xf0]  ;;  %v4819_v9 = vor.u32 %v5660_v3, %v4816_v4  ;;  %v5632_v10 = vld [vmem:[#allocation5 + $0x598] sm:$0xf0] }
 0x26b   :  { %v1553_v23 = vadd.f32 %v1552_v18, %v1534_v13  ;;  %v5625_v13 = vld [vmem:[#allocation5 + $0x560] sm:$0xf0]  ;;  %v4735_v32 = vor.u32 %v5639_v30, %v4732_v29  ;;  %v5624_v30 = vld [vmem:[#allocation5 + $0x55c] sm:$0xf] }
 0x26c   :  { %2136 = vmatpush.bf16.msra.mxu0 %v4575_v8  ;;  %v4671_v14 = vor.u32 %v5625_v13, %v4670_v12  ;;  %v5597_v18 = vld [vmem:[#allocation5 + $0x484] sm:$0xf]  ;;  %v4702_v8 = vld [vmem:[#allocation5 + $0x590] sm:$0xf]  ;;  %v4802_v12 = vld [vmem:[#allocation5 + $0x660] sm:$0xf] }
 0x26d   :  { %v1560_v27 = vpack.c.bf16 %v1553_v23, %v1551_v22  ;;  %v4567_v20 = vor.u32 %v5597_v18, %v4564_v19  ;;  %v5622_v22 = vld [vmem:[#allocation5 + $0x548] sm:$0xf0]  ;;  %v4684_v18 = vld [vmem:[#allocation5 + $0x57c] sm:$0xf0]  ;;  %v4804_v19 = vld [vmem:[#allocation5 + $0x66c] sm:$0xf0] }
 0x26e   :  { %2152 = vmatpush.bf16.msra.mxu1 %v4707_v47  ;;  %v4659_v23 = vor.u32 %v5622_v22, %v4658_v21  ;;  %v4840_v47 = vld [vmem:[#allocation5 + $0x6b4] sm:$0xf0]  ;;  %v5658_v13 = vld [vmem:[#allocation5 + $0x668] sm:$0xf0]  ;;  %v5648_v3 = vld [vmem:[#allocation5 + $0x61c] sm:$0xf] }
 0x26f   :  { %1618 = vmatpush.bf16.msrb.mxu3 %v1560_v27  ;;  %v4747_v27 = vor.u32 %v5642_v24, %v4744_v25  ;;  %v4843_v49 = vor.u32 %v5666_v39, %v4840_v47  ;;  %v4803_v16 = vor.u32 %v5658_v13, %v4802_v12  ;;  %v4690_v22 = vld [vmem:[#allocation5 + $0x578] sm:$0xf]  ;;  %v1563_v24 = vld [vmem:[#allocation7 + $0x68] sm:$0xff] }
 0x270   :  { %2137 = vmatpush.bf16.msra.mxu0 %v4563_v17  ;;  %v5657_v17 = vld [vmem:[#allocation5 + $0x664] sm:$0xf]  ;;  %v5626_v39 = vld [vmem:[#allocation5 + $0x568] sm:$0xf0] }
 0x271   :  { %v4807_v21 = vor.u32 %v5657_v17, %v4804_v19  ;;  %v4756_v17 = vld [vmem:[#allocation5 + $0x60c] sm:$0xf0]  ;;  %v4834_v19 = vld [vmem:[#allocation5 + $0x698] sm:$0xf] }
 0x272   :  { %2153 = vmatpush.bf16.msra.mxu1 %v4695_v41 }
 0x273   :  { %1619 = vmatpush.bf16.msrb.mxu3 %v1557_v40  ;;  %v5636_v40 = vld [vmem:[#allocation5 + $0x5bc] sm:$0xf] }
 0x274   :  { %2206 = vmatpush.bf16.msrb.mxu0 %v4747_v27  ;;  %v1565_v27 = vld [vmem:[#allocation7 + $0x78] sm:$0xff] }
 0x276   :  { %4558 = vmatmul.msk.bf16.vlgmr.msrb.gmra.mxu3 %vm821_vm0, %v6102_v50  ;;  %2154 = vmatpush.bf16.msra.mxu1 %v4683_v5  ;;  %v1562_v5 = vld [vmem:[#allocation7 + $0x60] sm:$0xff] }
 0x277   :  { %2187 = vmatpush.bf16.msra.mxu3 %v4651_v38  ;;  %v5667_v38 = vld [vmem:[#allocation5 + $0x6b0] sm:$0xf0] }
 0x278   :  { %2207 = vmatpush.bf16.msrb.mxu0 %v4735_v32  ;;  %v4839_v43 = vor.u32 %v5667_v38, %v4838_v37  ;;  %v4672_v32 = vld [vmem:[#allocation5 + $0x564] sm:$0xf0]  ;;  %v1566_v38 = vld [vmem:[#allocation7 + $0x80] sm:$0xff] }
 0x27a   :  { %2155 = vmatpush.bf16.msra.mxu1 %v4671_v14  ;;  %2168 = vmatpush.bf16.msra.mxu2 %v4839_v43  ;;  %v5627_v14 = vld [vmem:[#allocation5 + $0x574] sm:$0xf] }
 0x27b   :  { %2188 = vmatpush.bf16.msra.mxu3 %v4639_v48  ;;  %v4723_v48 = vor.u32 %v5636_v40, %v4720_v46  ;;  %v4675_v40 = vor.u32 %v5624_v30, %v4672_v32  ;;  %v4678_v46 = vld [vmem:[#allocation5 + $0x560] sm:$0xf]  ;;  %v1572_v32 = vld [vmem:[#allocation7 + $0xb0] sm:$0xff] }
 0x27d   :  { %2208 = vmatpush.bf16.msrb.mxu0 %v4723_v48 }
 0x27e   :  { %2156 = vmatpush.bf16.msra.mxu1 %v4659_v23  ;;  %v5629_v23 = vld [vmem:[#allocation5 + $0x580] sm:$0xf0] }
 0x27f   :  { %2189 = vmatpush.bf16.msra.mxu3 %v4627_v51  ;;  %v5638_v51 = vld [vmem:[#allocation5 + $0x5c8] sm:$0xf0]  ;;  %v4691_v25 = vor.u32 %v5629_v23, %v4690_v22  ;;  %v5665_v22 = vld [vmem:[#allocation5 + $0x6a0] sm:$0xf0] }
 0x280   :  { %v4727_v52 = vor.u32 %v5638_v51, %v4726_v44  ;;  %v4778_v51 = vld [vmem:[#allocation5 + $0x630] sm:$0xf] }
 0x281   :  { %2209 = vmatpush.bf16.msrb.mxu0 %v4711_v59  ;;  %v5651_v59 = vld [vmem:[#allocation5 + $0x634] sm:$0xf] }
 0x282   :  { %2225 = vmatpush.bf16.msrb.mxu1 %v4843_v49  ;;  %v4679_v49 = vor.u32 %v5626_v39, %v4678_v46  ;;  %v4783_v0 = vor.u32 %v5651_v59, %v4780_v61  ;;  %v4810_v46 = vld [vmem:[#allocation5 + $0x668] sm:$0xf]  ;;  %v5656_v59 = vld [vmem:[#allocation5 + $0x658] sm:$0xf0] }
 0x283   :  { %2190 = vmatpush.bf16.msra.mxu3 %v4615_v54  ;;  %v5664_v54 = vld [vmem:[#allocation5 + $0x698] sm:$0xf0]  ;;  %v4618_v61 = vld [vmem:[#allocation5 + $0x4e8] sm:$0xf] }
 0x284   :  { %v4827_v57 = vor.u32 %v5664_v54, %v4826_v53  ;;  %v5621_v53 = vld [vmem:[#allocation5 + $0x544] sm:$0xf] }
 0x286   :  { %4559 = vmatmul.msk.bf16.gmra.mxu3 %vm821_vm0, %v6106_v55  ;;  %2169 = vmatpush.bf16.msra.mxu2 %v4827_v57 }
 0x287   :  { %2191 = vmatpush.bf16.msra.mxu3 %v4603_v60  ;;  %v4828_v60 = vld [vmem:[#allocation5 + $0x69c] sm:$0xf0] }
 0x288   :  { %v4831_v41 = vor.u32 %v5663_v36, %v4828_v60  ;;  %v4660_v36 = vld [vmem:[#allocation5 + $0x54c] sm:$0xf0] }
 0x289   :  { %v4663_v60 = vor.u32 %v5621_v53, %v4660_v36 }
 0x28a   :  { %2226 = vmatpush.bf16.msrb.mxu1 %v4831_v41  ;;  %2170 = vmatpush.bf16.msra.mxu2 %v4815_v1  ;;  %v5623_v41 = vld [vmem:[#allocation5 + $0x550] sm:$0xf0]  ;;  %v4766_v1 = vld [vmem:[#allocation5 + $0x618] sm:$0xf] }
 0x28b   :  { %2192 = vmatpush.bf16.msra.mxu3 %v4591_v2  ;;  %v4696_v2 = vld [vmem:[#allocation5 + $0x594] sm:$0xf0] }
 0x28c   :  { %v4699_v7 = vor.u32 %v5630_v42, %v4696_v2  ;;  %v4667_v42 = vor.u32 %v5623_v41, %v4666_v62  ;;  %v5649_v2 = vld [vmem:[#allocation5 + $0x620] sm:$0xf0]  ;;  %v5611_v62 = vld [vmem:[#allocation5 + $0x4f0] sm:$0xf0]  ;;  %v4786_v41 = vld [vmem:[#allocation5 + $0x638] sm:$0xf] }
 0x28e   :  { %2210 = vmatpush.bf16.msrb.mxu0 %v4699_v7  ;;  %2227 = vmatpush.bf16.msrb.mxu1 %v4819_v9  ;;  %v4846_v7 = vld [vmem:[#allocation5 + $0x6b0] sm:$0xf] }
 0x28f   :  { %2193 = vmatpush.bf16.msra.mxu3 %v4579_v11  ;;  %v4703_v11 = vor.u32 %v5632_v10, %v4702_v8  ;;  %2171 = vmatpush.bf16.msra.mxu2 %v4803_v16  ;;  %v5668_v10 = vld [vmem:[#allocation5 + $0x6b8] sm:$0xf0]  ;;  %v5645_v16 = vld [vmem:[#allocation5 + $0x604] sm:$0xf] }
 0x290   :  { %v4847_v12 = vor.u32 %v5668_v10, %v4846_v7  ;;  %v4594_v7 = vld [vmem:[#allocation5 + $0x4b8] sm:$0xf] }
 0x292   :  { %2228 = vmatpush.bf16.msrb.mxu1 %v4807_v21  ;;  %v4759_v21 = vor.u32 %v5645_v16, %v4756_v17  ;;  %v1567_v16 = vld [vmem:[#allocation7 + $0x88] sm:$0xff] }
 0x293   :  { %2194 = vmatpush.bf16.msra.mxu3 %v4567_v20  ;;  %v4687_v20 = vor.u32 %v5627_v14, %v4684_v18  ;;  %v4754_v14 = vld [vmem:[#allocation5 + $0x600] sm:$0xf]  ;;  %v5602_v17 = vld [vmem:[#allocation5 + $0x4a8] sm:$0xf0] }
 0x295   :  { %2211 = vmatpush.bf16.msrb.mxu0 %v4687_v20  ;;  %v1569_v20 = vld [vmem:[#allocation7 + $0x98] sm:$0xff] }
 0x297   :  { %2263 = vmatpush.bf16.msrb.mxu3 %v4751_v34  ;;  %v5655_v34 = vld [vmem:[#allocation5 + $0x650] sm:$0xf0] }
 0x298   :  { %v4791_v31 = vor.u32 %v5655_v34, %v4790_v28  ;;  %v4822_v28 = vld [vmem:[#allocation5 + $0x680] sm:$0xf] }
 0x299   :  { %2212 = vmatpush.bf16.msrb.mxu0 %v4675_v40  ;;  %v4642_v40 = vld [vmem:[#allocation5 + $0x518] sm:$0xf] }
 0x29a   :  { %2172 = vmatpush.bf16.msra.mxu2 %v4791_v31 }
 0x29b   :  { %2264 = vmatpush.bf16.msrb.mxu3 %v4739_v35  ;;  %v4792_v35 = vld [vmem:[#allocation5 + $0x654] sm:$0xf0] }
 0x29c   :  { %v4795_v43 = vor.u32 %v5654_v33, %v4792_v35 }
 0x29d   :  { %2213 = vmatpush.bf16.msrb.mxu0 %v4663_v60 }
 0x29e   :  { %2229 = vmatpush.bf16.msrb.mxu1 %v4795_v43  ;;  %v5617_v43 = vld [vmem:[#allocation5 + $0x520] sm:$0xf0] }
 0x29f   :  { %2265 = vmatpush.bf16.msrb.mxu3 %v4727_v52  ;;  %v5652_v52 = vld [vmem:[#allocation5 + $0x638] sm:$0xf0] }
 0x2a0   :  { %v4779_v58 = vor.u32 %v5652_v52, %v4778_v51 }
 0x2a2   :  { %2173 = vmatpush.bf16.msra.mxu2 %v4779_v58  ;;  %2230 = vmatpush.bf16.msrb.mxu1 %v4783_v0  ;;  %v5653_v0 = vld [vmem:[#allocation5 + $0x640] sm:$0xf0] }
 0x2a3   :  { %2266 = vmatpush.bf16.msrb.mxu3 %v4715_v63 }
 0x2a7   :  { %2267 = vmatpush.bf16.msrb.mxu3 %v4703_v11  ;;  %v1568_v11 = vld [vmem:[#allocation7 + $0x90] sm:$0xff] }
 0x2ab   :  { %2268 = vmatpush.bf16.msrb.mxu3 %v4691_v25  ;;  %v4835_v25 = vor.u32 %v5665_v22, %v4834_v19  ;;  %v5599_v22 = vld [vmem:[#allocation5 + $0x490] sm:$0xf0] }
 0x2af   :  { %2269 = vmatpush.bf16.msrb.mxu3 %v4679_v49  ;;  %v4643_v49 = vor.u32 %v5617_v43, %v4642_v40 }
 0x2b3   :  { %2270 = vmatpush.bf16.msrb.mxu3 %v4667_v42  ;;  %v4787_v42 = vor.u32 %v5653_v0, %v4786_v41 }
 0x2d1   :  { %v1583_v6 = vpop.f32.mrf.mxu1 }
 0x2d2   :  { %v1584_v26 = vadd.f32 %v1583_v6, %v1562_v5  ;;  %v4767_v5 = vor.u32 %v5649_v2, %v4766_v1  ;;  %v4768_v6 = vld [vmem:[#allocation5 + $0x624] sm:$0xf0]  ;;  %v4606_v1 = vld [vmem:[#allocation5 + $0x4d0] sm:$0xf]  ;;  %v5608_v2 = vld [vmem:[#allocation5 + $0x4d8] sm:$0xf0] }
 0x2d3   :  { %v1602_v15 = vpop.f32.mrf.mxu2  ;;  %v4771_v8 = vor.u32 %v5648_v3, %v4768_v6  ;;  %v4774_v3 = vld [vmem:[#allocation5 + $0x620] sm:$0xf]  ;;  %v5650_v6 = vld [vmem:[#allocation5 + $0x628] sm:$0xf0] }
 0x2d4   :  { %v1603_v29 = vadd.f32 %v1602_v15, %v1563_v24  ;;  %v1631_v47 = vmax.f32 %v1584_v26, 0.0  ;;  %2174 = vmatpush.bf16.msra.mxu2 %v4767_v5  ;;  %v5646_v15 = vld [vmem:[#allocation5 + $0x608] sm:$0xf0]  ;;  %v4654_v26 = vld [vmem:[#allocation5 + $0x530] sm:$0xf]  ;;  %v4607_v5 = vor.u32 %v5608_v2, %v4606_v1  ;;  %v4775_v10 = vor.u32 %v5650_v6, %v4774_v3 }
 0x2d5   :  { %v4755_v18 = vor.u32 %v5646_v15, %v4754_v14  ;;  %2231 = vmatpush.bf16.msrb.mxu1 %v4771_v8  ;;  %v1571_v24 = vld [vmem:[#allocation7 + $0xa8] sm:$0xff]  ;;  %v1564_v14 = vld [vmem:[#allocation7 + $0x70] sm:$0xff] }
 0x2d6   :  { %v1632_v54 = vmax.f32 %v1603_v29, 0.0  ;;  %v5662_v29 = vld [vmem:[#allocation5 + $0x688] sm:$0xf0] }
 0x2d7   :  { %v4823_v33 = vor.u32 %v5662_v29, %v4822_v28  ;;  %v1573_v29 = vld [vmem:[#allocation7 + $0xb8] sm:$0xff] }
 0x2d8   :  { %2175 = vmatpush.bf16.msra.mxu2 %v4755_v18  ;;  %v4582_v18 = vld [vmem:[#allocation5 + $0x4a0] sm:$0xf] }
 0x2d9   :  { %v1585_v37 = vpop.f32.mrf.mxu1  ;;  %2232 = vmatpush.bf16.msrb.mxu1 %v4759_v21  ;;  %v4570_v21 = vld [vmem:[#allocation5 + $0x488] sm:$0xf] }
 0x2da   :  { %v1586_v48 = vadd.f32 %v1585_v37, %v1565_v27  ;;  %v5620_v27 = vld [vmem:[#allocation5 + $0x538] sm:$0xf0] }
 0x2db   :  { %v1604_v44 = vpop.f32.mrf.mxu2  ;;  %v4655_v30 = vor.u32 %v5620_v27, %v4654_v26 }
 0x2dc   :  { %v1634_v56 = vmax.f32 %v1586_v48, 0.0  ;;  %v1605_v57 = vadd.f32 %v1604_v44, %v1566_v38  ;;  %v5659_v44 = vld [vmem:[#allocation5 + $0x670] sm:$0xf0] }
 0x2dd   :  { %2244 = vmatpush.bf16.msrb.mxu2 %v4655_v30  ;;  %v4811_v51 = vor.u32 %v5659_v44, %v4810_v46  ;;  %v1570_v30 = vld [vmem:[#allocation7 + $0xa0] sm:$0xff] }
 0x2de   :  { %v6110_v63 = vpack.c.bf16 %v1634_v56, %v1631_v47  ;;  %v1635_v45 = vmax.f32 %v1605_v57, 0.0  ;;  %v5614_v56 = vld [vmem:[#allocation5 + $0x508] sm:$0xf0]  ;;  %v4798_v57 = vld [vmem:[#allocation5 + $0x650] sm:$0xf] }
 0x2df   :  { %v4799_v60 = vor.u32 %v5656_v59, %v4798_v57 }
 0x2e0   :  { %v6112_v4 = vpack.c.bf16 %v1635_v45, %v1632_v54  ;;  %2138 = vmatmul.bf16.vlgmr.msra.gmra.mxu0 %v6110_v63  ;;  %2195 = vmatmul.bf16.vlgmr.msra.gmra.mxu3 %v6110_v63  ;;  %v4630_v54 = vld [vmem:[#allocation5 + $0x500] sm:$0xf]  ;;  %v4619_v45 = vor.u32 %v5611_v62, %v4618_v61 }
 0x2e1   :  { %v1588_v9 = vpop.f32.mrf.mxu1  ;;  %2282 = vmatpush.bf16.msra.mxu0 %v4847_v12  ;;  %2245 = vmatpush.bf16.msrb.mxu2 %v4643_v49  ;;  %v4631_v36 = vor.u32 %v5614_v56, %v4630_v54  ;;  %v4762_v12 = vld [vmem:[#allocation5 + $0x608] sm:$0xf] }
 0x2e2   :  { %2157 = vmatmul.bf16.vlgmr.msra.gmra.mxu1 %v6112_v4  ;;  %v1589_v23 = vadd.f32 %v1588_v9, %v1568_v11  ;;  %v5605_v9 = vld [vmem:[#allocation5 + $0x4c0] sm:$0xf0] }
 0x2e3   :  { %v1607_v13 = vpop.f32.mrf.mxu2  ;;  %v4595_v11 = vor.u32 %v5605_v9, %v4594_v7 }
 0x2e4   :  { %v1608_v34 = vadd.f32 %v1607_v13, %v1569_v20  ;;  %v1637_v35 = vmax.f32 %v1589_v23, 0.0  ;;  %v5647_v13 = vld [vmem:[#allocation5 + $0x610] sm:$0xf0]  ;;  %v4583_v20 = vor.u32 %v5602_v17, %v4582_v18 }
 0x2e5   :  { %2283 = vmatpush.bf16.msra.mxu0 %v4835_v25  ;;  %2246 = vmatpush.bf16.msrb.mxu2 %v4631_v36  ;;  %v4763_v15 = vor.u32 %v5647_v13, %v4762_v12  ;;  %v4571_v25 = vor.u32 %v5599_v22, %v4570_v21 }
 0x2e6   :  { %v1638_v39 = vmax.f32 %v1608_v34, 0.0 }
 0x2e9   :  { %v1590_v31 = vpop.f32.mrf.mxu1  ;;  %2284 = vmatpush.bf16.msra.mxu0 %v4823_v33  ;;  %2247 = vmatpush.bf16.msrb.mxu2 %v4619_v45 }
 0x2ea   :  { %v1591_v37 = vadd.f32 %v1590_v31, %v1571_v24 }
 0x2eb   :  { %v1609_v38 = vpop.f32.mrf.mxu2 }
 0x2ec   :  { %v1640_v47 = vmax.f32 %v1591_v37, 0.0  ;;  %v1610_v48 = vadd.f32 %v1609_v38, %v1572_v32 }
 0x2ed   :  { %2285 = vmatpush.bf16.msra.mxu0 %v4811_v51  ;;  %2248 = vmatpush.bf16.msrb.mxu2 %v4607_v5 }
 0x2ee   :  { %v1641_v52 = vmax.f32 %v1610_v48, 0.0  ;;  %v6117_v53 = vpack.c.bf16 %v1640_v47, %v1637_v35 }
 0x2f0   :  { %2143 = vmatmul.bf16.gmra.mxu0 %v6117_v53  ;;  %2200 = vmatmul.bf16.gmra.mxu3 %v6117_v53  ;;  %v1647_v58 = vpack.c.bf16 %v1641_v52, %v1638_v39 }
 0x2f1   :  { %2286 = vmatpush.bf16.msra.mxu0 %v4799_v60  ;;  %2249 = vmatpush.bf16.msrb.mxu2 %v4595_v11 }
 0x2f2   :  { %2162 = vmatmul.bf16.gmra.mxu1 %v1647_v58 }
 0x2f5   :  { %2287 = vmatpush.bf16.msra.mxu0 %v4787_v42  ;;  %2250 = vmatpush.bf16.msrb.mxu2 %v4583_v20 }
 0x2f9   :  { %v1621_v8 = vpop.f32.mrf.mxu3  ;;  %2288 = vmatpush.bf16.msra.mxu0 %v4775_v10  ;;  %2251 = vmatpush.bf16.msrb.mxu2 %v4571_v25 }
 0x2fa   :  { %v1622_v19 = vadd.f32 %v1621_v8, %v1564_v14 }
 0x2fc   :  { %v1633_v26 = vmax.f32 %v1622_v19, 0.0 }
 0x2fd   :  { %2289 = vmatpush.bf16.msra.mxu0 %v4763_v15 }
 0x300   :  { %2214 = vmatmul.bf16.vlgmr.msrb.gmra.mxu0 %v6112_v4  ;;  %2271 = vmatmul.bf16.vlgmr.msrb.gmra.mxu3 %v6112_v4 }
 0x301   :  { %v1623_v23 = vpop.f32.mrf.mxu3 }
 0x302   :  { %v1624_v24 = vadd.f32 %v1623_v23, %v1567_v16 }
 0x304   :  { %v1636_v27 = vmax.f32 %v1624_v24, 0.0 }
 0x306   :  { %v1645_v28 = vpack.c.bf16 %v1636_v27, %v1633_v26 }
 0x308   :  { %2176 = vmatmul.bf16.vlgmr.msra.gmra.mxu2 %v1645_v28  ;;  %2233 = vmatmul.bf16.vlgmr.msrb.gmra.mxu1 %v1645_v28 }
 0x309   :  { %v1626_v34 = vpop.f32.mrf.mxu3 }
 0x30a   :  { %v1627_v31 = vadd.f32 %v1626_v34, %v1570_v30  ;;  %v4940_v34 = vld [vmem:[#allocation5 + $0x768] sm:$0xf]  ;;  %v5691_v30 = vld [vmem:[#allocation5 + $0x770] sm:$0xf0] }
 0x30c   :  { %v1639_v33 = vmax.f32 %v1627_v31, 0.0 }
 0x310   :  { %2219 = vmatmul.bf16.gmra.mxu0 %v1647_v58  ;;  %2276 = vmatmul.bf16.gmra.mxu3 %v1647_v58 }
 0x311   :  { %v1628_v4 = vpop.f32.mrf.mxu3 }
 0x312   :  { %v1629_v32 = vadd.f32 %v1628_v4, %v1573_v29  ;;  %v5036_v29 = vld [vmem:[#allocation5 + $0x828] sm:$0xf]  ;;  %v4941_v4 = vor.u32 %v5691_v30, %v4940_v34  ;;  %v5675_v34 = vld [vmem:[#allocation5 + $0x6f4] sm:$0xf] }
 0x314   :  { %v1642_v35 = vmax.f32 %v1629_v32, 0.0  ;;  %v5715_v32 = vld [vmem:[#allocation5 + $0x830] sm:$0xf0]  ;;  %2876 = vmatpush.bf16.msrb.mxu0 %v4941_v4  ;;  %v5673_v4 = vld [vmem:[#allocation5 + $0x6e0] sm:$0xf0] }
 0x316   :  { %v1648_v37 = vpack.c.bf16 %v1642_v35, %v1639_v33 }
 0x318   :  { %2181 = vmatmul.bf16.gmra.mxu2 %v1648_v37  ;;  %2238 = vmatmul.bf16.gmra.mxu1 %v1648_v37 }
 0x320   :  { %2290 = vmatmul.bf16.vlgmr.msra.gmra.mxu0 %v1645_v28 }
 0x328   :  { %2252 = vmatmul.bf16.vlgmr.msrb.gmra.mxu2 %v6110_v63 }
 0x330   :  { %2295 = vmatmul.bf16.gmra.mxu0 %v1648_v37  ;;  %v5037_v37 = vor.u32 %v5715_v32, %v5036_v29  ;;  %v4964_v32 = vld [vmem:[#allocation5 + $0x798] sm:$0xf] }
 0x338   :  { %2257 = vmatmul.bf16.gmra.mxu2 %v6117_v53 }
 0x35d   :  { %v2139_v38 = vpop.f32.mrf.mxu0 }
 0x35f   :  { %v2158_v40 = vpop.f32.mrf.mxu1 }
 0x360   :  { %v2159_v43 = vadd.f32 %v2158_v40, %v2139_v38  ;;  %v4928_v38 = vld [vmem:[#allocation5 + $0x750] sm:$0xf]  ;;  %v5688_v40 = vld [vmem:[#allocation5 + $0x758] sm:$0xf0] }
 0x363   :  { %v2196_v44 = vpop.f32.mrf.mxu3 }
 0x365   :  { %v2141_v46 = vpop.f32.mrf.mxu0 }
 0x367   :  { %v2160_v39 = vpop.f32.mrf.mxu1 }
 0x368   :  { %v2161_v12 = vadd.f32 %v2160_v39, %v2141_v46 }
 0x36b   :  { %v2198_v57 = vpop.f32.mrf.mxu3 }
 0x36d   :  { %v2144_v47 = vpop.f32.mrf.mxu0 }
 0x36f   :  { %v2163_v48 = vpop.f32.mrf.mxu1 }
 0x370   :  { %v2164_v9 = vadd.f32 %v2163_v48, %v2144_v47  ;;  %v4929_v47 = vor.u32 %v5688_v40, %v4928_v38  ;;  %v5712_v48 = vld [vmem:[#allocation5 + $0x818] sm:$0xf0]  ;;  %v4870_v38 = vld [vmem:[#allocation5 + $0x6e4] sm:$0xf0] }
 0x372   :  { %2877 = vmatpush.bf16.msrb.mxu0 %v4929_v47  ;;  %v4952_v47 = vld [vmem:[#allocation5 + $0x780] sm:$0xf] }
 0x373   :  { %v2201_v59 = vpop.f32.mrf.mxu3 }
 0x375   :  { %v2146_v49 = vpop.f32.mrf.mxu0 }
 0x377   :  { %v2165_v51 = vpop.f32.mrf.mxu1 }
 0x378   :  { %v2166_v8 = vadd.f32 %v2165_v51, %v2146_v49  ;;  %v4916_v51 = vld [vmem:[#allocation5 + $0x738] sm:$0xf] }
 0x37b   :  { %v2203_v62 = vpop.f32.mrf.mxu3 }
 0x37d   :  { %v2215_v52 = vpop.f32.mrf.mxu0 }
 0x37e   :  { %v2216_v5 = vadd.f32 %v2215_v52, %v2196_v44  ;;  %v5685_v52 = vld [vmem:[#allocation5 + $0x740] sm:$0xf0] }
 0x383   :  { %v2272_v16 = vpop.f32.mrf.mxu3 }
 0x385   :  { %v2217_v54 = vpop.f32.mrf.mxu0  ;;  %v2234_v56 = vpop.f32.mrf.mxu1 }
 0x386   :  { %v2218_v1 = vadd.f32 %v2217_v54, %v2198_v57  ;;  %v2235_v10 = vadd.f32 %v2234_v56, %v2216_v5  ;;  %v5687_v5 = vld [vmem:[#allocation5 + $0x754] sm:$0xf] }
 0x38b   :  { %v2177_v58 = vpop.f32.mrf.mxu2  ;;  %v2274_v23 = vpop.f32.mrf.mxu3 }
 0x38c   :  { %v2178_v20 = vadd.f32 %v2177_v58, %v2159_v43  ;;  %v5024_v43 = vld [vmem:[#allocation5 + $0x810] sm:$0xf]  ;;  %v5012_v58 = vld [vmem:[#allocation5 + $0x7f8] sm:$0xf] }
 0x38d   :  { %v2236_v36 = vpop.f32.mrf.mxu1  ;;  %v2220_v63 = vpop.f32.mrf.mxu0  ;;  %v5025_v44 = vor.u32 %v5712_v48, %v5024_v43 }
 0x38e   :  { %v2221_v45 = vadd.f32 %v2220_v63, %v2201_v59  ;;  %v2237_v6 = vadd.f32 %v2236_v36, %v2218_v1  ;;  %v5709_v36 = vld [vmem:[#allocation5 + $0x800] sm:$0xf0]  ;;  %v5706_v1 = vld [vmem:[#allocation5 + $0x7e8] sm:$0xf0] }
 0x390   :  { %v2302_v13 = vpack.c.bf16 %v2237_v6, %v2235_v10  ;;  %v4930_v6 = vld [vmem:[#allocation5 + $0x75c] sm:$0xf0]  ;;  %v5684_v10 = vld [vmem:[#allocation5 + $0x73c] sm:$0xf] }
 0x393   :  { %v2179_v60 = vpop.f32.mrf.mxu2  ;;  %v2277_v26 = vpop.f32.mrf.mxu3 }
 0x394   :  { %v2180_v18 = vadd.f32 %v2179_v60, %v2161_v12  ;;  %v5690_v60 = vld [vmem:[#allocation5 + $0x76c] sm:$0xf] }
 0x395   :  { %v2239_v53 = vpop.f32.mrf.mxu1  ;;  %v2222_v61 = vpop.f32.mrf.mxu0 }
 0x396   :  { %v2223_v0 = vadd.f32 %v2222_v61, %v2203_v62  ;;  %v2240_v2 = vadd.f32 %v2239_v53, %v2221_v45  ;;  %v2301_v21 = vpack.c.bf16 %v2180_v18, %v2178_v20  ;;  %v4942_v53 = vld [vmem:[#allocation5 + $0x774] sm:$0xf0]  ;;  %v4917_v61 = vor.u32 %v5685_v52, %v4916_v51  ;;  %v5682_v45 = vld [vmem:[#allocation5 + $0x728] sm:$0xf0]  ;;  %v5679_v18 = vld [vmem:[#allocation5 + $0x710] sm:$0xf0] }
 0x397   :  { %v5013_v62 = vor.u32 %v5709_v36, %v5012_v58  ;;  %v5703_v20 = vld [vmem:[#allocation5 + $0x7d0] sm:$0xf0]  ;;  %v4858_v51 = vld [vmem:[#allocation5 + $0x6cc] sm:$0xf0] }
 0x398   :  { %2878 = vmatpush.bf16.msrb.mxu0 %v4917_v61  ;;  %v5044_v58 = vld [vmem:[#allocation5 + $0x830] sm:$0xf]  ;;  %v5032_v61 = vld [vmem:[#allocation5 + $0x818] sm:$0xf] }
 0x39b   :  { %v2182_v41 = vpop.f32.mrf.mxu2  ;;  %v2279_v33 = vpop.f32.mrf.mxu3 }
 0x39c   :  { %v2183_v14 = vadd.f32 %v2182_v41, %v2164_v9  ;;  %v4904_v41 = vld [vmem:[#allocation5 + $0x720] sm:$0xf] }
 0x39d   :  { %v2241_v42 = vpop.f32.mrf.mxu1  ;;  %v2291_v19 = vpop.f32.mrf.mxu0 }
 0x39e   :  { %v2242_v3 = vadd.f32 %v2241_v42, %v2223_v0  ;;  %v5000_v42 = vld [vmem:[#allocation5 + $0x7e0] sm:$0xf] }
 0x39f   :  { %v5001_v9 = vor.u32 %v5706_v1, %v5000_v42  ;;  %v5739_v42 = vld [vmem:[#allocation5 + $0x8f0] sm:$0xf0]  ;;  %v5708_v1 = vld [vmem:[#allocation5 + $0x7fc] sm:$0xf] }
 0x3a0   :  { %v2305_v7 = vpack.c.bf16 %v2242_v3, %v2240_v2  ;;  %v4945_v2 = vor.u32 %v5690_v60, %v4942_v53  ;;  %v5711_v60 = vld [vmem:[#allocation5 + $0x814] sm:$0xf]  ;;  %v5026_v53 = vld [vmem:[#allocation5 + $0x81c] sm:$0xf0] }
 0x3a2   :  { %2345 = vmatpush.bf16.msra.mxu2 %v2305_v7  ;;  %v4905_v7 = vor.u32 %v5682_v45, %v4904_v41  ;;  %v5713_v41 = vld [vmem:[#allocation5 + $0x820] sm:$0xf0] }
 0x3a3   :  { %v2184_v11 = vpop.f32.mrf.mxu2  ;;  %v5033_v45 = vor.u32 %v5713_v41, %v5032_v61  ;;  %v4966_v61 = vld [vmem:[#allocation5 + $0x7a4] sm:$0xf0]  ;;  %v5086_v41 = vld [vmem:[#allocation5 + $0x894] sm:$0xf0] }
 0x3a4   :  { %v2185_v15 = vadd.f32 %v2184_v11, %v2166_v8  ;;  %v4933_v8 = vor.u32 %v5687_v5, %v4930_v6  ;;  %v4918_v11 = vld [vmem:[#allocation5 + $0x744] sm:$0xf0]  ;;  %2879 = vmatpush.bf16.msrb.mxu0 %v4905_v7  ;;  %v5738_v5 = vld [vmem:[#allocation5 + $0x8ec] sm:$0xf]  ;;  %v5134_v6 = vld [vmem:[#allocation5 + $0x8f4] sm:$0xf0] }
 0x3a5   :  { %v2293_v24 = vpop.f32.mrf.mxu0  ;;  %v4921_v12 = vor.u32 %v5684_v10, %v4918_v11  ;;  %v5710_v10 = vld [vmem:[#allocation5 + $0x808] sm:$0xf0] }
 0x3a6   :  { %v2304_v17 = vpack.c.bf16 %v2185_v15, %v2183_v14  ;;  %2346 = vmatpush.bf16.msra.mxu2 %v2302_v13  ;;  %v5681_v13 = vld [vmem:[#allocation5 + $0x724] sm:$0xf]  ;;  %v4906_v14 = vld [vmem:[#allocation5 + $0x72c] sm:$0xf0] }
 0x3a7   :  { %v4909_v15 = vor.u32 %v5681_v13, %v4906_v14  ;;  %v5736_v13 = vld [vmem:[#allocation5 + $0x8d8] sm:$0xf0]  ;;  %v5705_v14 = vld [vmem:[#allocation5 + $0x7e4] sm:$0xf] }
 0x3a8   :  { %2326 = vmatpush.bf16.msra.mxu1 %v2304_v17  ;;  %v4988_v17 = vld [vmem:[#allocation5 + $0x7c8] sm:$0xf] }
 0x3a9   :  { %4850 = vmatmul.msk.bf16.vlgmr.msra.gmra.mxu2 %vm821_vm0, %v6102_v50 }
 0x3ab   :  { %v2253_v22 = vpop.f32.mrf.mxu2 }
 0x3ac   :  { %2327 = vmatpush.bf16.msra.mxu1 %v2301_v21  ;;  %v2273_v54 = vadd.f32 %v2272_v16, %v2253_v22  ;;  %v4892_v16 = vld [vmem:[#allocation5 + $0x708] sm:$0xf]  ;;  %v5678_v21 = vld [vmem:[#allocation5 + $0x70c] sm:$0xf]  ;;  %v4894_v22 = vld [vmem:[#allocation5 + $0x714] sm:$0xf0] }
 0x3ad   :  { %v2296_v27 = vpop.f32.mrf.mxu0 }
 0x3ae   :  { %v2292_v0 = vadd.f32 %v2291_v19, %v2273_v54  ;;  %v4893_v19 = vor.u32 %v5679_v18, %v4892_v16  ;;  %v5002_v16 = vld [vmem:[#allocation5 + $0x7ec] sm:$0xf0]  ;;  %v5735_v18 = vld [vmem:[#allocation5 + $0x8d4] sm:$0xf] }
 0x3af   :  { %4848 = vmatmul.msk.bf16.vlgmr.msra.gmra.mxu1 %vm821_vm0, %v6102_v50 }
 0x3b0   :  { %2895 = vmatpush.bf16.msrb.mxu1 %v5037_v37  ;;  %2880 = vmatpush.bf16.msrb.mxu0 %v4893_v19  ;;  %v5672_v37 = vld [vmem:[#allocation5 + $0x6dc] sm:$0xf]  ;;  %v5005_v19 = vor.u32 %v5705_v14, %v5002_v16  ;;  %v4954_v16 = vld [vmem:[#allocation5 + $0x78c] sm:$0xf0] }
 0x3b1   :  { %v4873_v43 = vor.u32 %v5672_v37, %v4870_v38  ;;  %v5096_v37 = vld [vmem:[#allocation5 + $0x8a0] sm:$0xf] }
 0x3b3   :  { %v2255_v25 = vpop.f32.mrf.mxu2 }
 0x3b4   :  { %v2275_v46 = vadd.f32 %v2274_v23, %v2255_v25  ;;  %2896 = vmatpush.bf16.msrb.mxu1 %v5025_v44  ;;  %v4989_v23 = vor.u32 %v5703_v20, %v4988_v17  ;;  %v5676_v25 = vld [vmem:[#allocation5 + $0x6f8] sm:$0xf0]  ;;  %v5669_v44 = vld [vmem:[#allocation5 + $0x6c4] sm:$0xf]  ;;  %v5122_v17 = vld [vmem:[#allocation5 + $0x8dc] sm:$0xf0] }
 0x3b5   :  { %v2298_v49 = vpop.f32.mrf.mxu0  ;;  %v4861_v54 = vor.u32 %v5669_v44, %v4858_v51  ;;  %v5125_v20 = vor.u32 %v5735_v18, %v5122_v17  ;;  %v4984_v44 = vld [vmem:[#allocation5 + $0x7b8] sm:$0xf]  ;;  %v5723_v18 = vld [vmem:[#allocation5 + $0x874] sm:$0xf] }
 0x3b6   :  { %v2294_v63 = vadd.f32 %v2293_v24, %v2275_v46  ;;  %v4880_v24 = vld [vmem:[#allocation5 + $0x6f0] sm:$0xf]  ;;  %v4856_v46 = vld [vmem:[#allocation5 + $0x6c0] sm:$0xf] }
 0x3b8   :  { %v2303_v3 = vpack.c.bf16 %v2294_v63, %v2292_v0  ;;  %2897 = vmatpush.bf16.msrb.mxu1 %v5013_v62  ;;  %v5716_v63 = vld [vmem:[#allocation5 + $0x838] sm:$0xf0]  ;;  %v5029_v62 = vor.u32 %v5711_v60, %v5026_v53  ;;  %v5132_v0 = vld [vmem:[#allocation5 + $0x8e8] sm:$0xf] }
 0x3b9   :  { %4851 = vmatmul.msk.bf16.gmra.mxu2 %vm821_vm0, %v6106_v55  ;;  %v5696_v60 = vld [vmem:[#allocation5 + $0x79c] sm:$0xf] }
 0x3bb   :  { %v2258_v28 = vpop.f32.mrf.mxu2 }
 0x3bc   :  { %v2278_v31 = vadd.f32 %v2277_v26, %v2258_v28  ;;  %2898 = vmatpush.bf16.msrb.mxu1 %v5001_v9  ;;  %v4976_v26 = vld [vmem:[#allocation5 + $0x7b0] sm:$0xf]  ;;  %v5700_v28 = vld [vmem:[#allocation5 + $0x7b8] sm:$0xf0]  ;;  %v5137_v9 = vor.u32 %v5738_v5, %v5134_v6  ;;  %v5698_v5 = vld [vmem:[#allocation5 + $0x7a8] sm:$0xf0] }
 0x3bd   :  { %v4977_v30 = vor.u32 %v5700_v28, %v4976_v26  ;;  %v2308_v26 = vld [vmem:[#allocation7 + $0xc0] sm:$0xff]  ;;  %v4990_v28 = vld [vmem:[#allocation5 + $0x7d4] sm:$0xf0] }
 0x3be   :  { %v2297_v56 = vadd.f32 %v2296_v27, %v2278_v31  ;;  %v4881_v27 = vor.u32 %v5676_v25, %v4880_v24  ;;  %v4868_v31 = vld [vmem:[#allocation5 + $0x6d8] sm:$0xf]  ;;  %v5733_v24 = vld [vmem:[#allocation5 + $0x8c0] sm:$0xf0]  ;;  %v5702_v25 = vld [vmem:[#allocation5 + $0x7cc] sm:$0xf] }
 0x3bf   :  { %4849 = vmatmul.msk.bf16.gmra.mxu1 %vm821_vm0, %v6106_v55 }
 0x3c0   :  { %2899 = vmatpush.bf16.msrb.mxu1 %v4989_v23  ;;  %2881 = vmatpush.bf16.msrb.mxu0 %v4881_v27 }
 0x3c3   :  { %v2260_v35 = vpop.f32.mrf.mxu2 }
 0x3c4   :  { %v2280_v39 = vadd.f32 %v2279_v33, %v2260_v35  ;;  %2900 = vmatpush.bf16.msrb.mxu1 %v4977_v30  ;;  %v4869_v33 = vor.u32 %v5673_v4, %v4868_v31  ;;  %v5697_v35 = vld [vmem:[#allocation5 + $0x7a0] sm:$0xf0]  ;;  %v5110_v30 = vld [vmem:[#allocation5 + $0x8c4] sm:$0xf0]  ;;  %v4993_v4 = vor.u32 %v5702_v25, %v4990_v28  ;;  %v5060_v25 = vld [vmem:[#allocation5 + $0x858] sm:$0xf] }
 0x3c5   :  { %v4965_v40 = vor.u32 %v5697_v35, %v4964_v32  ;;  %v5704_v35 = vld [vmem:[#allocation5 + $0x7d8] sm:$0xf0] }
 0x3c6   :  { %v2299_v57 = vadd.f32 %v2298_v49, %v2280_v39  ;;  %2882 = vmatpush.bf16.msrb.mxu0 %v4869_v33  ;;  %v5670_v39 = vld [vmem:[#allocation5 + $0x6c8] sm:$0xf0]  ;;  %v4996_v33 = vld [vmem:[#allocation5 + $0x7d0] sm:$0xf] }
 0x3c7   :  { %v4857_v48 = vor.u32 %v5670_v39, %v4856_v46  ;;  %v5694_v49 = vld [vmem:[#allocation5 + $0x788] sm:$0xf0]  ;;  %v4997_v38 = vor.u32 %v5704_v35, %v4996_v33  ;;  %v4978_v46 = vld [vmem:[#allocation5 + $0x7bc] sm:$0xf0]  ;;  %v2314_v33 = vld [vmem:[#allocation7 + $0xf0] sm:$0xff] }
 0x3c8   :  { %v2306_v59 = vpack.c.bf16 %v2299_v57, %v2297_v56  ;;  %2901 = vmatpush.bf16.msrb.mxu1 %v4965_v40  ;;  %v4953_v52 = vor.u32 %v5694_v49, %v4952_v47  ;;  %v5714_v56 = vld [vmem:[#allocation5 + $0x82c] sm:$0xf]  ;;  %v5038_v57 = vld [vmem:[#allocation5 + $0x834] sm:$0xf0]  ;;  %v5098_v49 = vld [vmem:[#allocation5 + $0x8ac] sm:$0xf0] }
 0x3c9   :  { %v5041_v36 = vor.u32 %v5714_v56, %v5038_v57  ;;  %v5730_v40 = vld [vmem:[#allocation5 + $0x8a8] sm:$0xf0]  ;;  %v2315_v35 = vld [vmem:[#allocation7 + $0xf8] sm:$0xff] }
 0x3ca   :  { %2364 = vmatpush.bf16.msra.mxu3 %v2306_v59  ;;  %2883 = vmatpush.bf16.msrb.mxu0 %v4857_v48  ;;  %v5045_v59 = vor.u32 %v5716_v63, %v5044_v58  ;;  %v5097_v39 = vor.u32 %v5730_v40, %v5096_v37  ;;  %v5729_v48 = vld [vmem:[#allocation5 + $0x8a4] sm:$0xf]  ;;  %v2311_v58 = vld [vmem:[#allocation7 + $0xd8] sm:$0xff]  ;;  %v5084_v63 = vld [vmem:[#allocation5 + $0x888] sm:$0xf] }
 0x3cb   :  { %v5101_v51 = vor.u32 %v5729_v48, %v5098_v49  ;;  %v5048_v37 = vld [vmem:[#allocation5 + $0x840] sm:$0xf]  ;;  %v5717_v40 = vld [vmem:[#allocation5 + $0x844] sm:$0xf] }
 0x3cc   :  { %2902 = vmatpush.bf16.msrb.mxu1 %v4953_v52  ;;  %v5701_v52 = vld [vmem:[#allocation5 + $0x7c0] sm:$0xf0] }
 0x3cd   :  { %v4985_v56 = vor.u32 %v5701_v52, %v4984_v44  ;;  %v5737_v48 = vld [vmem:[#allocation5 + $0x8e0] sm:$0xf0]  ;;  %v2318_v52 = vld [vmem:[#allocation7 + $0x110] sm:$0xff] }
 0x3ce   :  { %2365 = vmatpush.bf16.msra.mxu3 %v2303_v3  ;;  %2952 = vmatpush.bf16.msra.mxu0 %v5041_v36  ;;  %v5014_v3 = vld [vmem:[#allocation5 + $0x804] sm:$0xf0]  ;;  %v2312_v36 = vld [vmem:[#allocation7 + $0xe0] sm:$0xff] }
 0x3cf   :  { %v5017_v7 = vor.u32 %v5708_v1, %v5014_v3  ;;  %v4969_v1 = vor.u32 %v5696_v60, %v4966_v61  ;;  %v4972_v3 = vld [vmem:[#allocation5 + $0x7a0] sm:$0xf] }
 0x3d0   :  { %2971 = vmatpush.bf16.msra.mxu1 %v5137_v9 }
 0x3d1   :  { %4852 = vmatmul.msk.bf16.vlgmr.msra.gmra.mxu3 %vm821_vm0, %v6102_v50  ;;  %v4897_v50 = vor.u32 %v5678_v21, %v4894_v22  ;;  %v5008_v21 = vld [vmem:[#allocation5 + $0x7e8] sm:$0xf]  ;;  %v5707_v22 = vld [vmem:[#allocation5 + $0x7f0] sm:$0xf0] }
 0x3d2   :  { %2933 = vmatpush.bf16.msrb.mxu3 %v4945_v2  ;;  %2953 = vmatpush.bf16.msra.mxu0 %v5029_v62  ;;  %v5133_v2 = vor.u32 %v5739_v42, %v5132_v0  ;;  %v5009_v23 = vor.u32 %v5707_v22, %v5008_v21  ;;  %v5726_v62 = vld [vmem:[#allocation5 + $0x88c] sm:$0xf]  ;;  %v5695_v21 = vld [vmem:[#allocation5 + $0x790] sm:$0xf0] }
 0x3d4   :  { %2914 = vmatpush.bf16.msrb.mxu2 %v5133_v2  ;;  %2972 = vmatpush.bf16.msra.mxu1 %v5125_v20  ;;  %v5089_v2 = vor.u32 %v5726_v62, %v5086_v41  ;;  %v4960_v20 = vld [vmem:[#allocation5 + $0x788] sm:$0xf] }
 0x3d6   :  { %2934 = vmatpush.bf16.msrb.mxu3 %v4933_v8  ;;  %v5020_v8 = vld [vmem:[#allocation5 + $0x800] sm:$0xf]  ;;  %2954 = vmatpush.bf16.msra.mxu0 %v5017_v7 }
 0x3d7   :  { %v5021_v11 = vor.u32 %v5710_v10, %v5020_v8  ;;  %v4973_v8 = vor.u32 %v5698_v5, %v4972_v3  ;;  %v5072_v10 = vld [vmem:[#allocation5 + $0x870] sm:$0xf] }
 0x3da   :  { %2935 = vmatpush.bf16.msrb.mxu3 %v4921_v12  ;;  %v5120_v12 = vld [vmem:[#allocation5 + $0x8d0] sm:$0xf]  ;;  %2955 = vmatpush.bf16.msra.mxu0 %v5005_v19  ;;  %v5074_v19 = vld [vmem:[#allocation5 + $0x87c] sm:$0xf0] }
 0x3de   :  { %2936 = vmatpush.bf16.msrb.mxu3 %v4909_v15  ;;  %v5121_v15 = vor.u32 %v5736_v13, %v5120_v12  ;;  %2956 = vmatpush.bf16.msra.mxu0 %v4993_v4  ;;  %v5693_v12 = vld [vmem:[#allocation5 + $0x784] sm:$0xf] }
 0x3df   :  { %v4957_v17 = vor.u32 %v5693_v12, %v4954_v16  ;;  %v5092_v12 = vld [vmem:[#allocation5 + $0x890] sm:$0xf]  ;;  %v4912_v16 = vld [vmem:[#allocation5 + $0x728] sm:$0xf] }
 0x3e0   :  { %2915 = vmatpush.bf16.msrb.mxu2 %v5121_v15 }
 0x3e1   :  { %4853 = vmatmul.msk.bf16.gmra.mxu3 %vm821_vm0, %v6106_v55  ;;  %v4882_v55 = vld [vmem:[#allocation5 + $0x6fc] sm:$0xf0] }
 0x3e2   :  { %2937 = vmatpush.bf16.msrb.mxu3 %v4897_v50  ;;  %v4885_v29 = vor.u32 %v5675_v34, %v4882_v55  ;;  %v5108_v50 = vld [vmem:[#allocation5 + $0x8b8] sm:$0xf]  ;;  %v5732_v34 = vld [vmem:[#allocation5 + $0x8bc] sm:$0xf] }
 0x3e3   :  { %v5109_v27 = vor.u32 %v5733_v24, %v5108_v50  ;;  %v5113_v32 = vor.u32 %v5732_v34, %v5110_v30  ;;  %v5077_v50 = vor.u32 %v5723_v18, %v5074_v19  ;;  %v4961_v24 = vor.u32 %v5695_v21, %v4960_v20  ;;  %v5062_v34 = vld [vmem:[#allocation5 + $0x864] sm:$0xf0]  ;;  %v5140_v30 = vld [vmem:[#allocation5 + $0x8f0] sm:$0xf]  ;;  %v5683_v18 = vld [vmem:[#allocation5 + $0x730] sm:$0xf0] }
 0x3e4   :  { %v4913_v19 = vor.u32 %v5683_v18, %v4912_v16  ;;  %v5725_v20 = vld [vmem:[#allocation5 + $0x880] sm:$0xf0] }
 0x3e5   :  { %2916 = vmatpush.bf16.msrb.mxu2 %v5109_v27  ;;  %2973 = vmatpush.bf16.msra.mxu1 %v5113_v32  ;;  %v5720_v27 = vld [vmem:[#allocation5 + $0x85c] sm:$0xf] }
 0x3e6   :  { %2938 = vmatpush.bf16.msrb.mxu3 %v4885_v29  ;;  %v2309_v29 = vld [vmem:[#allocation7 + $0xc8] sm:$0xff]  ;;  %v5065_v4 = vor.u32 %v5720_v27, %v5062_v34  ;;  %v5677_v34 = vld [vmem:[#allocation5 + $0x700] sm:$0xf0] }
 0x3e7   :  { %v5722_v27 = vld [vmem:[#allocation5 + $0x868] sm:$0xf0] }
 0x3e9   :  { %2917 = vmatpush.bf16.msrb.mxu2 %v5097_v39  ;;  %2974 = vmatpush.bf16.msra.mxu1 %v5101_v51  ;;  %v5128_v39 = vld [vmem:[#allocation5 + $0x8d8] sm:$0xf]  ;;  %v2317_v51 = vld [vmem:[#allocation7 + $0x108] sm:$0xff] }
 0x3ea   :  { %2939 = vmatpush.bf16.msrb.mxu3 %v4873_v43  ;;  %v5699_v43 = vld [vmem:[#allocation5 + $0x7b4] sm:$0xf] }
 0x3eb   :  { %v4981_v47 = vor.u32 %v5699_v43, %v4978_v46  ;;  %v5050_v46 = vld [vmem:[#allocation5 + $0x84c] sm:$0xf0] }
 0x3ed   :  { %2957 = vmatpush.bf16.msra.mxu0 %v4981_v47  ;;  %2975 = vmatpush.bf16.msra.mxu1 %v5089_v2  ;;  %v5053_v47 = vor.u32 %v5717_v40, %v5050_v46  ;;  %v4864_v46 = vld [vmem:[#allocation5 + $0x6c8] sm:$0xf] }
 0x3ee   :  { %2940 = vmatpush.bf16.msrb.mxu3 %v4861_v54 }
 0x3f1   :  { %2958 = vmatpush.bf16.msra.mxu0 %v4969_v1  ;;  %2976 = vmatpush.bf16.msra.mxu1 %v5077_v50  ;;  %v5104_v1 = vld [vmem:[#allocation5 + $0x8a8] sm:$0xf]  ;;  %v4900_v50 = vld [vmem:[#allocation5 + $0x710] sm:$0xf] }
 0x3f2   :  { %3009 = vmatpush.bf16.msra.mxu3 %v5045_v59  ;;  %v5727_v59 = vld [vmem:[#allocation5 + $0x890] sm:$0xf0] }
 0x3f3   :  { %v5085_v53 = vor.u32 %v5727_v59, %v5084_v63  ;;  %v5734_v63 = vld [vmem:[#allocation5 + $0x8c8] sm:$0xf0] }
 0x3f5   :  { %2918 = vmatpush.bf16.msrb.mxu2 %v5085_v53  ;;  %2959 = vmatpush.bf16.msra.mxu0 %v4957_v17  ;;  %v5080_v17 = vld [vmem:[#allocation5 + $0x878] sm:$0xf] }
 0x3f6   :  { %3010 = vmatpush.bf16.msra.mxu3 %v5033_v45  ;;  %2977 = vmatpush.bf16.msra.mxu1 %v5065_v4  ;;  %v5081_v21 = vor.u32 %v5725_v20, %v5080_v17  ;;  %v5719_v4 = vld [vmem:[#allocation5 + $0x850] sm:$0xf0] }
 0x3fa   :  { %3011 = vmatpush.bf16.msra.mxu3 %v5021_v11  ;;  %v5724_v11 = vld [vmem:[#allocation5 + $0x878] sm:$0xf0]  ;;  %2978 = vmatpush.bf16.msra.mxu1 %v5053_v47 }
 0x3fb   :  { %v5073_v15 = vor.u32 %v5724_v11, %v5072_v10  ;;  %v4924_v10 = vld [vmem:[#allocation5 + $0x740] sm:$0xf]  ;;  %v5686_v11 = vld [vmem:[#allocation5 + $0x748] sm:$0xf0] }
 0x3fd   :  { %2919 = vmatpush.bf16.msrb.mxu2 %v5073_v15 }
 0x3fe   :  { %3012 = vmatpush.bf16.msra.mxu3 %v5009_v23 }
 0x402   :  { %3013 = vmatpush.bf16.msra.mxu3 %v4997_v38  ;;  %v5718_v38 = vld [vmem:[#allocation5 + $0x848] sm:$0xf0] }
 0x403   :  { %v5049_v43 = vor.u32 %v5718_v38, %v5048_v37  ;;  %v4876_v37 = vld [vmem:[#allocation5 + $0x6e0] sm:$0xf]  ;;  %v5674_v38 = vld [vmem:[#allocation5 + $0x6e8] sm:$0xf0] }
 0x406   :  { %3014 = vmatpush.bf16.msra.mxu3 %v4985_v56  ;;  %v4948_v56 = vld [vmem:[#allocation5 + $0x770] sm:$0xf] }
 0x40a   :  { %3015 = vmatpush.bf16.msra.mxu3 %v4973_v8 }
 0x40e   :  { %3016 = vmatpush.bf16.msra.mxu3 %v4961_v24  ;;  %v5680_v24 = vld [vmem:[#allocation5 + $0x718] sm:$0xf0] }
 0x42c   :  { %v2329_v55 = vpop.f32.mrf.mxu1  ;;  %v2348_v31 = vpop.f32.mrf.mxu2 }
 0x42d   :  { %v2330_v54 = vadd.f32 %v2329_v55, %v2308_v26  ;;  %v2349_v57 = vadd.f32 %v2348_v31, %v2309_v29  ;;  %v5721_v26 = vld [vmem:[#allocation5 + $0x860] sm:$0xf0]  ;;  %v5740_v55 = vld [vmem:[#allocation5 + $0x8f8] sm:$0xf0] }
 0x42e   :  { %v5061_v28 = vor.u32 %v5721_v26, %v5060_v25  ;;  %v5141_v32 = vor.u32 %v5740_v55, %v5140_v30  ;;  %v5068_v25 = vld [vmem:[#allocation5 + $0x860] sm:$0xf]  ;;  %v4901_v26 = vor.u32 %v5680_v24, %v4900_v50 }
 0x42f   :  { %v2377_v45 = vmax.f32 %v2330_v54, 0.0  ;;  %v2378_v6 = vmax.f32 %v2349_v57, 0.0  ;;  %v5129_v54 = vor.u32 %v5737_v48, %v5128_v39  ;;  %v5692_v57 = vld [vmem:[#allocation5 + $0x778] sm:$0xf0]  ;;  %v5069_v55 = vor.u32 %v5722_v27, %v5068_v25  ;;  %v5671_v39 = vld [vmem:[#allocation5 + $0x6d0] sm:$0xf0] }
 0x430   :  { %2920 = vmatpush.bf16.msrb.mxu2 %v5061_v28  ;;  %v4888_v28 = vld [vmem:[#allocation5 + $0x6f8] sm:$0xf] }
 0x434   :  { %v2331_v0 = vpop.f32.mrf.mxu1  ;;  %v2350_v42 = vpop.f32.mrf.mxu2  ;;  %2921 = vmatpush.bf16.msrb.mxu2 %v5049_v43  ;;  %v4877_v43 = vor.u32 %v5674_v38, %v4876_v37 }
 0x435   :  { %v2332_v7 = vadd.f32 %v2331_v0, %v2311_v58  ;;  %v2351_v9 = vadd.f32 %v2350_v42, %v2312_v36  ;;  %v5116_v58 = vld [vmem:[#allocation5 + $0x8c0] sm:$0xf]  ;;  %v4949_v36 = vor.u32 %v5692_v57, %v4948_v56  ;;  %v4936_v0 = vld [vmem:[#allocation5 + $0x758] sm:$0xf]  ;;  %v5689_v42 = vld [vmem:[#allocation5 + $0x760] sm:$0xf0] }
 0x436   :  { %v5117_v53 = vor.u32 %v5734_v63, %v5116_v58  ;;  %v4937_v5 = vor.u32 %v5689_v42, %v4936_v0  ;;  %v2316_v56 = vld [vmem:[#allocation7 + $0x100] sm:$0xff]  ;;  %v2319_v57 = vld [vmem:[#allocation7 + $0x118] sm:$0xff] }
 0x437   :  { %v2380_v13 = vmax.f32 %v2332_v7, 0.0  ;;  %v2381_v14 = vmax.f32 %v2351_v9, 0.0 }
 0x438   :  { %2990 = vmatpush.bf16.msra.mxu2 %v4949_v36 }
 0x439   :  { %v6137_v22 = vpack.c.bf16 %v2380_v13, %v2377_v45  ;;  %v6139_v23 = vpack.c.bf16 %v2381_v14, %v2378_v6  ;;  %v5731_v6 = vld [vmem:[#allocation5 + $0x8b0] sm:$0xf0]  ;;  %v4925_v13 = vor.u32 %v5686_v11, %v4924_v10  ;;  %v5728_v14 = vld [vmem:[#allocation5 + $0x898] sm:$0xf0] }
 0x43a   :  { %v5105_v7 = vor.u32 %v5731_v6, %v5104_v1  ;;  %v5093_v15 = vor.u32 %v5728_v14, %v5092_v12 }
 0x43b   :  { %2884 = vmatmul.bf16.vlgmr.msrb.gmra.mxu0 %v6137_v22  ;;  %2903 = vmatmul.bf16.vlgmr.msrb.gmra.mxu1 %v6139_v23 }
 0x43c   :  { %2941 = vmatmul.bf16.vlgmr.msrb.gmra.mxu3 %v6137_v22  ;;  %v2334_v29 = vpop.f32.mrf.mxu1  ;;  %v2353_v31 = vpop.f32.mrf.mxu2  ;;  %3028 = vmatpush.bf16.msrb.mxu0 %v5141_v32  ;;  %v2310_v32 = vld [vmem:[#allocation7 + $0xd0] sm:$0xff] }
 0x43d   :  { %v2335_v49 = vadd.f32 %v2334_v29, %v2314_v33  ;;  %v2354_v44 = vadd.f32 %v2353_v31, %v2315_v35  ;;  %2991 = vmatpush.bf16.msra.mxu2 %v4937_v5  ;;  %v4889_v29 = vor.u32 %v5677_v34, %v4888_v28  ;;  %v5056_v31 = vld [vmem:[#allocation5 + $0x848] sm:$0xf] }
 0x43e   :  { %v5057_v33 = vor.u32 %v5719_v4, %v5056_v31  ;;  %v2313_v35 = vld [vmem:[#allocation7 + $0xe8] sm:$0xff] }
 0x43f   :  { %v2383_v61 = vmax.f32 %v2335_v49, 0.0  ;;  %v2384_v62 = vmax.f32 %v2354_v44, 0.0  ;;  %v4865_v49 = vor.u32 %v5671_v39, %v4864_v46 }
 0x440   :  { %3029 = vmatpush.bf16.msrb.mxu0 %v5129_v54 }
 0x441   :  { %2992 = vmatpush.bf16.msra.mxu2 %v4925_v13 }
 0x444   :  { %v2336_v59 = vpop.f32.mrf.mxu1  ;;  %v2355_v60 = vpop.f32.mrf.mxu2  ;;  %3030 = vmatpush.bf16.msrb.mxu0 %v5117_v53 }
 0x445   :  { %v2337_v41 = vadd.f32 %v2336_v59, %v2317_v51  ;;  %v2356_v45 = vadd.f32 %v2355_v60, %v2318_v52  ;;  %2993 = vmatpush.bf16.msra.mxu2 %v4913_v19 }
 0x447   :  { %v2386_v2 = vmax.f32 %v2337_v41, 0.0  ;;  %v2387_v3 = vmax.f32 %v2356_v45, 0.0 }
 0x448   :  { %3031 = vmatpush.bf16.msrb.mxu0 %v5105_v7 }
 0x449   :  { %v6144_v9 = vpack.c.bf16 %v2386_v2, %v2383_v61  ;;  %v6146_v8 = vpack.c.bf16 %v2387_v3, %v2384_v62  ;;  %2994 = vmatpush.bf16.msra.mxu2 %v4901_v26 }
 0x44b   :  { %2889 = vmatmul.bf16.gmra.mxu0 %v6144_v9  ;;  %2908 = vmatmul.bf16.gmra.mxu1 %v6146_v8 }
 0x44c   :  { %2946 = vmatmul.bf16.gmra.mxu3 %v6144_v9  ;;  %3032 = vmatpush.bf16.msrb.mxu0 %v5093_v15 }
 0x44d   :  { %2995 = vmatpush.bf16.msra.mxu2 %v4889_v29 }
 0x450   :  { %3033 = vmatpush.bf16.msrb.mxu0 %v5081_v21 }
 0x451   :  { %2996 = vmatpush.bf16.msra.mxu2 %v4877_v43 }
 0x454   :  { %v2367_v30 = vpop.f32.mrf.mxu3  ;;  %3034 = vmatpush.bf16.msrb.mxu0 %v5069_v55 }
 0x455   :  { %v2368_v40 = vadd.f32 %v2367_v30, %v2310_v32  ;;  %2997 = vmatpush.bf16.msra.mxu2 %v4865_v49 }
 0x457   :  { %v2379_v44 = vmax.f32 %v2368_v40, 0.0  ;;  %v6157_v40 = vld [vmem:[#allocation8] sm:$0xff] }
 0x458   :  { %3035 = vmatpush.bf16.msrb.mxu0 %v5057_v33 }
 0x45b   :  { %2960 = vmatmul.bf16.vlgmr.msra.gmra.mxu0 %v6139_v23 }
 0x45c   :  { %3017 = vmatmul.bf16.vlgmr.msra.gmra.mxu3 %v6139_v23  ;;  %v2369_v47 = vpop.f32.mrf.mxu3 }
 0x45d   :  { %v2370_v48 = vadd.f32 %v2369_v47, %v2313_v35 }
 0x45f   :  { %v2382_v51 = vmax.f32 %v2370_v48, 0.0 }
 0x461   :  { %v2391_v52 = vpack.c.bf16 %v2382_v51, %v2379_v44  ;;  %v6163_v44 = vld [vmem:[#allocation8 + $0x8] sm:$0xff] }
 0x463   :  { %2922 = vmatmul.bf16.vlgmr.msrb.gmra.mxu2 %v2391_v52  ;;  %2979 = vmatmul.bf16.vlgmr.msra.gmra.mxu1 %v2391_v52 }
 0x464   :  { %v2372_v54 = vpop.f32.mrf.mxu3 }
 0x465   :  { %v2373_v58 = vadd.f32 %v2372_v54, %v2316_v56  ;;  %v5234_v54 = vld [vmem:[#allocation5 + $0x9a8] sm:$0xf]  ;;  %v5763_v56 = vld [vmem:[#allocation5 + $0x9b0] sm:$0xf0] }
 0x467   :  { %v2385_v63 = vmax.f32 %v2373_v58, 0.0 }
 0x46b   :  { %2965 = vmatmul.bf16.gmra.mxu0 %v6146_v8 }
 0x46c   :  { %3022 = vmatmul.bf16.gmra.mxu3 %v6146_v8  ;;  %v2374_v23 = vpop.f32.mrf.mxu3 }
 0x46d   :  { %v2375_v36 = vadd.f32 %v2374_v23, %v2319_v57  ;;  %v5330_v57 = vld [vmem:[#allocation5 + $0xa68] sm:$0xf]  ;;  %v5235_v23 = vor.u32 %v5763_v56, %v5234_v54  ;;  %v5772_v54 = vld [vmem:[#allocation5 + $0x9f8] sm:$0xf0]  ;;  %v5747_v56 = vld [vmem:[#allocation5 + $0x934] sm:$0xf] }
 0x46f   :  { %v2388_v59 = vmax.f32 %v2375_v36, 0.0  ;;  %v5787_v36 = vld [vmem:[#allocation5 + $0xa70] sm:$0xf0]  ;;  %3622 = vmatpush.bf16.msra.mxu0 %v5235_v23 }
 0x471   :  { %v2394_v60 = vpack.c.bf16 %v2388_v59, %v2385_v63 }
 0x473   :  { %2927 = vmatmul.bf16.gmra.mxu2 %v2394_v60  ;;  %2984 = vmatmul.bf16.gmra.mxu1 %v2394_v60 }
 0x47b   :  { %3036 = vmatmul.bf16.vlgmr.msrb.gmra.mxu0 %v2391_v52 }
 0x483   :  { %2998 = vmatmul.bf16.vlgmr.msra.gmra.mxu2 %v6137_v22 }
 0x48b   :  { %3041 = vmatmul.bf16.gmra.mxu0 %v2394_v60  ;;  %v5331_v60 = vor.u32 %v5787_v36, %v5330_v57  ;;  %v5162_v36 = vld [vmem:[#allocation5 + $0x918] sm:$0xf] }
 0x493   :  { %3003 = vmatmul.bf16.gmra.mxu2 %v6144_v9 }
 0x4b8   :  { %v2885_v53 = vpop.f32.mrf.mxu0  ;;  %v2904_v61 = vpop.f32.mrf.mxu1 }
 0x4b9   :  { %v2905_v62 = vadd.f32 %v2904_v61, %v2885_v53  ;;  %v5222_v53 = vld [vmem:[#allocation5 + $0x990] sm:$0xf]  ;;  %v5760_v61 = vld [vmem:[#allocation5 + $0x998] sm:$0xf0] }
 0x4bf   :  { %v2942_v2 = vpop.f32.mrf.mxu3 }
 0x4c0   :  { %v2887_v41 = vpop.f32.mrf.mxu0  ;;  %v2906_v45 = vpop.f32.mrf.mxu1 }
 0x4c1   :  { %v2907_v55 = vadd.f32 %v2906_v45, %v2887_v41 }
 0x4c7   :  { %v2944_v8 = vpop.f32.mrf.mxu3 }
 0x4c8   :  { %v2890_v0 = vpop.f32.mrf.mxu0  ;;  %v2909_v42 = vpop.f32.mrf.mxu1 }
 0x4c9   :  { %v2910_v27 = vadd.f32 %v2909_v42, %v2890_v0  ;;  %v5223_v0 = vor.u32 %v5760_v61, %v5222_v53  ;;  %v5784_v42 = vld [vmem:[#allocation5 + $0xa58] sm:$0xf0]  ;;  %v5769_v53 = vld [vmem:[#allocation5 + $0x9e0] sm:$0xf0] }
 0x4ca   :  { %v5744_v61 = vld [vmem:[#allocation5 + $0x91c] sm:$0xf] }
 0x4cb   :  { %3623 = vmatpush.bf16.msra.mxu0 %v5223_v0  ;;  %v5150_v0 = vld [vmem:[#allocation5 + $0x900] sm:$0xf] }
 0x4cf   :  { %v2947_v12 = vpop.f32.mrf.mxu3 }
 0x4d0   :  { %v2892_v1 = vpop.f32.mrf.mxu0  ;;  %v2911_v3 = vpop.f32.mrf.mxu1 }
 0x4d1   :  { %v2912_v28 = vadd.f32 %v2911_v3, %v2892_v1  ;;  %v5210_v3 = vld [vmem:[#allocation5 + $0x978] sm:$0xf] }
 0x4d7   :  { %v2949_v15 = vpop.f32.mrf.mxu3 }
 0x4d8   :  { %v2961_v5 = vpop.f32.mrf.mxu0 }
 0x4d9   :  { %v2962_v24 = vadd.f32 %v2961_v5, %v2942_v2  ;;  %v5757_v5 = vld [vmem:[#allocation5 + $0x980] sm:$0xf0] }
 0x4df   :  { %v3018_v32 = vpop.f32.mrf.mxu3 }
 0x4e0   :  { %v2963_v6 = vpop.f32.mrf.mxu0  ;;  %v2980_v7 = vpop.f32.mrf.mxu1 }
 0x4e1   :  { %v2964_v20 = vadd.f32 %v2963_v6, %v2944_v8  ;;  %v2981_v34 = vadd.f32 %v2980_v7, %v2962_v24  ;;  %v5759_v24 = vld [vmem:[#allocation5 + $0x994] sm:$0xf] }
 0x4e6   :  { %v2923_v10 = vpop.f32.mrf.mxu2 }
 0x4e7   :  { %v2924_v38 = vadd.f32 %v2923_v10, %v2905_v62  ;;  %v3020_v39 = vpop.f32.mrf.mxu3  ;;  %v5318_v62 = vld [vmem:[#allocation5 + $0xa50] sm:$0xf]  ;;  %v5306_v10 = vld [vmem:[#allocation5 + $0xa38] sm:$0xf] }
 0x4e8   :  { %v2982_v11 = vpop.f32.mrf.mxu1  ;;  %v2966_v22 = vpop.f32.mrf.mxu0  ;;  %v5319_v2 = vor.u32 %v5784_v42, %v5318_v62  ;;  %v5164_v62 = vld [vmem:[#allocation5 + $0x924] sm:$0xf0]  ;;  %v5742_v42 = vld [vmem:[#allocation5 + $0x908] sm:$0xf0] }
 0x4e9   :  { %v2967_v18 = vadd.f32 %v2966_v22, %v2947_v12  ;;  %v2983_v25 = vadd.f32 %v2982_v11, %v2964_v20  ;;  %v5781_v11 = vld [vmem:[#allocation5 + $0xa40] sm:$0xf0]  ;;  %v5778_v20 = vld [vmem:[#allocation5 + $0xa28] sm:$0xf0] }
 0x4eb   :  { %v3048_v29 = vpack.c.bf16 %v2983_v25, %v2981_v34  ;;  %v5224_v25 = vld [vmem:[#allocation5 + $0x99c] sm:$0xf0]  ;;  %v5756_v34 = vld [vmem:[#allocation5 + $0x97c] sm:$0xf] }
 0x4ee   :  { %v2925_v13 = vpop.f32.mrf.mxu2 }
 0x4ef   :  { %v2926_v33 = vadd.f32 %v2925_v13, %v2907_v55  ;;  %v3023_v49 = vpop.f32.mrf.mxu3  ;;  %v5762_v13 = vld [vmem:[#allocation5 + $0x9ac] sm:$0xf] }
 0x4f0   :  { %v2985_v9 = vpop.f32.mrf.mxu1  ;;  %v2968_v14 = vpop.f32.mrf.mxu0 }
 0x4f1   :  { %v2969_v17 = vadd.f32 %v2968_v14, %v2949_v15  ;;  %v2986_v21 = vadd.f32 %v2985_v9, %v2967_v18  ;;  %v3047_v43 = vpack.c.bf16 %v2926_v33, %v2924_v38  ;;  %v5236_v9 = vld [vmem:[#allocation5 + $0x9b4] sm:$0xf0]  ;;  %v5211_v14 = vor.u32 %v5757_v5, %v5210_v3  ;;  %v5754_v18 = vld [vmem:[#allocation5 + $0x968] sm:$0xf0]  ;;  %v5751_v33 = vld [vmem:[#allocation5 + $0x950] sm:$0xf0] }
 0x4f2   :  { %v5307_v15 = vor.u32 %v5781_v11, %v5306_v10  ;;  %v5775_v38 = vld [vmem:[#allocation5 + $0xa10] sm:$0xf0]  ;;  %v5766_v3 = vld [vmem:[#allocation5 + $0x9c8] sm:$0xf0]  ;;  %v5741_v5 = vld [vmem:[#allocation5 + $0x904] sm:$0xf] }
 0x4f3   :  { %3624 = vmatpush.bf16.msra.mxu0 %v5211_v14  ;;  %v5786_v10 = vld [vmem:[#allocation5 + $0xa6c] sm:$0xf]  ;;  %v5332_v11 = vld [vmem:[#allocation5 + $0xa74] sm:$0xf0]  ;;  %v5783_v14 = vld [vmem:[#allocation5 + $0xa54] sm:$0xf] }
 0x4f6   :  { %v2928_v16 = vpop.f32.mrf.mxu2 }
 0x4f7   :  { %v2929_v31 = vadd.f32 %v2928_v16, %v2910_v27  ;;  %v3025_v63 = vpop.f32.mrf.mxu3  ;;  %v5198_v16 = vld [vmem:[#allocation5 + $0x960] sm:$0xf] }
 0x4f8   :  { %v2987_v19 = vpop.f32.mrf.mxu1  ;;  %v3037_v37 = vpop.f32.mrf.mxu0 }
 0x4f9   :  { %v2988_v50 = vadd.f32 %v2987_v19, %v2969_v17  ;;  %v5294_v19 = vld [vmem:[#allocation5 + $0xa20] sm:$0xf] }
 0x4fa   :  { %v5295_v27 = vor.u32 %v5778_v20, %v5294_v19  ;;  %v5426_v20 = vld [vmem:[#allocation5 + $0xb28] sm:$0xf] }
 0x4fb   :  { %v3051_v26 = vpack.c.bf16 %v2988_v50, %v2986_v21  ;;  %v5239_v21 = vor.u32 %v5762_v13, %v5236_v9  ;;  %v5788_v13 = vld [vmem:[#allocation5 + $0xa78] sm:$0xf0] }
 0x4fd   :  { %3091 = vmatpush.bf16.msrb.mxu2 %v3051_v26  ;;  %v5199_v26 = vor.u32 %v5754_v18, %v5198_v16  ;;  %v5326_v16 = vld [vmem:[#allocation5 + $0xa58] sm:$0xf] }
 0x4fe   :  { %v2930_v30 = vpop.f32.mrf.mxu2 }
 0x4ff   :  { %v2931_v4 = vadd.f32 %v2930_v30, %v2912_v28  ;;  %v5227_v28 = vor.u32 %v5759_v24, %v5224_v25  ;;  %v5212_v30 = vld [vmem:[#allocation5 + $0x984] sm:$0xf0]  ;;  %3625 = vmatpush.bf16.msra.mxu0 %v5199_v26  ;;  %v5810_v26 = vld [vmem:[#allocation5 + $0xb2c] sm:$0xf] }
 0x500   :  { %v3039_v47 = vpop.f32.mrf.mxu0  ;;  %v5215_v55 = vor.u32 %v5756_v34, %v5212_v30  ;;  %v5308_v25 = vld [vmem:[#allocation5 + $0xa44] sm:$0xf0]  ;;  %v5314_v30 = vld [vmem:[#allocation5 + $0xa40] sm:$0xf] }
 0x501   :  { %v3050_v35 = vpack.c.bf16 %v2931_v4, %v2929_v31  ;;  %3092 = vmatpush.bf16.msrb.mxu2 %v3048_v29  ;;  %v5753_v29 = vld [vmem:[#allocation5 + $0x964] sm:$0xf]  ;;  %v5200_v31 = vld [vmem:[#allocation5 + $0x96c] sm:$0xf0] }
 0x502   :  { %v5203_v4 = vor.u32 %v5753_v29, %v5200_v31  ;;  %v5414_v31 = vld [vmem:[#allocation5 + $0xb10] sm:$0xf] }
 0x503   :  { %3072 = vmatpush.bf16.msrb.mxu1 %v3050_v35  ;;  %v5282_v35 = vld [vmem:[#allocation5 + $0xa08] sm:$0xf] }
 0x504   :  { %5144 = vmatmul.msk.bf16.vlgmr.msrb.gmra.mxu2 %vm821_vm0, %v6157_v40 }
 0x506   :  { %v2999_v46 = vpop.f32.mrf.mxu2 }
 0x507   :  { %3073 = vmatpush.bf16.msrb.mxu1 %v3047_v43  ;;  %v3019_v6 = vadd.f32 %v3018_v32, %v2999_v46  ;;  %v5186_v32 = vld [vmem:[#allocation5 + $0x948] sm:$0xf]  ;;  %v5750_v43 = vld [vmem:[#allocation5 + $0x94c] sm:$0xf]  ;;  %v5188_v46 = vld [vmem:[#allocation5 + $0x954] sm:$0xf0] }
 0x508   :  { %v3042_v51 = vpop.f32.mrf.mxu0 }
 0x509   :  { %v3038_v17 = vadd.f32 %v3037_v37, %v3019_v6  ;;  %v5187_v37 = vor.u32 %v5751_v33, %v5186_v32  ;;  %v5152_v6 = vld [vmem:[#allocation5 + $0x90c] sm:$0xf0]  ;;  %v5777_v32 = vld [vmem:[#allocation5 + $0xa24] sm:$0xf] }
 0x50a   :  { %5142 = vmatmul.msk.bf16.vlgmr.msrb.gmra.mxu1 %vm821_vm0, %v6157_v40 }
 0x50b   :  { %3641 = vmatpush.bf16.msra.mxu1 %v5331_v60  ;;  %3626 = vmatpush.bf16.msra.mxu0 %v5187_v37  ;;  %v5807_v37 = vld [vmem:[#allocation5 + $0xb14] sm:$0xf] }
 0x50e   :  { %v3001_v48 = vpop.f32.mrf.mxu2 }
 0x50f   :  { %v3021_v41 = vadd.f32 %v3020_v39, %v3001_v48  ;;  %3642 = vmatpush.bf16.msra.mxu1 %v5319_v2  ;;  %v5283_v39 = vor.u32 %v5775_v38, %v5282_v35  ;;  %v5174_v48 = vld [vmem:[#allocation5 + $0x930] sm:$0xf]  ;;  %v5151_v2 = vor.u32 %v5742_v42, %v5150_v0  ;;  %v5416_v38 = vld [vmem:[#allocation5 + $0xb1c] sm:$0xf0]  ;;  %v5802_v0 = vld [vmem:[#allocation5 + $0xae8] sm:$0xf0] }
 0x510   :  { %v3044_v1 = vpop.f32.mrf.mxu0  ;;  %v5296_v35 = vld [vmem:[#allocation5 + $0xa2c] sm:$0xf0]  ;;  %v5771_v42 = vld [vmem:[#allocation5 + $0x9f4] sm:$0xf] }
 0x511   :  { %v3040_v22 = vadd.f32 %v3039_v47, %v3021_v41  ;;  %v5191_v47 = vor.u32 %v5750_v43, %v5188_v46  ;;  %v5299_v43 = vor.u32 %v5777_v32, %v5296_v35  ;;  %v5419_v46 = vor.u32 %v5807_v37, %v5416_v38  ;;  %v5765_v32 = vld [vmem:[#allocation5 + $0x9c4] sm:$0xf]  ;;  %v5248_v38 = vld [vmem:[#allocation5 + $0x9cc] sm:$0xf0] }
 0x513   :  { %v3049_v50 = vpack.c.bf16 %v3040_v22, %v3038_v17  ;;  %3643 = vmatpush.bf16.msra.mxu1 %v5307_v15  ;;  %v5338_v22 = vld [vmem:[#allocation5 + $0xa70] sm:$0xf]  ;;  %v5320_v15 = vld [vmem:[#allocation5 + $0xa5c] sm:$0xf0]  ;;  %v5785_v17 = vld [vmem:[#allocation5 + $0xa60] sm:$0xf0] }
 0x514   :  { %5145 = vmatmul.msk.bf16.gmra.mxu2 %vm821_vm0, %v6163_v44  ;;  %v5339_v9 = vor.u32 %v5788_v13, %v5338_v22  ;;  %v5323_v18 = vor.u32 %v5783_v14, %v5320_v15  ;;  %v5327_v19 = vor.u32 %v5785_v17, %v5326_v16  ;;  %v3057_v13 = vld [vmem:[#allocation7 + $0x138] sm:$0xff]  ;;  %v5378_v14 = vld [vmem:[#allocation5 + $0xac8] sm:$0xf]  ;;  %v5799_v15 = vld [vmem:[#allocation5 + $0xad0] sm:$0xf0] }
 0x515   :  { %v5768_v16 = vld [vmem:[#allocation5 + $0x9dc] sm:$0xf]  ;;  %v5260_v17 = vld [vmem:[#allocation5 + $0x9e4] sm:$0xf0] }
 0x516   :  { %v3004_v52 = vpop.f32.mrf.mxu2 }
 0x517   :  { %v3024_v58 = vadd.f32 %v3023_v49, %v3004_v52  ;;  %3644 = vmatpush.bf16.msra.mxu1 %v5295_v27  ;;  %v5748_v49 = vld [vmem:[#allocation5 + $0x938] sm:$0xf0]  ;;  %v5428_v27 = vld [vmem:[#allocation5 + $0xb34] sm:$0xf0] }
 0x518   :  { %v5175_v52 = vor.u32 %v5748_v49, %v5174_v48  ;;  %v5431_v34 = vor.u32 %v5810_v26, %v5428_v27  ;;  %v5402_v49 = vld [vmem:[#allocation5 + $0xaf8] sm:$0xf]  ;;  %v5266_v27 = vld [vmem:[#allocation5 + $0x9e0] sm:$0xf] }
 0x519   :  { %v3043_v7 = vadd.f32 %v3042_v51, %v3024_v58  ;;  %v5270_v51 = vld [vmem:[#allocation5 + $0x9f0] sm:$0xf]  ;;  %v5176_v58 = vld [vmem:[#allocation5 + $0x93c] sm:$0xf0] }
 0x51a   :  { %5143 = vmatmul.msk.bf16.gmra.mxu1 %vm821_vm0, %v6163_v44  ;;  %v5271_v57 = vor.u32 %v5772_v54, %v5270_v51  ;;  %3627 = vmatpush.bf16.msra.mxu0 %v5175_v52  ;;  %v5179_v23 = vor.u32 %v5747_v56, %v5176_v58  ;;  %v5805_v51 = vld [vmem:[#allocation5 + $0xb00] sm:$0xf0]  ;;  %v5774_v52 = vld [vmem:[#allocation5 + $0xa0c] sm:$0xf]  ;;  %v5804_v58 = vld [vmem:[#allocation5 + $0xafc] sm:$0xf] }
 0x51b   :  { %3645 = vmatpush.bf16.msra.mxu1 %v5283_v39  ;;  %v5302_v39 = vld [vmem:[#allocation5 + $0xa28] sm:$0xf]  ;;  %v3054_v54 = vld [vmem:[#allocation7 + $0x120] sm:$0xff]  ;;  %v5403_v56 = vor.u32 %v5805_v51, %v5402_v49 }
 0x51e   :  { %v3006_v59 = vpop.f32.mrf.mxu2 }
 0x51f   :  { %v3026_v45 = vadd.f32 %v3025_v63, %v3006_v59  ;;  %3646 = vmatpush.bf16.msra.mxu1 %v5271_v57  ;;  %v5745_v63 = vld [vmem:[#allocation5 + $0x920] sm:$0xf0]  ;;  %v5258_v59 = vld [vmem:[#allocation5 + $0x9d8] sm:$0xf] }
 0x520   :  { %v5163_v60 = vor.u32 %v5745_v63, %v5162_v36  ;;  %v5259_v41 = vor.u32 %v5769_v53, %v5258_v59  ;;  %v5284_v57 = vld [vmem:[#allocation5 + $0xa14] sm:$0xf0]  ;;  %v3055_v63 = vld [vmem:[#allocation7 + $0x128] sm:$0xff] }
 0x521   :  { %v3045_v8 = vadd.f32 %v3044_v1, %v3026_v45  ;;  %v5167_v45 = vor.u32 %v5744_v61, %v5164_v62  ;;  %v5246_v1 = vld [vmem:[#allocation5 + $0x9c0] sm:$0xf]  ;;  %v5290_v61 = vld [vmem:[#allocation5 + $0xa10] sm:$0xf]  ;;  %v5776_v62 = vld [vmem:[#allocation5 + $0xa18] sm:$0xf0] }
 0x522   :  { %3628 = vmatpush.bf16.msra.mxu0 %v5163_v60  ;;  %v5287_v60 = vor.u32 %v5774_v52, %v5284_v57  ;;  %v5793_v57 = vld [vmem:[#allocation5 + $0xaa0] sm:$0xf0] }
 0x523   :  { %v3052_v12 = vpack.c.bf16 %v3045_v8, %v3043_v7  ;;  %3647 = vmatpush.bf16.msra.mxu1 %v5259_v41  ;;  %v5247_v7 = vor.u32 %v5766_v3, %v5246_v1  ;;  %v5155_v8 = vor.u32 %v5741_v5, %v5152_v6  ;;  %v5390_v41 = vld [vmem:[#allocation5 + $0xae0] sm:$0xf]  ;;  %v5801_v5 = vld [vmem:[#allocation5 + $0xae4] sm:$0xf]  ;;  %v5392_v6 = vld [vmem:[#allocation5 + $0xaec] sm:$0xf0] }
 0x524   :  { %v5272_v1 = vld [vmem:[#allocation5 + $0x9fc] sm:$0xf0] }
 0x525   :  { %3110 = vmatpush.bf16.msrb.mxu3 %v3052_v12  ;;  %v5335_v12 = vor.u32 %v5786_v10, %v5332_v11  ;;  %v5275_v3 = vor.u32 %v5771_v42, %v5272_v1  ;;  %v5773_v10 = vld [vmem:[#allocation5 + $0xa00] sm:$0xf0]  ;;  %v5790_v42 = vld [vmem:[#allocation5 + $0xa88] sm:$0xf0] }
 0x526   :  { %3629 = vmatpush.bf16.msra.mxu0 %v5151_v2  ;;  %v5391_v2 = vor.u32 %v5802_v0, %v5390_v41  ;;  %v3060_v41 = vld [vmem:[#allocation7 + $0x150] sm:$0xff]  ;;  %v5342_v0 = vld [vmem:[#allocation5 + $0xa80] sm:$0xf]  ;;  %v5789_v1 = vld [vmem:[#allocation5 + $0xa84] sm:$0xf] }
 0x527   :  { %3648 = vmatpush.bf16.msra.mxu1 %v5247_v7  ;;  %v5278_v7 = vld [vmem:[#allocation5 + $0x9f8] sm:$0xf] }
 0x528   :  { %v5279_v22 = vor.u32 %v5773_v10, %v5278_v7  ;;  %v5809_v7 = vld [vmem:[#allocation5 + $0xb20] sm:$0xf0] }
 0x529   :  { %3111 = vmatpush.bf16.msrb.mxu3 %v3049_v50  ;;  %v5780_v50 = vld [vmem:[#allocation5 + $0xa3c] sm:$0xf] }
 0x52a   :  { %3698 = vmatpush.bf16.msrb.mxu0 %v5335_v12 }
 0x52b   :  { %3717 = vmatpush.bf16.msrb.mxu1 %v5431_v34 }
 0x52c   :  { %5146 = vmatmul.msk.bf16.vlgmr.msrb.gmra.mxu3 %vm821_vm0, %v6157_v40 }
 0x52d   :  { %3679 = vmatpush.bf16.msra.mxu3 %v5239_v21  ;;  %v5811_v21 = vld [vmem:[#allocation5 + $0xb30] sm:$0xf0] }
 0x52e   :  { %3699 = vmatpush.bf16.msrb.mxu0 %v5323_v18  ;;  %v5427_v24 = vor.u32 %v5811_v21, %v5426_v20  ;;  %v5379_v18 = vor.u32 %v5799_v15, %v5378_v14  ;;  %v5380_v20 = vld [vmem:[#allocation5 + $0xad4] sm:$0xf0]  ;;  %v5410_v14 = vld [vmem:[#allocation5 + $0xb00] sm:$0xf] }
 0x52f   :  { %3718 = vmatpush.bf16.msrb.mxu1 %v5419_v46  ;;  %v5251_v46 = vor.u32 %v5765_v32, %v5248_v38  ;;  %v5218_v32 = vld [vmem:[#allocation5 + $0x980] sm:$0xf]  ;;  %v5800_v38 = vld [vmem:[#allocation5 + $0xad8] sm:$0xf0] }
 0x530   :  { %3660 = vmatpush.bf16.msra.mxu2 %v5427_v24 }
 0x531   :  { %3680 = vmatpush.bf16.msra.mxu3 %v5227_v28  ;;  %v5311_v28 = vor.u32 %v5780_v50, %v5308_v25  ;;  %v5263_v25 = vor.u32 %v5768_v16, %v5260_v17  ;;  %v5806_v16 = vld [vmem:[#allocation5 + $0xb08] sm:$0xf0] }
 0x533   :  { %3700 = vmatpush.bf16.msrb.mxu0 %v5311_v28  ;;  %v5770_v28 = vld [vmem:[#allocation5 + $0x9e8] sm:$0xf0] }
 0x535   :  { %3681 = vmatpush.bf16.msra.mxu3 %v5215_v55  ;;  %v5782_v55 = vld [vmem:[#allocation5 + $0xa48] sm:$0xf0] }
 0x536   :  { %v5315_v29 = vor.u32 %v5782_v55, %v5314_v30 }
 0x537   :  { %3701 = vmatpush.bf16.msrb.mxu0 %v5299_v43  ;;  %v5795_v43 = vld [vmem:[#allocation5 + $0xab4] sm:$0xf] }
 0x539   :  { %3682 = vmatpush.bf16.msra.mxu3 %v5203_v4  ;;  %v5808_v4 = vld [vmem:[#allocation5 + $0xb18] sm:$0xf0] }
 0x53a   :  { %v5415_v33 = vor.u32 %v5808_v4, %v5414_v31  ;;  %v5366_v31 = vld [vmem:[#allocation5 + $0xab0] sm:$0xf]  ;;  %v5796_v4 = vld [vmem:[#allocation5 + $0xab8] sm:$0xf0] }
 0x53b   :  { %3702 = vmatpush.bf16.msrb.mxu0 %v5287_v60  ;;  %v5367_v37 = vor.u32 %v5796_v4, %v5366_v31 }
 0x53c   :  { %5147 = vmatmul.msk.bf16.gmra.mxu3 %vm821_vm0, %v6163_v44  ;;  %3661 = vmatpush.bf16.msra.mxu2 %v5415_v33 }
 0x53d   :  { %3683 = vmatpush.bf16.msra.mxu3 %v5191_v47  ;;  %v5779_v47 = vld [vmem:[#allocation5 + $0xa30] sm:$0xf0] }
 0x53e   :  { %v5303_v48 = vor.u32 %v5779_v47, %v5302_v39  ;;  %v5368_v39 = vld [vmem:[#allocation5 + $0xabc] sm:$0xf0]  ;;  %v5254_v47 = vld [vmem:[#allocation5 + $0x9c8] sm:$0xf] }
 0x53f   :  { %3703 = vmatpush.bf16.msrb.mxu0 %v5275_v3  ;;  %v5371_v52 = vor.u32 %v5795_v43, %v5368_v39  ;;  %v5344_v3 = vld [vmem:[#allocation5 + $0xa8c] sm:$0xf0]  ;;  %v5755_v39 = vld [vmem:[#allocation5 + $0x970] sm:$0xf0] }
 0x540   :  { %3662 = vmatpush.bf16.msra.mxu2 %v5403_v56  ;;  %v5354_v56 = vld [vmem:[#allocation5 + $0xa98] sm:$0xf] }
 0x541   :  { %3684 = vmatpush.bf16.msra.mxu3 %v5179_v23  ;;  %v5404_v23 = vld [vmem:[#allocation5 + $0xb04] sm:$0xf0] }
 0x542   :  { %v5407_v53 = vor.u32 %v5804_v58, %v5404_v23  ;;  %v5792_v58 = vld [vmem:[#allocation5 + $0xa9c] sm:$0xf]  ;;  %v5355_v23 = vor.u32 %v5793_v57, %v5354_v56  ;;  %v5194_v56 = vld [vmem:[#allocation5 + $0x950] sm:$0xf] }
 0x543   :  { %3704 = vmatpush.bf16.msrb.mxu0 %v5263_v25  ;;  %v5230_v25 = vld [vmem:[#allocation5 + $0x998] sm:$0xf]  ;;  %v5752_v57 = vld [vmem:[#allocation5 + $0x958] sm:$0xf0] }
 0x544   :  { %3719 = vmatpush.bf16.msrb.mxu1 %v5407_v53  ;;  %3663 = vmatpush.bf16.msra.mxu2 %v5391_v2  ;;  %v5343_v2 = vor.u32 %v5790_v42, %v5342_v0  ;;  %v3059_v42 = vld [vmem:[#allocation7 + $0x148] sm:$0xff] }
 0x545   :  { %3685 = vmatpush.bf16.msra.mxu3 %v5167_v45  ;;  %v5291_v45 = vor.u32 %v5776_v62, %v5290_v61 }
 0x547   :  { %3705 = vmatpush.bf16.msrb.mxu0 %v5251_v46  ;;  %v5206_v46 = vld [vmem:[#allocation5 + $0x968] sm:$0xf] }
 0x548   :  { %3664 = vmatpush.bf16.msra.mxu2 %v5379_v18 }
 0x549   :  { %3686 = vmatpush.bf16.msra.mxu3 %v5155_v8  ;;  %v5395_v8 = vor.u32 %v5801_v5, %v5392_v6  ;;  %v5422_v5 = vld [vmem:[#allocation5 + $0xb18] sm:$0xf]  ;;  %v5347_v6 = vor.u32 %v5789_v1, %v5344_v3  ;;  %v5170_v1 = vld [vmem:[#allocation5 + $0x920] sm:$0xf] }
 0x54b   :  { %3720 = vmatpush.bf16.msrb.mxu1 %v5395_v8 }
 0x54c   :  { %3665 = vmatpush.bf16.msra.mxu2 %v5367_v37 }
 0x54d   :  { %3755 = vmatpush.bf16.msrb.mxu3 %v5339_v9  ;;  %v3058_v9 = vld [vmem:[#allocation7 + $0x140] sm:$0xff] }
 0x550   :  { %3666 = vmatpush.bf16.msra.mxu2 %v5355_v23  ;;  %v5195_v23 = vor.u32 %v5752_v57, %v5194_v56 }
 0x551   :  { %3756 = vmatpush.bf16.msrb.mxu3 %v5327_v19  ;;  %v5798_v19 = vld [vmem:[#allocation5 + $0xacc] sm:$0xf] }
 0x552   :  { %v5383_v26 = vor.u32 %v5798_v19, %v5380_v20  ;;  %v5411_v19 = vor.u32 %v5806_v16, %v5410_v14  ;;  %v3062_v14 = vld [vmem:[#allocation7 + $0x160] sm:$0xff] }
 0x554   :  { %3721 = vmatpush.bf16.msrb.mxu1 %v5383_v26  ;;  %3667 = vmatpush.bf16.msra.mxu2 %v5343_v2  ;;  %v5761_v26 = vld [vmem:[#allocation5 + $0x9a0] sm:$0xf0]  ;;  %v5746_v2 = vld [vmem:[#allocation5 + $0x928] sm:$0xf0] }
 0x555   :  { %3757 = vmatpush.bf16.msrb.mxu3 %v5315_v29  ;;  %v5267_v29 = vor.u32 %v5770_v28, %v5266_v27  ;;  %v5398_v27 = vld [vmem:[#allocation5 + $0xae8] sm:$0xf] }
 0x558   :  { %3722 = vmatpush.bf16.msrb.mxu1 %v5371_v52  ;;  %v5797_v52 = vld [vmem:[#allocation5 + $0xac0] sm:$0xf0] }
 0x559   :  { %3758 = vmatpush.bf16.msrb.mxu3 %v5303_v48  ;;  %v5767_v48 = vld [vmem:[#allocation5 + $0x9d0] sm:$0xf0] }
 0x55d   :  { %3759 = vmatpush.bf16.msrb.mxu3 %v5291_v45  ;;  %v3061_v45 = vld [vmem:[#allocation7 + $0x158] sm:$0xff] }
 0x561   :  { %3760 = vmatpush.bf16.msrb.mxu3 %v5279_v22  ;;  %v3064_v22 = vld [vmem:[#allocation7 + $0x170] sm:$0xff] }
 0x565   :  { %3761 = vmatpush.bf16.msrb.mxu3 %v5267_v29 }
 0x587   :  { %v3075_v36 = vpop.f32.mrf.mxu1  ;;  %v3094_v59 = vpop.f32.mrf.mxu2 }
 0x588   :  { %v3076_v11 = vadd.f32 %v3075_v36, %v3054_v54  ;;  %v3095_v12 = vadd.f32 %v3094_v59, %v3055_v63  ;;  %v5255_v54 = vor.u32 %v5767_v48, %v5254_v47  ;;  %v5356_v36 = vld [vmem:[#allocation5 + $0xaa4] sm:$0xf0]  ;;  %v5434_v63 = vld [vmem:[#allocation5 + $0xb30] sm:$0xf]  ;;  %v5812_v59 = vld [vmem:[#allocation5 + $0xb38] sm:$0xf0]  ;;  %v5207_v48 = vor.u32 %v5755_v39, %v5206_v46 }
 0x589   :  { %v5359_v61 = vor.u32 %v5792_v58, %v5356_v36  ;;  %v5435_v62 = vor.u32 %v5812_v59, %v5434_v63  ;;  %v5374_v47 = vld [vmem:[#allocation5 + $0xab8] sm:$0xf]  ;;  %v5362_v58 = vld [vmem:[#allocation5 + $0xaa0] sm:$0xf]  ;;  %v5794_v36 = vld [vmem:[#allocation5 + $0xaa8] sm:$0xf0] }
 0x58a   :  { %v3123_v21 = vmax.f32 %v3076_v11, 0.0  ;;  %v3124_v34 = vmax.f32 %v3095_v12, 0.0  ;;  %3762 = vmatpush.bf16.msrb.mxu3 %v5255_v54  ;;  %v3063_v11 = vld [vmem:[#allocation7 + $0x168] sm:$0xff]  ;;  %v5423_v12 = vor.u32 %v5809_v7, %v5422_v5  ;;  %v5375_v54 = vor.u32 %v5797_v52, %v5374_v47  ;;  %v5182_v63 = vld [vmem:[#allocation5 + $0x938] sm:$0xf] }
 0x58b   :  { %3723 = vmatpush.bf16.msrb.mxu1 %v5359_v61  ;;  %v5749_v59 = vld [vmem:[#allocation5 + $0x940] sm:$0xf0]  ;;  %v5171_v5 = vor.u32 %v5746_v2, %v5170_v1  ;;  %v5743_v7 = vld [vmem:[#allocation5 + $0x910] sm:$0xf0] }
 0x58c   :  { %v5183_v61 = vor.u32 %v5749_v59, %v5182_v63 }
 0x58f   :  { %v3077_v50 = vpop.f32.mrf.mxu1  ;;  %v3096_v24 = vpop.f32.mrf.mxu2  ;;  %3724 = vmatpush.bf16.msrb.mxu1 %v5347_v6  ;;  %v5158_v6 = vld [vmem:[#allocation5 + $0x908] sm:$0xf] }
 0x590   :  { %v3078_v30 = vadd.f32 %v3077_v50, %v3057_v13  ;;  %v3097_v55 = vadd.f32 %v3096_v24, %v3058_v9  ;;  %v5242_v13 = vld [vmem:[#allocation5 + $0x9b0] sm:$0xf]  ;;  %v5764_v9 = vld [vmem:[#allocation5 + $0x9b8] sm:$0xf0] }
 0x591   :  { %v5243_v15 = vor.u32 %v5764_v9, %v5242_v13 }
 0x592   :  { %v3126_v33 = vmax.f32 %v3078_v30, 0.0  ;;  %v3127_v35 = vmax.f32 %v3097_v55, 0.0  ;;  %v5231_v30 = vor.u32 %v5761_v26, %v5230_v25  ;;  %v5803_v55 = vld [vmem:[#allocation5 + $0xaf0] sm:$0xf0] }
 0x593   :  { %3736 = vmatpush.bf16.msrb.mxu2 %v5243_v15  ;;  %v5399_v29 = vor.u32 %v5803_v55, %v5398_v27  ;;  %v3065_v15 = vld [vmem:[#allocation7 + $0x178] sm:$0xff] }
 0x594   :  { %v6173_v49 = vpack.c.bf16 %v3126_v33, %v3123_v21  ;;  %v6175_v51 = vpack.c.bf16 %v3127_v35, %v3124_v34  ;;  %v5758_v33 = vld [vmem:[#allocation5 + $0x988] sm:$0xf0]  ;;  %v5386_v35 = vld [vmem:[#allocation5 + $0xad0] sm:$0xf] }
 0x595   :  { %v5219_v37 = vor.u32 %v5758_v33, %v5218_v32  ;;  %v5387_v43 = vor.u32 %v5800_v38, %v5386_v35 }
 0x596   :  { %3630 = vmatmul.bf16.vlgmr.msra.gmra.mxu0 %v6173_v49  ;;  %3649 = vmatmul.bf16.vlgmr.msra.gmra.mxu1 %v6175_v51 }
 0x597   :  { %3687 = vmatmul.bf16.vlgmr.msra.gmra.mxu3 %v6173_v49  ;;  %v3080_v60 = vpop.f32.mrf.mxu1  ;;  %v3099_v53 = vpop.f32.mrf.mxu2  ;;  %3774 = vmatpush.bf16.msra.mxu0 %v5435_v62  ;;  %v5350_v62 = vld [vmem:[#allocation5 + $0xa88] sm:$0xf] }
 0x598   :  { %v3081_v8 = vadd.f32 %v3080_v60, %v3060_v41  ;;  %v3100_v10 = vadd.f32 %v3099_v53, %v3061_v45  ;;  %3737 = vmatpush.bf16.msrb.mxu2 %v5231_v30  ;;  %v5363_v53 = vor.u32 %v5794_v36, %v5362_v58  ;;  %v5791_v41 = vld [vmem:[#allocation5 + $0xa90] sm:$0xf0] }
 0x599   :  { %v3056_v45 = vld [vmem:[#allocation7 + $0x130] sm:$0xff]  ;;  %v5351_v0 = vor.u32 %v5791_v41, %v5350_v62 }
 0x59a   :  { %v3129_v20 = vmax.f32 %v3081_v8, 0.0  ;;  %v3130_v21 = vmax.f32 %v3100_v10, 0.0 }
 0x59b   :  { %3775 = vmatpush.bf16.msra.mxu0 %v5423_v12 }
 0x59c   :  { %3738 = vmatpush.bf16.msrb.mxu2 %v5219_v37 }
 0x59f   :  { %v3082_v18 = vpop.f32.mrf.mxu1  ;;  %v3101_v17 = vpop.f32.mrf.mxu2  ;;  %3776 = vmatpush.bf16.msra.mxu0 %v5411_v19 }
 0x5a0   :  { %v3083_v50 = vadd.f32 %v3082_v18, %v3063_v11  ;;  %v3102_v24 = vadd.f32 %v3101_v17, %v3064_v22  ;;  %3739 = vmatpush.bf16.msrb.mxu2 %v5207_v48  ;;  %v5159_v11 = vor.u32 %v5743_v7, %v5158_v6 }
 0x5a2   :  { %v3132_v28 = vmax.f32 %v3083_v50, 0.0  ;;  %v3133_v34 = vmax.f32 %v3102_v24, 0.0 }
 0x5a3   :  { %3777 = vmatpush.bf16.msra.mxu0 %v5399_v29 }
 0x5a4   :  { %v6180_v31 = vpack.c.bf16 %v3132_v28, %v3129_v20  ;;  %v6182_v4 = vpack.c.bf16 %v3133_v34, %v3130_v21  ;;  %3740 = vmatpush.bf16.msrb.mxu2 %v5195_v23 }
 0x5a6   :  { %3635 = vmatmul.bf16.gmra.mxu0 %v6180_v31  ;;  %3654 = vmatmul.bf16.gmra.mxu1 %v6182_v4 }
 0x5a7   :  { %3692 = vmatmul.bf16.gmra.mxu3 %v6180_v31  ;;  %3778 = vmatpush.bf16.msra.mxu0 %v5387_v43 }
 0x5a8   :  { %3741 = vmatpush.bf16.msrb.mxu2 %v5183_v61 }
 0x5ab   :  { %3779 = vmatpush.bf16.msra.mxu0 %v5375_v54 }
 0x5ac   :  { %3742 = vmatpush.bf16.msrb.mxu2 %v5171_v5 }
 0x5af   :  { %v3113_v60 = vpop.f32.mrf.mxu3  ;;  %3780 = vmatpush.bf16.msra.mxu0 %v5363_v53 }
 0x5b0   :  { %v3114_v3 = vadd.f32 %v3113_v60, %v3056_v45  ;;  %3743 = vmatpush.bf16.msrb.mxu2 %v5159_v11 }
 0x5b2   :  { %v3125_v22 = vmax.f32 %v3114_v3, 0.0 }
 0x5b3   :  { %3781 = vmatpush.bf16.msra.mxu0 %v5351_v0 }
 0x5b6   :  { %3706 = vmatmul.bf16.vlgmr.msrb.gmra.mxu0 %v6175_v51 }
 0x5b7   :  { %3763 = vmatmul.bf16.vlgmr.msrb.gmra.mxu3 %v6175_v51  ;;  %v3115_v8 = vpop.f32.mrf.mxu3 }
 0x5b8   :  { %v3116_v10 = vadd.f32 %v3115_v8, %v3059_v42 }
 0x5ba   :  { %v3128_v12 = vmax.f32 %v3116_v10, 0.0 }
 0x5bc   :  { %v3137_v13 = vpack.c.bf16 %v3128_v12, %v3125_v22 }
 0x5be   :  { %3668 = vmatmul.bf16.vlgmr.msra.gmra.mxu2 %v3137_v13  ;;  %3725 = vmatmul.bf16.vlgmr.msrb.gmra.mxu1 %v3137_v13 }
 0x5bf   :  { %v3118_v9 = vpop.f32.mrf.mxu3 }
 0x5c0   :  { %v3119_v16 = vadd.f32 %v3118_v9, %v3062_v14 }
 0x5c2   :  { %v3131_v17 = vmax.f32 %v3119_v16, 0.0 }
 0x5c6   :  { %3711 = vmatmul.bf16.gmra.mxu0 %v6182_v4 }
 0x5c7   :  { %3768 = vmatmul.bf16.gmra.mxu3 %v6182_v4  ;;  %v3120_v51 = vpop.f32.mrf.mxu3 }
 0x5c8   :  { %v3121_v18 = vadd.f32 %v3120_v51, %v3065_v15 }
 0x5ca   :  { %v3134_v19 = vmax.f32 %v3121_v18, 0.0 }
 0x5cc   :  { %v3140_v20 = vpack.c.bf16 %v3134_v19, %v3131_v17 }
 0x5ce   :  { %3673 = vmatmul.bf16.gmra.mxu2 %v3140_v20  ;;  %3730 = vmatmul.bf16.gmra.mxu1 %v3140_v20 }
 0x5d6   :  { %3782 = vmatmul.bf16.vlgmr.msra.gmra.mxu0 %v3137_v13 }
 0x5de   :  { %3744 = vmatmul.bf16.vlgmr.msrb.gmra.mxu2 %v6173_v49 }
 0x5e6   :  { %3787 = vmatmul.bf16.gmra.mxu0 %v3140_v20 }
 0x5ee   :  { %3749 = vmatmul.bf16.gmra.mxu2 %v6180_v31 }
 0x613   :  { %v3631_v21 = vpop.f32.mrf.mxu0  ;;  %v3650_v50 = vpop.f32.mrf.mxu1 }
 0x614   :  { %v3651_v24 = vadd.f32 %v3650_v50, %v3631_v21 }
 0x61a   :  { %v3688_v30 = vpop.f32.mrf.mxu3 }
 0x61b   :  { %v3633_v25 = vpop.f32.mrf.mxu0  ;;  %v3652_v26 = vpop.f32.mrf.mxu1 }
 0x61c   :  { %v3653_v62 = vadd.f32 %v3652_v26, %v3633_v25 }
 0x622   :  { %v3690_v33 = vpop.f32.mrf.mxu3 }
 0x623   :  { %v3636_v27 = vpop.f32.mrf.mxu0  ;;  %v3655_v28 = vpop.f32.mrf.mxu1 }
 0x624   :  { %v3656_v59 = vadd.f32 %v3655_v28, %v3636_v27 }
 0x62a   :  { %v3693_v38 = vpop.f32.mrf.mxu3 }
 0x62b   :  { %v3638_v34 = vpop.f32.mrf.mxu0  ;;  %v3657_v55 = vpop.f32.mrf.mxu1 }
 0x62c   :  { %v3658_v60 = vadd.f32 %v3657_v55, %v3638_v34 }
 0x632   :  { %v3695_v39 = vpop.f32.mrf.mxu3 }
 0x633   :  { %v3707_v29 = vpop.f32.mrf.mxu0 }
 0x634   :  { %v3708_v23 = vadd.f32 %v3707_v29, %v3688_v30  ;;  %v3806_v29 = vld [vmem:[#allocation7 + $0x1b0] sm:$0xff] }
 0x63a   :  { %v3764_v42 = vpop.f32.mrf.mxu3 }
 0x63b   :  { %v3709_v4 = vpop.f32.mrf.mxu0  ;;  %v3726_v32 = vpop.f32.mrf.mxu1 }
 0x63c   :  { %v3710_v56 = vadd.f32 %v3709_v4, %v3690_v33  ;;  %v3727_v53 = vadd.f32 %v3726_v32, %v3708_v23  ;;  %v3807_v4 = vld [vmem:[#allocation7 + $0x1b8] sm:$0xff]  ;;  %v3800_v32 = vld [vmem:[#allocation7 + $0x180] sm:$0xff]  ;;  %v3801_v33 = vld [vmem:[#allocation7 + $0x188] sm:$0xff] }
 0x641   :  { %v3669_v35 = vpop.f32.mrf.mxu2 }
 0x642   :  { %v3670_v5 = vadd.f32 %v3669_v35, %v3651_v24  ;;  %v3766_v8 = vpop.f32.mrf.mxu3  ;;  %v3803_v35 = vld [vmem:[#allocation7 + $0x198] sm:$0xff] }
 0x643   :  { %v3728_v37 = vpop.f32.mrf.mxu1  ;;  %v3712_v49 = vpop.f32.mrf.mxu0 }
 0x644   :  { %v3713_v48 = vadd.f32 %v3712_v49, %v3693_v38  ;;  %v3729_v36 = vadd.f32 %v3728_v37, %v3710_v56  ;;  %v3804_v37 = vld [vmem:[#allocation7 + $0x1a0] sm:$0xff]  ;;  %v3809_v49 = vld [vmem:[#allocation7 + $0x1c8] sm:$0xff]  ;;  %v3810_v38 = vld [vmem:[#allocation7 + $0x1d0] sm:$0xff] }
 0x646   :  { %v3794_v41 = vpack.c.bf16 %v3729_v36, %v3727_v53  ;;  %v3808_v53 = vld [vmem:[#allocation7 + $0x1c0] sm:$0xff] }
 0x649   :  { %v3671_v43 = vpop.f32.mrf.mxu2 }
 0x64a   :  { %v3672_v1 = vadd.f32 %v3671_v43, %v3653_v62  ;;  %v3769_v22 = vpop.f32.mrf.mxu3  ;;  %v3805_v62 = vld [vmem:[#allocation7 + $0x1a8] sm:$0xff] }
 0x64b   :  { %v3731_v31 = vpop.f32.mrf.mxu1  ;;  %v3714_v46 = vpop.f32.mrf.mxu0 }
 0x64c   :  { %v3715_v52 = vadd.f32 %v3714_v46, %v3695_v39  ;;  %v3732_v57 = vadd.f32 %v3731_v31, %v3713_v48  ;;  %v3793_v6 = vpack.c.bf16 %v3672_v1, %v3670_v5 }
 0x651   :  { %v3674_v47 = vpop.f32.mrf.mxu2 }
 0x652   :  { %v3675_v45 = vadd.f32 %v3674_v47, %v3656_v59  ;;  %v3771_v14 = vpop.f32.mrf.mxu3 }
 0x653   :  { %v3733_v54 = vpop.f32.mrf.mxu1  ;;  %v3783_v3 = vpop.f32.mrf.mxu0 }
 0x654   :  { %v3734_v58 = vadd.f32 %v3733_v54, %v3715_v52 }
 0x656   :  { %v3797_v63 = vpack.c.bf16 %v3734_v58, %v3732_v57 }
 0x658   :  { %3837 = vmatpush.bf16.msra.mxu2 %v3797_v63  ;;  %v3869_v63 = vld [vmem:[#allocation10] sm:$0xf] }
 0x659   :  { %v3676_v61 = vpop.f32.mrf.mxu2 }
 0x65a   :  { %v3677_v0 = vadd.f32 %v3676_v61, %v3658_v60  ;;  %v3811_v61 = vld [vmem:[#allocation7 + $0x1d8] sm:$0xff] }
 0x65b   :  { %v3785_v10 = vpop.f32.mrf.mxu0 }
 0x65c   :  { %v3796_v2 = vpack.c.bf16 %v3677_v0, %v3675_v45  ;;  %3838 = vmatpush.bf16.msra.mxu2 %v3794_v41 }
 0x65e   :  { %3818 = vmatpush.bf16.msra.mxu1 %v3796_v2 }
 0x65f   :  { %5438 = vmatmul.msk.bf16.vlgmr.msra.gmra.mxu2 %vm821_vm0, %v6157_v40 }
 0x661   :  { %v3745_v7 = vpop.f32.mrf.mxu2 }
 0x662   :  { %3819 = vmatpush.bf16.msra.mxu1 %v3793_v6  ;;  %v3765_v17 = vadd.f32 %v3764_v42, %v3745_v7  ;;  %v3802_v42 = vld [vmem:[#allocation7 + $0x190] sm:$0xff] }
 0x663   :  { %v3788_v12 = vpop.f32.mrf.mxu0 }
 0x664   :  { %v3784_v24 = vadd.f32 %v3783_v3, %v3765_v17 }
 0x665   :  { %5436 = vmatmul.msk.bf16.vlgmr.msra.gmra.mxu1 %vm821_vm0, %v6157_v40 }
 0x669   :  { %v3747_v11 = vpop.f32.mrf.mxu2 }
 0x66a   :  { %v3767_v16 = vadd.f32 %v3766_v8, %v3747_v11 }
 0x66b   :  { %v3790_v18 = vpop.f32.mrf.mxu0 }
 0x66c   :  { %v3786_v21 = vadd.f32 %v3785_v10, %v3767_v16 }
 0x66e   :  { %v3795_v25 = vpack.c.bf16 %v3786_v21, %v3784_v24 }
 0x66f   :  { %5439 = vmatmul.msk.bf16.gmra.mxu2 %vm821_vm0, %v6163_v44 }
 0x671   :  { %v3750_v13 = vpop.f32.mrf.mxu2 }
 0x672   :  { %v3770_v9 = vadd.f32 %v3769_v22, %v3750_v13 }
 0x674   :  { %v3789_v19 = vadd.f32 %v3788_v12, %v3770_v9 }
 0x675   :  { %5437 = vmatmul.msk.bf16.gmra.mxu1 %vm821_vm0, %v6163_v44 }
 0x679   :  { %v3752_v15 = vpop.f32.mrf.mxu2 }
 0x67a   :  { %v3772_v51 = vadd.f32 %v3771_v14, %v3752_v15 }
 0x67c   :  { %v3791_v20 = vadd.f32 %v3790_v18, %v3772_v51 }
 0x67e   :  { %v3798_v50 = vpack.c.bf16 %v3791_v20, %v3789_v19 }
 0x680   :  { %3856 = vmatpush.bf16.msra.mxu3 %v3798_v50 }
 0x684   :  { %3857 = vmatpush.bf16.msra.mxu3 %v3795_v25 }
 0x687   :  { %5440 = vmatmul.msk.bf16.vlgmr.msra.gmra.mxu3 %vm821_vm0, %v6157_v40 }
 0x697   :  { %5441 = vmatmul.msk.bf16.gmra.mxu3 %vm821_vm0, %v6163_v44 }
 0x6e2   :  { %v3821_v26 = vpop.f32.mrf.mxu1  ;;  %v3840_v27 = vpop.f32.mrf.mxu2 }
 0x6e3   :  { %v3822_v40 = vadd.f32 %v3821_v26, %v3800_v32  ;;  %v3841_v46 = vadd.f32 %v3840_v27, %v3801_v33 }
 0x6ea   :  { %v3823_v28 = vpop.f32.mrf.mxu1  ;;  %v3842_v34 = vpop.f32.mrf.mxu2 }
 0x6eb   :  { %v3824_v47 = vadd.f32 %v3823_v28, %v3803_v35  ;;  %v3843_v48 = vadd.f32 %v3842_v34, %v3804_v37 }
 0x6ed   :  { %v3870_v58 = vpack.c.bf16 %v3824_v47, %v3822_v40  ;;  %v3871_v23 = vpack.c.bf16 %v3843_v48, %v3841_v46 }
 0x6f2   :  { %v3826_v30 = vpop.f32.mrf.mxu1  ;;  %v3845_v55 = vpop.f32.mrf.mxu2 }
 0x6f3   :  { %v3827_v43 = vadd.f32 %v3826_v30, %v3806_v29  ;;  %v3846_v31 = vadd.f32 %v3845_v55, %v3807_v4 }
 0x6fa   :  { %v3828_v39 = vpop.f32.mrf.mxu1  ;;  %v3847_v44 = vpop.f32.mrf.mxu2 }
 0x6fb   :  { %v3829_v52 = vadd.f32 %v3828_v39, %v3809_v49  ;;  %v3848_v54 = vadd.f32 %v3847_v44, %v3810_v38 }
 0x6fd   :  { %v3873_v56 = vpack.c.bf16 %v3829_v52, %v3827_v43  ;;  %v3874_v57 = vpack.c.bf16 %v3848_v54, %v3846_v31 }
 0x6ff   :  { %3885 = vmatpush.bf16.msrb.mxu0 %v3873_v56  ;;  %3898 = vmatpush.bf16.msrb.mxu1 %v3874_v57 }
 0x703   :  { %3886 = vmatpush.bf16.msrb.mxu0 %v3870_v58  ;;  %3899 = vmatpush.bf16.msrb.mxu1 %v3871_v23 }
 0x706   :  { %5442 = vmatmul.msk.bf16.vlgmr.msrb.gmra.mxu0 %vm821_vm0, %v3869_v63  ;;  %5443 = vmatmul.msk.bf16.vlgmr.msrb.gmra.mxu1 %vm821_vm0, %v3869_v63 }
 0x70a   :  { %v3859_v36 = vpop.f32.mrf.mxu3 }
 0x70b   :  { %v3860_v3 = vadd.f32 %v3859_v36, %v3802_v42 }
 0x712   :  { %v3861_v59 = vpop.f32.mrf.mxu3 }
 0x713   :  { %v3862_v1 = vadd.f32 %v3861_v59, %v3805_v62 }
 0x715   :  { %v3872_v5 = vpack.c.bf16 %v3862_v1, %v3860_v3 }
 0x71a   :  { %v3864_v60 = vpop.f32.mrf.mxu3 }
 0x71b   :  { %v3865_v45 = vadd.f32 %v3864_v60, %v3808_v53 }
 0x722   :  { %v3866_v41 = vpop.f32.mrf.mxu3 }
 0x723   :  { %v3867_v0 = vadd.f32 %v3866_v41, %v3811_v61 }
 0x725   :  { %v3875_v2 = vpack.c.bf16 %v3867_v0, %v3865_v45 }
 0x727   :  { %3911 = vmatpush.bf16.msrb.mxu2 %v3875_v2 }
 0x72b   :  { %3912 = vmatpush.bf16.msrb.mxu2 %v3872_v5 }
 0x72e   :  { %5444 = vmatmul.msk.bf16.vlgmr.msrb.gmra.mxu2 %vm821_vm0, %v3869_v63 }
 0x783   :  { %v3888_v6 = vpop.f32.mrf.mxu0  ;;  %v3901_v7 = vpop.f32.mrf.mxu1 }
 0x784   :  { %3918 = vst [vmem:[#allocation11] sm:$0xff] %v3888_v6 }
 0x785   :  { %3919 = vst [vmem:[#allocation11 + $0x8] sm:$0xff] %v3901_v7 }
 0x78b   :  { %v3890_v8 = vpop.f32.mrf.mxu0  ;;  %v3903_v10 = vpop.f32.mrf.mxu1 }
 0x7b1   :  { %v3914_v11 = vpop.f32.mrf.mxu2 }
 0x7b2   :  { %3920 = vst [vmem:[#allocation11 + $0x10] sm:$0xff] %v3914_v11 }
 0x7b3   :  { %3931 = dma.vmem_to_hbm [thread:$0]  %s3927_s4, 384, %s3929_s23, [#allocation4]  }
 0x7b9   :  { %v3916_v22 = vpop.f32.mrf.mxu2 }
 0x7ba   :  { %5979 = dma.done.wait [#allocation4], 384  }
 0x7bb   :  { %5980 = vsyncadd [#allocation4], 4294966912 }
 0x7bc   :  { %3936 = vsyncpa [#allocation3], 1 }
 0x7bd   :  { %3937 = vsyncpa [#allocation6], 1 }
 0x7be   :  { %3938 = vsyncpa [#allocation9], 1 }
 0x7bf   :  { %3939 = vsyncpa [#allocation4], 1 }

</bundles_post_ra>
